<compile_context>
chip_gen: v6e
topology: v6e:2x2x1
jax: 0.10.0
libtpu: 0.0.40
codegen_flags: <defaults>
</compile_context>

<pallas_src>
import functools
import math

import jax
import jax.numpy as jnp
from jax.experimental import pallas as pl
from jax.experimental.pallas import tpu as pltpu


def _round_up(x, m):
    return ((x + m - 1) // m) * m


def _chip_profile():
    """Per-generation tiling knobs.  Falls back to conservative defaults."""
    kind = ""
    try:
        kind = jax.devices()[0].device_kind.lower()
    except Exception:  # best-effort only; never fail here
        pass
    if "v7" in kind:
        # 2 TensorCores share 'parallel' grid axes; 64 MiB physical VMEM.
        return dict(lanes=256, num_tc=2, max_block_bytes=12 << 20,
                    vmem_floor=40 << 20)
    if "v5 lite" in kind or "v5e" in kind or "v5lite" in kind:
        # Single TC, 4x128x128 MXU: keep the 128-wide formulation.
        return dict(lanes=128, num_tc=1, max_block_bytes=6 << 20,
                    vmem_floor=24 << 20)
    if "v6" in kind:
        return dict(lanes=256, num_tc=1, max_block_bytes=6 << 20,
                    vmem_floor=32 << 20)
    # Unknown TPU: conservative block budget that fits every generation's
    # default scoped-VMEM limit.
    return dict(lanes=256, num_tc=1, max_block_bytes=4 << 20,
                vmem_floor=20 << 20)


def _select_x_kernel(x_ref, o_ref, *, stride):
    """o[g, j] = x[g, j*stride] via a one-hot selector matmul on the MXU.

    x_ref: (tile_g, stride*LANES) -- LANES points per row, coords interleaved.
    o_ref: (tile_g, LANES)        -- coordinate 0 of each of the LANES points.
    """
    k = x_ref.shape[-1]
    n = o_ref.shape[-1]
    # One-hot selector built in-kernel (VPU iota + compare, hidden under the
    # input DMA): sel[r, c] = 1 iff r == c*stride.  Exactly representable in
    # bf16, so every dot column has a single exact nonzero.
    rows = jax.lax.broadcasted_iota(jnp.int32, (k, n), 0)
    cols = jax.lax.broadcasted_iota(jnp.int32, (k, n), 1)
    sel = (rows == stride * cols).astype(jnp.bfloat16)

    x = x_ref[...]
    if x_ref.dtype == jnp.bfloat16:
        out = jnp.dot(x, sel, preferred_element_type=jnp.float32)
    else:
        # f32: standard 3-way bf16 split (each term exactly representable),
        # then three single-pass bf16 matmuls.  Equivalent accuracy to
        # precision=HIGHEST against an exact one-hot rhs, at half the passes.
        hi = x.astype(jnp.bfloat16)
        r = x - hi.astype(jnp.float32)
        mid = r.astype(jnp.bfloat16)
        lo = (r - mid.astype(jnp.float32)).astype(jnp.bfloat16)
        out = (jnp.dot(hi, sel, preferred_element_type=jnp.float32)
               + jnp.dot(mid, sel, preferred_element_type=jnp.float32)
               + jnp.dot(lo, sel, preferred_element_type=jnp.float32))
    o_ref[...] = out.astype(o_ref.dtype)


def sdf_planes_forward(query_positions, *, min_pallas_points=1 << 17):
    """Pallas implementation of SDFPlanes.forward: x[..., [0]]."""
    orig_shape = query_positions.shape
    D = orig_shape[-1]
    lead = orig_shape[:-1]
    M = math.prod(lead) if lead else 1
    dtype = query_positions.dtype

    prof = _chip_profile()
    lanes = prof["lanes"]
    M_aligned = (M // lanes) * lanes

    # Fast path: small clouds (launch / pipeline-prologue overhead dominates;
    # XLA's fused slice is already at roofline) or unsupported dtypes.
    if (M < min_pallas_points or M_aligned == 0
            or dtype not in (jnp.float32, jnp.bfloat16)):
        return query_positions[..., 0:1]

    itemsize = query_positions.dtype.itemsize
    sub = 16 if dtype == jnp.bfloat16 else 8

    x2d = query_positions.reshape(M, D)
    G = M_aligned // lanes
    # Lane-group view of the aligned prefix.  Free (row-major) when M is
    # already LANES-aligned; the ragged tail is handled with a plain slice
    # below instead of jnp.pad-ing (and copying) the whole cloud.
    xg = x2d[:M_aligned].reshape(G, D * lanes)

    # Row tile: as many lane-groups as fit the per-generation block budget.
    row_bytes = D * lanes * itemsize
    tile = max(sub, (prof["max_block_bytes"] // row_bytes) // sub * sub)
    if prof["num_tc"] >= 2 and G > sub:
        # Multi-TensorCore chips (v7x): keep both cores busy with an even
        # number of 'parallel' grid blocks.
        n_blocks = max(2, pl.cdiv(G, tile))
        if n_blocks % 2:
            n_blocks += 1
        tile = max(sub, _round_up(pl.cdiv(G, n_blocks), sub))
    if tile >= G:
        tile = G                      # single full-extent block (always legal)
    grid = (pl.cdiv(G, tile),)

    # Double-buffered input + output blocks, plus margin for internal scratch.
    need = 2 * tile * (row_bytes + lanes * itemsize) + (2 << 20)
    vmem_limit = min(max(prof["vmem_floor"], need), 56 << 20)

    passes = 3 if dtype == jnp.float32 else 1
    cost = pl.CostEstimate(
        flops=2 * G * lanes * D * lanes * passes,
        transcendentals=0,
        bytes_accessed=(M_aligned * D + M_aligned) * itemsize,
    )

    out_dense = pl.pallas_call(
        functools.partial(_select_x_kernel, stride=D),
        out_shape=jax.ShapeDtypeStruct((G, lanes), dtype),
        grid=grid,
        in_specs=[pl.BlockSpec((tile, D * lanes), lambda i: (i, 0))],
        out_specs=pl.BlockSpec((tile, lanes), lambda i: (i, 0)),
        compiler_params=pltpu.CompilerParams(
            dimension_semantics=("parallel",),
            vmem_limit_bytes=int(vmem_limit),
        ),
        cost_estimate=cost,
    )(xg)
    # TODO(synk): on v7x, sweep pipeline_mode=pl.Buffered(3) on the input
    # BlockSpec (review item; expected low single-digit %, drop if neutral).

    out = out_dense.reshape(M_aligned, 1)
    if M_aligned != M:
        out = jnp.concatenate([out, x2d[M_aligned:, 0:1]], axis=0)
    return out.reshape(lead + (1,))


if __name__ == "__main__":
    key = jax.random.PRNGKey(0)
    k1, k2, k3, k4 = jax.random.split(key, 4)

    # 1) Lane-dense Pallas path (f32): 2 x 8192 = 16384 points, 3-D coords.
    qp = jax.random.normal(k1, (2, 8192, 3), dtype=jnp.float32)
    out = jax.block_until_ready(sdf_planes_forward(qp, min_pallas_points=4096))
    ref = qp[..., 0:1]
    assert out.shape == ref.shape, (out.shape, ref.shape)
    assert out.dtype == ref.dtype, (out.dtype, ref.dtype)
    assert bool(jnp.allclose(out, ref, rtol=1e-6, atol=0.0)), "f32 path mismatch"

    # 2) Ragged point count (not LANES-aligned) -> aligned prefix + tail slice.
    qp2 = jax.random.normal(k2, (5, 1000, 3), dtype=jnp.float32)
    out2 = jax.block_until_ready(sdf_planes_forward(qp2, min_pallas_points=1024))
    ref2 = qp2[..., 0:1]
    assert out2.shape == ref2.shape, (out2.shape, ref2.shape)
    assert bool(jnp.allclose(out2, ref2, rtol=1e-6, atol=0.0)), "ragged path mismatch"

    # 3) bf16 Pallas path (exact: one-hot dot, f32 accumulate, cast back).
    qp3 = jax.random.normal(k3, (1, 4096, 3), dtype=jnp.bfloat16)
    out3 = jax.block_until_ready(sdf_planes_forward(qp3, min_pallas_points=1024))
    ref3 = qp3[..., 0:1]
    assert out3.shape == ref3.shape and out3.dtype == ref3.dtype
    assert bool(jnp.all(out3 == ref3)), "bf16 path mismatch"

    # 4) Small point cloud -> plain-JAX fast path (exact, default threshold).
    qp4 = jax.random.normal(k4, (2, 64, 3), dtype=jnp.float32)
    out4 = jax.block_until_ready(sdf_planes_forward(qp4))
    ref4 = qp4[..., 0:1]
    assert out4.shape == ref4.shape, (out4.shape, ref4.shape)
    assert bool(jnp.all(out4 == ref4)), "fast path mismatch"

    print("KERNEL_OK")
</pallas_src>

<mosaic_0001>
module attributes {stable_mosaic.version = 11 : i64} {
  func.func @_select_x_kernel(%arg0: i32, %arg1: memref<64x768xf32, #tpu.memory_space<vmem>>, %arg2: memref<64x256xf32, #tpu.memory_space<vmem>>) attributes {dimension_semantics = [#tpu.dimension_semantics<parallel>], iteration_bounds = array<i64: 1>, scalar_prefetch = 0 : i64, scratch_operands = 0 : i64, tpu.core_type = #tpu.core_type<tc>, window_params = [{transform_indices = @transform_0, window_bounds = array<i64: 64, 768>}, {transform_indices = @transform_1, window_bounds = array<i64: 64, 256>}]} {
    %0 = tpu.iota {dimensions = array<i32: 0>} : vector<768x256xi32>
    %1 = tpu.iota {dimensions = array<i32: 1>} : vector<768x256xi32>
    %c3_i32 = arith.constant 3 : i32
    %2 = vector.broadcast %c3_i32 : i32 to vector<768x256xi32>
    %3 = arith.muli %2, %1 : vector<768x256xi32>
    %4 = arith.cmpi eq, %0, %3 : vector<768x256xi32>
    %5 = arith.extui %4 : vector<768x256xi1> to vector<768x256xi32>
    %6 = arith.sitofp %5 : vector<768x256xi32> to vector<768x256xf32>
    %7 = arith.truncf %6 : vector<768x256xf32> to vector<768x256xbf16>
    %c0 = arith.constant 0 : index
    %c0_0 = arith.constant 0 : index
    %8 = vector.load %arg1[%c0, %c0_0] : memref<64x768xf32, #tpu.memory_space<vmem>>, vector<64x768xf32>
    %9 = arith.truncf %8 : vector<64x768xf32> to vector<64x768xbf16>
    %10 = arith.extf %9 : vector<64x768xbf16> to vector<64x768xf32>
    %11 = arith.subf %8, %10 : vector<64x768xf32>
    %12 = arith.truncf %11 : vector<64x768xf32> to vector<64x768xbf16>
    %13 = arith.extf %12 : vector<64x768xbf16> to vector<64x768xf32>
    %14 = arith.subf %11, %13 : vector<64x768xf32>
    %15 = arith.truncf %14 : vector<64x768xf32> to vector<64x768xbf16>
    %cst = arith.constant dense<0.000000e+00> : vector<64x256xf32>
    %16 = tpu.matmul %9, %7, %cst {dimension_numbers = #tpu.dot_dimension_numbers<[1], [0], [0], [1], [0, 0, 1, 1], [], []>} : vector<64x768xbf16>, vector<768x256xbf16>, vector<64x256xf32> -> vector<64x256xf32>
    %cst_1 = arith.constant dense<0.000000e+00> : vector<64x256xf32>
    %17 = tpu.matmul %12, %7, %cst_1 {dimension_numbers = #tpu.dot_dimension_numbers<[1], [0], [0], [1], [0, 0, 1, 1], [], []>} : vector<64x768xbf16>, vector<768x256xbf16>, vector<64x256xf32> -> vector<64x256xf32>
    %18 = arith.addf %16, %17 : vector<64x256xf32>
    %cst_2 = arith.constant dense<0.000000e+00> : vector<64x256xf32>
    %19 = tpu.matmul %15, %7, %cst_2 {dimension_numbers = #tpu.dot_dimension_numbers<[1], [0], [0], [1], [0, 0, 1, 1], [], []>} : vector<64x768xbf16>, vector<768x256xbf16>, vector<64x256xf32> -> vector<64x256xf32>
    %20 = arith.addf %18, %19 : vector<64x256xf32>
    %c0_3 = arith.constant 0 : index
    %c0_4 = arith.constant 0 : index
    %21 = vector.load %arg2[%c0_3, %c0_4] : memref<64x256xf32, #tpu.memory_space<vmem>>, vector<64x256xf32>
    tpu.vector_store %arg2[%c0_3, %c0_4], %20 {strides = array<i32>} : memref<64x256xf32, #tpu.memory_space<vmem>>, vector<64x256xf32>,
    return
  }
  func.func @transform_0(%arg0: i32) -> (i32, i32) {
    %c0_i32 = arith.constant 0 : i32
    %c0_i32_0 = arith.constant 0 : i32
    return %arg0, %c0_i32 : i32, i32
  }
  func.func @transform_1(%arg0: i32) -> (i32, i32) {
    %c0_i32 = arith.constant 0 : i32
    %c0_i32_0 = arith.constant 0 : i32
    return %arg0, %c0_i32 : i32, i32
  }
}

</mosaic_0001>

<bundles_post_ra>
// kernel: tpu_custom_call.1
= control target key start
LH: loop header
LB: loop body
LE: loop exit
PB: predicated region body
PF: predicated region fallthrough
CT: control target
= control target key end

     0   :  { %6 = vsyncpa [#allocation3], 0  ;;  %s5506_s0 = inlined_call_operand.hbm [shape: f32[64,768], index: 0, kind: input, shape index: {}]   ;;  %s5507_s1 = inlined_call_operand.hbm [shape: f32[64,256], index: 1, kind: output, shape index: {}]  }
   0x1   :  { %7 = vsyncpa [#allocation4], 0  ;;  %s2666_s6 = smov [#allocation2]  }
   0x2   :  { %s13_s7 = sshll.u32 %s2666_s6, 4  ;;  %s14_s7 = int_to_ptr.vmem [resolvable:$true] %s13_s7 }
   0x3   :  { %s2630_s8 = scalar_lea.vmem %s14_s7, 6144  ;;  %p2635_p1 = scmp.lt.s32.totalorder %s14_s7, %s14_s7 }
   0x4   :  { %p2631_p0 = scmp.ne.s32.totalorder %s14_s7, %s2630_s8  ;;  %p2636_p2 = scmp.lt.s32.totalorder %s2630_s8, %s2630_s8 }
   0x6   :  { %p2637_p3 = por %p2636_p2, %p2635_p1 }
   0x8   :  { %p2638_p4 = pnand %p2637_p3, %p2631_p0 }
   0xa   :  { %2641 = shalt.err (!%p2638_p4)
}
   0xb   :  { %s2667_s9 = smov 768   ;;  %s2668_s10 = smov 48   ;;  %v23_v0 = vlaneseq }
   0xc   :  { %19 = dma.hbm_to_vmem [thread:$0]  %s5506_s0, 6144, %s14_s7, [#allocation3], %s2667_s9, %s2667_s9, %s2668_s10  }
   0xd   :  { %2662 = dma.done.wait [#allocation3], 6144  }
   0xe   :  { %2663 = vsyncadd [#allocation3], 4294961152  ;;  %v2686_v1 = vshrl.u32 %v23_v0, 7  ;;  %v121_v2 = vand.u32 127, %v23_v0  ;;  %v5928_v14 = vmov 0  ;;  %v5931_v15 = vmov 0 }
   0xf   :  { %v5568_v17 = vmov 1.0|1.0   ;;  %v5934_v18 = vmov 0  ;;  %v5937_v19 = vmov 0  ;;  %v5940_v23 = vmov 0  ;;  %s2670_s0 = smov [#allocation5]  }
  0x10   :  { %v38_v3 = vadd.s32 112, %v2686_v1  ;;  %v39_v4 = vadd.s32 120, %v2686_v1  ;;  %v122_v5 = vadd.s32 128, %v121_v2  ;;  %v70_v6 = vadd.s32 368, %v2686_v1  ;;  %s1803_s13 = sshll.u32 %s2670_s0, 4  ;;  %s1804_s13 = int_to_ptr.vmem [resolvable:$true] %s1803_s13 }
  0x11   :  { %v71_v7 = vadd.s32 376, %v2686_v1  ;;  %v2692_v8 = vmul.u32 3, %v121_v2  ;;  %v36_v9 = vadd.s32 96, %v2686_v1  ;;  %v37_v10 = vadd.s32 104, %v2686_v1  ;;  %s2642_s14 = scalar_lea.vmem %s1804_s13, 2048  ;;  %p2647_p6 = scmp.lt.s32.totalorder %s1804_s13, %s1804_s13 }
  0x12   :  { %v2696_v11 = vmul.u32 3, %v122_v5  ;;  %v68_v12 = vadd.s32 352, %v2686_v1  ;;  %v69_v13 = vadd.s32 360, %v2686_v1  ;;  %v34_v16 = vadd.s32 80, %v2686_v1  ;;  %p2643_p5 = scmp.ne.s32.totalorder %s1804_s13, %s2642_s14  ;;  %p2648_p7 = scmp.lt.s32.totalorder %s2642_s14, %s2642_s14 }
  0x13   :  { %vm153_vm0 = vcmp.eq.s32.totalorder %v38_v3, %v2692_v8  ;;  %vm155_vm1 = vcmp.eq.s32.totalorder %v39_v4, %v2692_v8  ;;  %vm217_vm2 = vcmp.eq.s32.totalorder %v70_v6, %v2692_v8  ;;  %vm219_vm3 = vcmp.eq.s32.totalorder %v71_v7, %v2692_v8 }
  0x14   :  { %vm154_vm4 = vcmp.eq.s32.totalorder %v38_v3, %v2696_v11  ;;  %vm156_vm5 = vcmp.eq.s32.totalorder %v39_v4, %v2696_v11  ;;  %vm218_vm6 = vcmp.eq.s32.totalorder %v70_v6, %v2696_v11  ;;  %vm220_vm7 = vcmp.eq.s32.totalorder %v71_v7, %v2696_v11  ;;  %vm2708_vm8 = vmpackc.low %vm155_vm1, %vm153_vm0  ;;  %p2649_p8 = por %p2648_p7, %p2647_p6 }
  0x15   :  { %v5929_v14 = vsel %vm2708_vm8, 4294967295, %v5928_v14  ;;  %vm2712_vm9 = vmpackc.low %vm156_vm5, %vm154_vm4  ;;  %vm150_vm10 = vcmp.eq.s32.totalorder %v36_v9, %v2696_v11  ;;  %vm152_vm11 = vcmp.eq.s32.totalorder %v37_v10, %v2696_v11  ;;  %vm214_vm13 = vcmp.eq.s32.totalorder %v68_v12, %v2696_v11 }
  0x16   :  { %5930 = vst [vmem:[#allocation8_spill] sm:$0xff] %v5929_v14  ;;  %v5932_v15 = vsel %vm2712_vm9, 4294967295, %v5931_v15  ;;  %2008 = vmatprep.subr.msk.bf16.mxu0 %vm2712_vm9, %v5568_v17  ;;  %vm2722_vm12 = vmpackc.low %vm220_vm7, %vm218_vm6  ;;  %vm216_vm14 = vcmp.eq.s32.totalorder %v69_v13, %v2696_v11  ;;  %vm149_vm15 = vcmp.eq.s32.totalorder %v36_v9, %v2692_v8  ;;  %vm151_vm1 = vcmp.eq.s32.totalorder %v37_v10, %v2692_v8  ;;  %p2650_p9 = pnand %p2649_p8, %p2643_p5 }
  0x17   :  { %5933 = vst [vmem:[#allocation9_spill] sm:$0xff] %v5932_v15  ;;  %v5935_v18 = vsel %vm2722_vm12, 4294967295, %v5934_v18  ;;  %2072 = vmatprep.subr.msk.bf16.mxu1 %vm2722_vm12, %v5568_v17  ;;  %2010 = vmatpush1.bf16.msk.msra.mxu0 %vm2708_vm8, %v5568_v17  ;;  %vm2739_vm0 = vmpackc.low %vm219_vm3, %vm217_vm2  ;;  %v35_v20 = vadd.s32 88, %v2686_v1  ;;  %v66_v21 = vadd.s32 336, %v2686_v1  ;;  %v67_v22 = vadd.s32 344, %v2686_v1 }
  0x18   :  { %5936 = vst [vmem:[#allocation10_spill] sm:$0xff] %v5935_v18  ;;  %v5938_v19 = vsel %vm2739_vm0, 4294967295, %v5937_v19  ;;  %2074 = vmatpush1.bf16.msk.msra.mxu1 %vm2739_vm0, %v5568_v17  ;;  %vm2754_vm2 = vmpackc.low %vm152_vm11, %vm150_vm10  ;;  %vm213_vm3 = vcmp.eq.s32.totalorder %v68_v12, %v2692_v8  ;;  %vm215_vm4 = vcmp.eq.s32.totalorder %v69_v13, %v2692_v8  ;;  %v5943_v24 = vmov 0  ;;  %v822_v18 = vld [vmem:[#allocation2 + $0xc8] sm:$0xff] }
  0x19   :  { %5939 = vst [vmem:[#allocation11_spill] sm:$0xff] %v5938_v19  ;;  %v5941_v23 = vsel %vm2754_vm2, 4294967295, %v5940_v23  ;;  %2012 = vmatprep.subr.msk.bf16.mxu0 %vm2754_vm2, %v5568_v17  ;;  %vm2765_vm5 = vmpackc.low %vm216_vm14, %vm214_vm13  ;;  %vm148_vm7 = vcmp.eq.s32.totalorder %v35_v20, %v2696_v11  ;;  %v32_v25 = vadd.s32 64, %v2686_v1  ;;  %v33_v26 = vadd.s32 72, %v2686_v1  ;;  %v817_v19 = vld [vmem:[#allocation2 + $0xa0] sm:$0xff] }
  0x1a   :  { %5942 = vst [vmem:[#allocation12_spill] sm:$0xff] %v5941_v23  ;;  %v5944_v24 = vsel %vm2765_vm5, 4294967295, %v5943_v24  ;;  %2076 = vmatprep.subr.msk.bf16.mxu1 %vm2765_vm5, %v5568_v17  ;;  %vm2780_vm10 = vmpackc.low %vm151_vm1, %vm149_vm15  ;;  %v5946_v27 = vmov 0  ;;  %vm210_vm11 = vcmp.eq.s32.totalorder %v66_v21, %v2696_v11  ;;  %vm212_vm13 = vcmp.eq.s32.totalorder %v67_v22, %v2696_v11 }
  0x1b   :  { %5945 = vst [vmem:[#allocation13_spill] sm:$0xff] %v5944_v24  ;;  %v5947_v27 = vsel %vm2780_vm10, 4294967295, %v5946_v27  ;;  %v64_v28 = vadd.s32 320, %v2686_v1  ;;  %2014 = vmatpush1.bf16.msk.msra.mxu0 %vm2780_vm10, %v5568_v17  ;;  %vm2790_vm14 = vmpackc.low %vm215_vm4, %vm213_vm3  ;;  %v5949_v29 = vmov 0  ;;  %vm145_vm6 = vcmp.eq.s32.totalorder %v34_v16, %v2692_v8  ;;  %v811_v24 = vld [vmem:[#allocation2 + $0x70] sm:$0xff] }
  0x1c   :  { %5948 = vst [vmem:[#allocation14_spill] sm:$0xff] %v5947_v27  ;;  %v5950_v29 = vsel %vm2790_vm14, 4294967295, %v5949_v29  ;;  %vm147_vm15 = vcmp.eq.s32.totalorder %v35_v20, %v2692_v8  ;;  %v65_v30 = vadd.s32 328, %v2686_v1  ;;  %2078 = vmatpush1.bf16.msk.msra.mxu1 %vm2790_vm14, %v5568_v17  ;;  %vm5952_vm1 = vcmp.eq.s32.totalorder %v34_v16, %v2696_v11  ;;  %vm2811_vm0 = vmpackc.low %vm212_vm13, %vm210_vm11  ;;  %v821_v27 = vld [vmem:[#allocation2 + $0xc0] sm:$0xff] }
  0x1d   :  { %5951 = vst [vmem:[#allocation15_spill] sm:$0xff] %v5950_v29  ;;  %vm2802_vm5 = vmpackc.low %vm148_vm7, %vm5952_vm1  ;;  %v5953_v31 = vmov 0  ;;  %vm209_vm3 = vcmp.eq.s32.totalorder %v66_v21, %v2692_v8  ;;  %vm211_vm4 = vcmp.eq.s32.totalorder %v67_v22, %v2692_v8  ;;  %v5956_v32 = vmov 0  ;;  %2080 = vmatprep.subr.msk.bf16.mxu1 %vm2811_vm0, %v5568_v17 }
  0x1e   :  { %v5954_v31 = vsel %vm2802_vm5, 4294967295, %v5953_v31  ;;  %2016 = vmatprep.subr.msk.bf16.mxu0 %vm2802_vm5, %v5568_v17  ;;  %v5957_v32 = vsel %vm2811_vm0, 4294967295, %v5956_v32  ;;  %vm142_vm14 = vcmp.eq.s32.totalorder %v32_v25, %v2696_v11  ;;  %vm144_vm12 = vcmp.eq.s32.totalorder %v33_v26, %v2696_v11  ;;  %vm2822_vm7 = vmpackc.low %vm147_vm15, %vm145_vm6 }
  0x1f   :  { %5955 = vst [vmem:[#allocation16_spill] sm:$0xff] %v5954_v31  ;;  %5958 = vst [vmem:[#allocation17_spill] sm:$0xff] %v5957_v32  ;;  %v30_v33 = vadd.s32 48, %v2686_v1  ;;  %v31_v34 = vadd.s32 56, %v2686_v1  ;;  %v5959_v35 = vmov 0  ;;  %vm206_vm11 = vcmp.eq.s32.totalorder %v64_v28, %v2696_v11  ;;  %2018 = vmatpush1.bf16.msk.msra.mxu0 %vm2822_vm7, %v5568_v17 }
  0x20   :  { %v5960_v35 = vsel %vm2822_vm7, 4294967295, %v5959_v35  ;;  %vm208_vm13 = vcmp.eq.s32.totalorder %v65_v30, %v2696_v11  ;;  %v62_v36 = vadd.s32 304, %v2686_v1  ;;  %v63_v37 = vadd.s32 312, %v2686_v1  ;;  %vm2835_vm1 = vmpackc.low %vm211_vm4, %vm209_vm3 }
  0x21   :  { %5961 = vst [vmem:[#allocation18_spill] sm:$0xff] %v5960_v35  ;;  %v5962_v38 = vmov 0  ;;  %vm141_vm6 = vcmp.eq.s32.totalorder %v32_v25, %v2692_v8  ;;  %vm143_vm15 = vcmp.eq.s32.totalorder %v33_v26, %v2692_v8  ;;  %2082 = vmatpush1.bf16.msk.msra.mxu1 %vm2835_vm1, %v5568_v17  ;;  %vm2846_vm0 = vmpackc.low %vm144_vm12, %vm142_vm14  ;;  %v5965_v39 = vmov 0 }
  0x22   :  { %v5963_v38 = vsel %vm2835_vm1, 4294967295, %v5962_v38  ;;  %v5966_v39 = vsel %vm2846_vm0, 4294967295, %v5965_v39  ;;  %vm205_vm7 = vcmp.eq.s32.totalorder %v64_v28, %v2692_v8  ;;  %vm207_vm3 = vcmp.eq.s32.totalorder %v65_v30, %v2692_v8  ;;  %2020 = vmatprep.subr.msk.bf16.mxu0 %vm2846_vm0, %v5568_v17  ;;  %vm2855_vm4 = vmpackc.low %vm208_vm13, %vm206_vm11 }
  0x23   :  { %5964 = vst [vmem:[#allocation19_spill] sm:$0xff] %v5963_v38  ;;  %5967 = vst [vmem:[#allocation20_spill] sm:$0xff] %v5966_v39  ;;  %v5968_v40 = vmov 0  ;;  %vm138_vm1 = vcmp.eq.s32.totalorder %v30_v33, %v2696_v11  ;;  %vm140_vm5 = vcmp.eq.s32.totalorder %v31_v34, %v2696_v11  ;;  %v28_v41 = vadd.s32 32, %v2686_v1  ;;  %2084 = vmatprep.subr.msk.bf16.mxu1 %vm2855_vm4, %v5568_v17 }
  0x24   :  { %v5969_v40 = vsel %vm2855_vm4, 4294967295, %v5968_v40  ;;  %v29_v42 = vadd.s32 40, %v2686_v1  ;;  %vm2866_vm12 = vmpackc.low %vm143_vm15, %vm141_vm6  ;;  %v5971_v43 = vmov 0  ;;  %vm202_vm14 = vcmp.eq.s32.totalorder %v62_v36, %v2696_v11 }
  0x25   :  { %5970 = vst [vmem:[#allocation21_spill] sm:$0xff] %v5969_v40  ;;  %v5972_v43 = vsel %vm2866_vm12, 4294967295, %v5971_v43  ;;  %vm204_vm11 = vcmp.eq.s32.totalorder %v63_v37, %v2696_v11  ;;  %v60_v44 = vadd.s32 288, %v2686_v1  ;;  %v61_v45 = vadd.s32 296, %v2686_v1  ;;  %2022 = vmatpush1.bf16.msk.msra.mxu0 %vm2866_vm12, %v5568_v17  ;;  %vm2879_vm13 = vmpackc.low %vm207_vm3, %vm205_vm7 }
  0x26   :  { %5973 = vst [vmem:[#allocation22_spill] sm:$0xff] %v5972_v43  ;;  %v5974_v46 = vmov 0  ;;  %vm137_vm6 = vcmp.eq.s32.totalorder %v30_v33, %v2692_v8  ;;  %vm139_vm15 = vcmp.eq.s32.totalorder %v31_v34, %v2692_v8  ;;  %2086 = vmatpush1.bf16.msk.msra.mxu1 %vm2879_vm13, %v5568_v17  ;;  %vm2890_vm4 = vmpackc.low %vm140_vm5, %vm138_vm1  ;;  %v5977_v47 = vmov 0 }
  0x27   :  { %v5975_v46 = vsel %vm2879_vm13, 4294967295, %v5974_v46  ;;  %v5978_v47 = vsel %vm2890_vm4, 4294967295, %v5977_v47  ;;  %vm201_vm12 = vcmp.eq.s32.totalorder %v62_v36, %v2692_v8  ;;  %vm203_vm7 = vcmp.eq.s32.totalorder %v63_v37, %v2692_v8  ;;  %2024 = vmatprep.subr.msk.bf16.mxu0 %vm2890_vm4, %v5568_v17  ;;  %vm2899_vm3 = vmpackc.low %vm204_vm11, %vm202_vm14 }
  0x28   :  { %5976 = vst [vmem:[#allocation23_spill] sm:$0xff] %v5975_v46  ;;  %5979 = vst [vmem:[#allocation24_spill] sm:$0xff] %v5978_v47  ;;  %v5980_v48 = vmov 0  ;;  %vm134_vm13 = vcmp.eq.s32.totalorder %v28_v41, %v2696_v11  ;;  %vm136_vm0 = vcmp.eq.s32.totalorder %v29_v42, %v2696_v11  ;;  %v26_v49 = vadd.s32 16, %v2686_v1  ;;  %2088 = vmatprep.subr.msk.bf16.mxu1 %vm2899_vm3, %v5568_v17 }
  0x29   :  { %v5981_v48 = vsel %vm2899_vm3, 4294967295, %v5980_v48  ;;  %v27_v50 = vadd.s32 24, %v2686_v1  ;;  %vm2910_vm5 = vmpackc.low %vm139_vm15, %vm137_vm6  ;;  %v5983_v51 = vmov 0  ;;  %vm198_vm1 = vcmp.eq.s32.totalorder %v60_v44, %v2696_v11 }
  0x2a   :  { %5982 = vst [vmem:[#allocation25_spill] sm:$0xff] %v5981_v48  ;;  %v5984_v51 = vsel %vm2910_vm5, 4294967295, %v5983_v51  ;;  %vm200_vm14 = vcmp.eq.s32.totalorder %v61_v45, %v2696_v11  ;;  %v58_v52 = vadd.s32 272, %v2686_v1  ;;  %v59_v53 = vadd.s32 280, %v2686_v1  ;;  %2026 = vmatpush1.bf16.msk.msra.mxu0 %vm2910_vm5, %v5568_v17  ;;  %vm2923_vm11 = vmpackc.low %vm203_vm7, %vm201_vm12 }
  0x2b   :  { %5985 = vst [vmem:[#allocation26_spill] sm:$0xff] %v5984_v51  ;;  %v5986_v54 = vmov 0  ;;  %vm133_vm6 = vcmp.eq.s32.totalorder %v28_v41, %v2692_v8  ;;  %vm135_vm15 = vcmp.eq.s32.totalorder %v29_v42, %v2692_v8  ;;  %2090 = vmatpush1.bf16.msk.msra.mxu1 %vm2923_vm11, %v5568_v17  ;;  %vm2934_vm3 = vmpackc.low %vm136_vm0, %vm134_vm13  ;;  %v5989_v55 = vmov 0 }
  0x2c   :  { %v5987_v54 = vsel %vm2923_vm11, 4294967295, %v5986_v54  ;;  %v5990_v55 = vsel %vm2934_vm3, 4294967295, %v5989_v55  ;;  %vm197_vm5 = vcmp.eq.s32.totalorder %v60_v44, %v2692_v8  ;;  %vm199_vm12 = vcmp.eq.s32.totalorder %v61_v45, %v2692_v8  ;;  %2028 = vmatprep.subr.msk.bf16.mxu0 %vm2934_vm3, %v5568_v17  ;;  %vm2943_vm7 = vmpackc.low %vm200_vm14, %vm198_vm1 }
  0x2d   :  { %5988 = vst [vmem:[#allocation27_spill] sm:$0xff] %v5987_v54  ;;  %5991 = vst [vmem:[#allocation28_spill] sm:$0xff] %v5990_v55  ;;  %v5992_v56 = vmov 0  ;;  %vm130_vm11 = vcmp.eq.s32.totalorder %v26_v49, %v2696_v11  ;;  %vm132_vm4 = vcmp.eq.s32.totalorder %v27_v50, %v2696_v11  ;;  %v25_v57 = vadd.s32 8, %v2686_v1  ;;  %2092 = vmatprep.subr.msk.bf16.mxu1 %vm2943_vm7, %v5568_v17 }
  0x2e   :  { %v5993_v56 = vsel %vm2943_vm7, 4294967295, %v5992_v56  ;;  %vm2953_vm0 = vmpackc.low %vm135_vm15, %vm133_vm6  ;;  %v5995_v58 = vmov 0  ;;  %vm194_vm13 = vcmp.eq.s32.totalorder %v58_v52, %v2696_v11  ;;  %v56_v59 = vadd.s32 256, %v2686_v1 }
  0x2f   :  { %5994 = vst [vmem:[#allocation29_spill] sm:$0xff] %v5993_v56  ;;  %v5996_v58 = vsel %vm2953_vm0, 4294967295, %v5995_v58  ;;  %v57_v60 = vadd.s32 264, %v2686_v1  ;;  %2030 = vmatpush1.bf16.msk.msra.mxu0 %vm2953_vm0, %v5568_v17  ;;  %vm2964_vm14 = vmpackc.low %vm199_vm12, %vm197_vm5  ;;  %v5998_v61 = vmov 0  ;;  %vm131_vm15 = vcmp.eq.s32.totalorder %v27_v50, %v2692_v8 }
  0x30   :  { %5997 = vst [vmem:[#allocation30_spill] sm:$0xff] %v5996_v58  ;;  %v5999_v61 = vsel %vm2964_vm14, 4294967295, %v5998_v61  ;;  %v54_v62 = vadd.s32 240, %v2686_v1  ;;  %2094 = vmatpush1.bf16.msk.msra.mxu1 %vm2964_vm14, %v5568_v17  ;;  %vm2976_vm1 = vmpackc.low %vm132_vm4, %vm130_vm11  ;;  %v6001_v63 = vmov 0  ;;  %v55_v0 = vadd.s32 248, %v2686_v1 }
  0x31   :  { %6000 = vst [vmem:[#allocation31_spill] sm:$0xff] %v5999_v61  ;;  %v6002_v63 = vsel %vm2976_vm1, 4294967295, %v6001_v63  ;;  %2032 = vmatprep.subr.msk.bf16.mxu0 %vm2976_vm1, %v5568_v17  ;;  %vm6004_vm4 = vcmp.eq.s32.totalorder %v59_v53, %v2696_v11  ;;  %v6005_v2 = vmov 0  ;;  %v86_v3 = vadd.s32 496, %v2686_v1 }
  0x32   :  { %6003 = vst [vmem:[#allocation32_spill] sm:$0xff] %v6002_v63  ;;  %vm2992_vm11 = vmpackc.low %vm6004_vm4, %vm194_vm13  ;;  %v87_v4 = vadd.s32 504, %v2686_v1  ;;  %vm6008_vm6 = vcmp.eq.s32.totalorder %v26_v49, %v2692_v8  ;;  %v6009_v5 = vmov 0  ;;  %v3016_v6 = vadd.s32 224, %v2686_v1 }
  0x33   :  { %v6006_v2 = vsel %vm2992_vm11, 4294967295, %v6005_v2  ;;  %2096 = vmatprep.subr.msk.bf16.mxu1 %vm2992_vm11, %v5568_v17  ;;  %vm3008_vm13 = vmpackc.low %vm131_vm15, %vm6008_vm6  ;;  %vm6011_vm11 = vcmp.eq.s32.totalorder %v58_v52, %v2692_v8  ;;  %vm6012_vm6 = vcmp.eq.s32.totalorder %v59_v53, %v2692_v8  ;;  %v6013_v7 = vmov 0 }
  0x34   :  { %6007 = vst [vmem:[#allocation33_spill] sm:$0xff] %v6006_v2  ;;  %v6010_v5 = vsel %vm3008_vm13, 4294967295, %v6009_v5  ;;  %2034 = vmatpush1.bf16.msk.msra.mxu0 %vm3008_vm13, %v5568_v17  ;;  %vm3025_vm15 = vmpackc.low %vm6012_vm6, %vm6011_vm11  ;;  %v53_v9 = vadd.s32 232, %v2686_v1  ;;  %vm6016_vm14 = vcmp.eq.s32.totalorder %v2686_v1, %v2696_v11  ;;  %vm6017_vm11 = vcmp.eq.s32.totalorder %v25_v57, %v2696_v11  ;;  %v805_v2 = vld [vmem:[#allocation2 + $0x40] sm:$0xff] }
  0x35   :  { %v6014_v7 = vsel %vm3025_vm15, 4294967295, %v6013_v7  ;;  %2098 = vmatpush1.bf16.msk.msra.mxu1 %vm3025_vm15, %v5568_v17  ;;  %vm3041_vm6 = vmpackc.low %vm6017_vm11, %vm6016_vm14  ;;  %v6018_v10 = vmov 0  ;;  %v3048_v12 = vadd.s32 480, %v2686_v1  ;;  %v85_v13 = vadd.s32 488, %v2686_v1 }
  0x36   :  { %6015 = vst [vmem:[#allocation34_spill] sm:$0xff] %v6014_v7  ;;  %v6019_v10 = vsel %vm3041_vm6, 4294967295, %v6018_v10  ;;  %2036 = vmatprep.subr.msk.bf16.mxu0 %vm3041_vm6, %v5568_v17  ;;  %vm6020_vm5 = vcmp.eq.s32.totalorder %v56_v59, %v2696_v11  ;;  %vm6021_vm14 = vcmp.eq.s32.totalorder %v57_v60, %v2696_v11  ;;  %v6022_v16 = vmov 0  ;;  %v799_v7 = vld [vmem:[#allocation2 + $0x10] sm:$0xff] }
  0x37   :  { %vm3058_vm11 = vmpackc.low %vm6021_vm14, %vm6020_vm5  ;;  %v3066_v20 = vadd.s32 208, %v2686_v1  ;;  %vm6025_vm7 = vcmp.eq.s32.totalorder %v2686_v1, %v2692_v8  ;;  %vm6026_vm5 = vcmp.eq.s32.totalorder %v25_v57, %v2692_v8  ;;  %v6027_v21 = vmov 0 }
  0x38   :  { %v6023_v16 = vsel %vm3058_vm11, 4294967295, %v6022_v16  ;;  %2100 = vmatprep.subr.msk.bf16.mxu1 %vm3058_vm11, %v5568_v17  ;;  %vm3076_vm14 = vmpackc.low %vm6026_vm5, %vm6025_vm7  ;;  %v3085_v22 = vadd.s32 216, %v2686_v1  ;;  %vm6029_vm11 = vcmp.eq.s32.totalorder %v56_v59, %v2692_v8  ;;  %vm6030_vm7 = vcmp.eq.s32.totalorder %v57_v60, %v2692_v8 }
  0x39   :  { %6024 = vst [vmem:[#allocation35_spill] sm:$0xff] %v6023_v16  ;;  %v6028_v21 = vsel %vm3076_vm14, 4294967295, %v6027_v21  ;;  %2038 = vmatpush1.bf16.msk.msra.mxu0 %vm3076_vm14, %v5568_v17  ;;  %vm3094_vm5 = vmpackc.low %vm6030_vm7, %vm6029_vm11  ;;  %v6031_v25 = vmov 0  ;;  %v3102_v26 = vadd.s32 464, %v2686_v1  ;;  %v3105_v28 = vadd.s32 472, %v2686_v1 }
  0x3a   :  { %v6032_v25 = vsel %vm3094_vm5, 4294967295, %v6031_v25  ;;  %2102 = vmatpush1.bf16.msk.msra.mxu1 %vm3094_vm5, %v5568_v17  ;;  %vm6034_vm11 = vcmp.eq.s32.totalorder %v54_v62, %v2696_v11  ;;  %vm6035_vm7 = vcmp.eq.s32.totalorder %v55_v0, %v2696_v11  ;;  %v6036_v30 = vmov 0 }
  0x3b   :  { %6033 = vst [vmem:[#allocation36_spill] sm:$0xff] %v6032_v25  ;;  %vm3114_vm12 = vmpackc.low %vm6035_vm7, %vm6034_vm11  ;;  %v3123_v33 = vadd.s32 192, %v2686_v1  ;;  %vm6038_vm5 = vcmp.eq.s32.totalorder %v86_v3, %v2696_v11  ;;  %vm6039_vm11 = vcmp.eq.s32.totalorder %v87_v4, %v2696_v11  ;;  %v6040_v34 = vmov 0 }
  0x3c   :  { %v6037_v30 = vsel %vm3114_vm12, 4294967295, %v6036_v30  ;;  %2040 = vmatprep.subr.msk.bf16.mxu0 %vm3114_vm12, %v5568_v17  ;;  %vm3132_vm7 = vmpackc.low %vm6039_vm11, %vm6038_vm5  ;;  %v3142_v36 = vadd.s32 200, %v2686_v1  ;;  %vm6043_vm5 = vcmp.eq.s32.totalorder %v54_v62, %v2692_v8  ;;  %vm6044_vm11 = vcmp.eq.s32.totalorder %v55_v0, %v2692_v8 }
  0x3d   :  { %v6041_v34 = vsel %vm3132_vm7, 4294967295, %v6040_v34  ;;  %2104 = vmatprep.subr.msk.bf16.mxu1 %vm3132_vm7, %v5568_v17  ;;  %vm3151_vm12 = vmpackc.low %vm6044_vm11, %vm6043_vm5  ;;  %v6045_v37 = vmov 0  ;;  %v3162_v41 = vadd.s32 448, %v2686_v1  ;;  %vm6047_vm5 = vcmp.eq.s32.totalorder %v86_v3, %v2692_v8  ;;  %v798_v3 = vld [vmem:[#allocation2 + $0x8] sm:$0xff] }
  0x3e   :  { %6042 = vst [vmem:[#allocation37_spill] sm:$0xff] %v6041_v34  ;;  %v6046_v37 = vsel %vm3151_vm12, 4294967295, %v6045_v37  ;;  %2042 = vmatpush2.bf16.msk.msra.mxu0 %vm3151_vm12, %v5568_v17  ;;  %vm6048_vm11 = vcmp.eq.s32.totalorder %v87_v4, %v2692_v8  ;;  %v6049_v42 = vmov 0  ;;  %v3180_v44 = vadd.s32 456, %v2686_v1  ;;  %v804_v4 = vld [vmem:[#allocation2 + $0x38] sm:$0xff]  ;;  %v803_v34 = vld [vmem:[#allocation2 + $0x30] sm:$0xff] }
  0x3f   :  { %vm3171_vm7 = vmpackc.low %vm6048_vm11, %vm6047_vm5  ;;  %v3183_v45 = vadd.s32 176, %v2686_v1  ;;  %vm6052_vm5 = vcmp.eq.s32.totalorder %v3016_v6, %v2696_v11  ;;  %vm6053_vm11 = vcmp.eq.s32.totalorder %v53_v9, %v2696_v11  ;;  %v6054_v49 = vmov 0 }
  0x40   :  { %v6050_v42 = vsel %vm3171_vm7, 4294967295, %v6049_v42  ;;  %2106 = vmatpush2.bf16.msk.msra.mxu1 %vm3171_vm7, %v5568_v17  ;;  %vm3193_vm14 = vmpackc.low %vm6053_vm11, %vm6052_vm5  ;;  %v3204_v50 = vadd.s32 184, %v2686_v1  ;;  %vm6056_vm5 = vcmp.eq.s32.totalorder %v3048_v12, %v2696_v11  ;;  %vm6057_vm11 = vcmp.eq.s32.totalorder %v85_v13, %v2696_v11 }
  0x41   :  { %6051 = vst [vmem:[#allocation38_spill] sm:$0xff] %v6050_v42  ;;  %v6055_v49 = vsel %vm3193_vm14, 4294967295, %v6054_v49  ;;  %2044 = vmatprep.subr.msk.bf16.mxu0 %vm3193_vm14, %v5568_v17  ;;  %vm3214_vm7 = vmpackc.low %vm6057_vm11, %vm6056_vm5  ;;  %v6058_v52 = vmov 0  ;;  %v3223_v53 = vadd.s32 432, %v2686_v1  ;;  %v3226_v57 = vadd.s32 440, %v2686_v1 }
  0x42   :  { %v6059_v52 = vsel %vm3214_vm7, 4294967295, %v6058_v52  ;;  %2108 = vmatprep.subr.msk.bf16.mxu1 %vm3214_vm7, %v5568_v17  ;;  %vm6061_vm5 = vcmp.eq.s32.totalorder %v3016_v6, %v2692_v8  ;;  %vm6062_vm11 = vcmp.eq.s32.totalorder %v53_v9, %v2692_v8  ;;  %v6063_v59 = vmov 0 }
  0x43   :  { %6060 = vst [vmem:[#allocation39_spill] sm:$0xff] %v6059_v52  ;;  %vm3236_vm15 = vmpackc.low %vm6062_vm11, %vm6061_vm5  ;;  %v3245_v60 = vadd.s32 160, %v2686_v1  ;;  %v3248_v62 = vadd.s32 168, %v2686_v1  ;;  %vm6065_vm5 = vcmp.eq.s32.totalorder %v3048_v12, %v2692_v8  ;;  %vm6066_vm11 = vcmp.eq.s32.totalorder %v85_v13, %v2692_v8  ;;  %v800_v13 = vld [vmem:[#allocation2 + $0x18] sm:$0xff] }
  0x44   :  { %v6064_v59 = vsel %vm3236_vm15, 4294967295, %v6063_v59  ;;  %2046 = vmatpush2.bf16.msk.msra.mxu0 %vm3236_vm15, %v5568_v17  ;;  %vm3258_vm7 = vmpackc.low %vm6066_vm11, %vm6065_vm5  ;;  %v6067_v0 = vmov 0  ;;  %vm6070_vm5 = vcmp.eq.s32.totalorder %v3066_v20, %v2696_v11  ;;  %vm6071_vm11 = vcmp.eq.s32.totalorder %v3085_v22, %v2696_v11 }
  0x45   :  { %v6068_v0 = vsel %vm3258_vm7, 4294967295, %v6067_v0  ;;  %2110 = vmatpush2.bf16.msk.msra.mxu1 %vm3258_vm7, %v5568_v17  ;;  %vm3279_vm4 = vmpackc.low %vm6071_vm11, %vm6070_vm5  ;;  %v6072_v6 = vmov 0  ;;  %v3288_v9 = vadd.s32 416, %v2686_v1  ;;  %v3291_v12 = vadd.s32 424, %v2686_v1  ;;  %v806_v17 = vld [vmem:[#allocation2 + $0x48] sm:$0xff] }
  0x46   :  { %6069 = vst [vmem:[#allocation40_spill] sm:$0xff] %v6068_v0  ;;  %v6073_v6 = vsel %vm3279_vm4, 4294967295, %v6072_v6  ;;  %v6074_v0 = vmov 1.0|1.0   ;;  %vm6075_vm5 = vcmp.eq.s32.totalorder %v3102_v26, %v2696_v11  ;;  %vm6076_vm11 = vcmp.eq.s32.totalorder %v3105_v28, %v2696_v11 }
  0x47   :  { %2048 = vmatprep.subr.msk.bf16.mxu0 %vm3279_vm4, %v6074_v0  ;;  %vm3302_vm14 = vmpackc.low %vm6076_vm11, %vm6075_vm5  ;;  %v6077_v52 = vmov 0  ;;  %vm6080_vm5 = vcmp.eq.s32.totalorder %v3066_v20, %v2692_v8  ;;  %vm6081_vm11 = vcmp.eq.s32.totalorder %v3085_v22, %v2692_v8  ;;  %v6082_v42 = vmov 0  ;;  %v797_v20 = vld [vmem:[#allocation2] sm:$0xff] }
  0x48   :  { %v6078_v52 = vsel %vm3302_vm14, 4294967295, %v6077_v52  ;;  %2112 = vmatprep.subr.msk.bf16.mxu1 %vm3302_vm14, %v6074_v0  ;;  %vm3323_vm15 = vmpackc.low %vm6081_vm11, %vm6080_vm5  ;;  %vm6085_vm5 = vcmp.eq.s32.totalorder %v3102_v26, %v2692_v8  ;;  %vm6086_vm11 = vcmp.eq.s32.totalorder %v3105_v28, %v2692_v8  ;;  %v6087_v22 = vmov 0 }
  0x49   :  { %6079 = vst [vmem:[#allocation41_spill] sm:$0xff] %v6078_v52  ;;  %v6083_v42 = vsel %vm3323_vm15, 4294967295, %v6082_v42  ;;  %v3334_v52 = vadd.s32 144, %v2686_v1  ;;  %2050 = vmatpush2.bf16.msk.msra.mxu0 %vm3323_vm15, %v6074_v0  ;;  %vm3345_vm7 = vmpackc.low %vm6086_vm11, %vm6085_vm5  ;;  %v3353_v25 = vpack.c.bf16 %v804_v4, %v798_v3  ;;  %v3355_v16 = vpack.c.bf16 %v806_v17, %v800_v13 }
  0x4a   :  { %6084 = vst [vmem:[#allocation42_spill] sm:$0xff] %v6083_v42  ;;  %v6088_v22 = vsel %vm3345_vm7, 4294967295, %v6087_v22  ;;  %2114 = vmatpush2.bf16.msk.msra.mxu1 %vm3345_vm7, %v6074_v0  ;;  %vm6091_vm5 = vcmp.eq.s32.totalorder %v3123_v33, %v2696_v11  ;;  %vm6092_vm11 = vcmp.eq.s32.totalorder %v3142_v36, %v2696_v11  ;;  %v6093_v26 = vmov 0 }
  0x4b   :  { %6089 = vst [vmem:[#allocation43_spill] sm:$0xff] %v6088_v22  ;;  %6090 = vst [vmem:[#allocation44_spill] sm:$0xff] %v3355_v16  ;;  %v3377_v28 = vadd.s32 152, %v2686_v1  ;;  %v6098_v22 = vmov 0  ;;  %v870_v61 = vunpack.c.l.bf16 %v3353_v25  ;;  %v876_v56 = vunpack.c.h.bf16 %v3353_v25 }
  0x4c   :  { %vm3366_vm12 = vmpackc.low %vm6092_vm11, %vm6091_vm5  ;;  %vm6096_vm5 = vcmp.eq.s32.totalorder %v3162_v41, %v2696_v11  ;;  %vm6097_vm11 = vcmp.eq.s32.totalorder %v3180_v44, %v2696_v11  ;;  %v872_v54 = vunpack.c.l.bf16 %v3355_v16  ;;  %v878_v48 = vunpack.c.h.bf16 %v3355_v16 }
  0x4d   :  { %v6094_v26 = vsel %vm3366_vm12, 4294967295, %v6093_v26  ;;  %2052 = vmatprep.subr.msk.bf16.mxu0 %vm3366_vm12, %v6074_v0  ;;  %vm3388_vm4 = vmpackc.low %vm6097_vm11, %vm6096_vm5  ;;  %vm6101_vm15 = vcmp.eq.s32.totalorder %v3123_v33, %v2692_v8  ;;  %vm6102_vm5 = vcmp.eq.s32.totalorder %v3142_v36, %v2692_v8  ;;  %v6103_v46 = vmov 0 }
  0x4e   :  { %6095 = vst [vmem:[#allocation45_spill] sm:$0xff] %v6094_v26  ;;  %v6099_v22 = vsel %vm3388_vm4, 4294967295, %v6098_v22  ;;  %2116 = vmatprep.subr.msk.bf16.mxu1 %vm3388_vm4, %v6074_v0  ;;  %vm3405_vm11 = vmpackc.low %vm6102_vm5, %vm6101_vm15  ;;  %v3413_v16 = vpack.c.bf16 %v803_v34, %v797_v20  ;;  %vm6108_vm15 = vcmp.eq.s32.totalorder %v3162_v41, %v2692_v8  ;;  %vm6109_vm5 = vcmp.eq.s32.totalorder %v3180_v44, %v2692_v8 }
  0x4f   :  { %6100 = vst [vmem:[#allocation46_spill] sm:$0xff] %v6099_v22  ;;  %v6104_v46 = vsel %vm3405_vm11, 4294967295, %v6103_v46  ;;  %v3415_v22 = vpack.c.bf16 %v805_v2, %v799_v7  ;;  %2054 = vmatpush2.bf16.msk.msra.mxu0 %vm3405_vm11, %v6074_v0  ;;  %vm3426_vm4 = vmpackc.low %vm6109_vm5, %vm6108_vm15  ;;  %v6110_v33 = vmov 0  ;;  %v3430_v36 = vsub.f32 %v798_v3, %v870_v61 }
  0x50   :  { %6105 = vst [vmem:[#allocation47_spill] sm:$0xff] %v6104_v46  ;;  %6106 = vst [vmem:[#allocation48_spill] sm:$0xff] %v3413_v16  ;;  %v6111_v33 = vsel %vm3426_vm4, 4294967295, %v6110_v33  ;;  %v3432_v40 = vsub.f32 %v804_v4, %v876_v56  ;;  %v3434_v38 = vsub.f32 %v800_v13, %v872_v54  ;;  %v3436_v32 = vsub.f32 %v806_v17, %v878_v48 }
  0x51   :  { %6107 = vst [vmem:[#allocation49_spill] sm:$0xff] %v3415_v22  ;;  %6112 = vst [vmem:[#allocation50_spill] sm:$0xff] %v6111_v33  ;;  %2118 = vmatpush2.bf16.msk.msra.mxu1 %vm3426_vm4, %v6074_v0  ;;  %vm6117_vm7 = vcmp.eq.s32.totalorder %v3183_v45, %v2696_v11  ;;  %vm6118_vm15 = vcmp.eq.s32.totalorder %v3204_v50, %v2696_v11  ;;  %v6119_v41 = vmov 0  ;;  %v869_v56 = vunpack.c.l.bf16 %v3413_v16 }
  0x52   :  { %6113 = vst [vmem:[#allocation51_spill] sm:$0xff] %v3430_v36  ;;  %6114 = vst [vmem:[#allocation52_spill] sm:$0xff] %v3432_v40  ;;  %v875_v54 = vunpack.c.h.bf16 %v3413_v16  ;;  %v871_v17 = vunpack.c.l.bf16 %v3415_v22  ;;  %v877_v48 = vunpack.c.h.bf16 %v3415_v22  ;;  %vm6122_vm14 = vcmp.eq.s32.totalorder %v3223_v53, %v2696_v11 }
  0x53   :  { %6115 = vst [vmem:[#allocation53_spill] sm:$0xff] %v3434_v38  ;;  %6116 = vst [vmem:[#allocation54_spill] sm:$0xff] %v3436_v32  ;;  %v6124_v61 = vmov 0  ;;  %v74_v44 = vadd.s32 400, %v2686_v1  ;;  %v75_v3 = vadd.s32 408, %v2686_v1  ;;  %v3472_v4 = vpack.c.bf16 %v3432_v40, %v3430_v36 }
  0x54   :  { %vm3447_vm5 = vmpackc.low %vm6118_vm15, %vm6117_vm7  ;;  %vm6123_vm7 = vcmp.eq.s32.totalorder %v3226_v57, %v2696_v11  ;;  %v3476_v13 = vpack.c.bf16 %v3436_v32, %v3434_v38  ;;  %v6131_v22 = vmov 0  ;;  %v917_v40 = vsub.f32 %v797_v20, %v869_v56 }
  0x55   :  { %v6120_v41 = vsel %vm3447_vm5, 4294967295, %v6119_v41  ;;  %2056 = vmatprep.subr.msk.bf16.mxu0 %vm3447_vm5, %v6074_v0  ;;  %vm3464_vm15 = vmpackc.low %vm6123_vm7, %vm6122_vm14  ;;  %6127 = vst [vmem:[#allocation57_spill] sm:$0xff] %v3472_v4  ;;  %vm6129_vm14 = vcmp.eq.s32.totalorder %v3183_v45, %v2692_v8  ;;  %vm6130_vm7 = vcmp.eq.s32.totalorder %v3204_v50, %v2692_v8  ;;  %v923_v36 = vsub.f32 %v803_v34, %v875_v54 }
  0x56   :  { %6121 = vst [vmem:[#allocation55_spill] sm:$0xff] %v6120_v41  ;;  %v6125_v61 = vsel %vm3464_vm15, 4294967295, %v6124_v61  ;;  %6128 = vst [vmem:[#allocation58_spill] sm:$0xff] %v3476_v13  ;;  %2120 = vmatprep.subr.msk.bf16.mxu1 %vm3464_vm15, %v6074_v0  ;;  %v919_v33 = vsub.f32 %v799_v7, %v871_v17  ;;  %v925_v29 = vsub.f32 %v805_v2, %v877_v48  ;;  %v6136_v45 = vmov 0  ;;  %1141 = vmatprep.mubr.bf16.mxu0 %v3472_v4 }
  0x57   :  { %6126 = vst [vmem:[#allocation56_spill] sm:$0xff] %v6125_v61  ;;  %vm3487_vm4 = vmpackc.low %vm6130_vm7, %vm6129_vm14  ;;  %vm6134_vm15 = vcmp.eq.s32.totalorder %v3223_v53, %v2692_v8  ;;  %vm6135_vm5 = vcmp.eq.s32.totalorder %v3226_v57, %v2692_v8  ;;  %v3509_v2 = vadd.s32 128, %v2686_v1  ;;  %v3512_v7 = vadd.s32 136, %v2686_v1  ;;  %1214 = vmatprep.mubr.bf16.mxu1 %v3476_v13 }
  0x58   :  { %v6132_v22 = vsel %vm3487_vm4, 4294967295, %v6131_v22  ;;  %2058 = vmatpush2.bf16.msk.msra.mxu0 %vm3487_vm4, %v6074_v0  ;;  %vm3500_vm11 = vmpackc.low %vm6135_vm5, %vm6134_vm15  ;;  %vm6139_vm5 = vcmp.eq.s32.totalorder %v3245_v60, %v2696_v11  ;;  %vm6140_vm15 = vcmp.eq.s32.totalorder %v3248_v62, %v2696_v11  ;;  %v6141_v34 = vmov 0 }
  0x59   :  { %6133 = vst [vmem:[#allocation59_spill] sm:$0xff] %v6132_v22  ;;  %v6137_v45 = vsel %vm3500_vm11, 4294967295, %v6136_v45  ;;  %2122 = vmatpush2.bf16.msk.msra.mxu1 %vm3500_vm11, %v6074_v0  ;;  %vm3524_vm14 = vmpackc.low %vm6140_vm15, %vm6139_vm5  ;;  %v3531_v50 = vpack.c.bf16 %v923_v36, %v917_v40  ;;  %v3533_v53 = vpack.c.bf16 %v925_v29, %v919_v33  ;;  %vm6144_vm11 = vcmp.eq.s32.totalorder %v3288_v9, %v2696_v11 }
  0x5a   :  { %6138 = vst [vmem:[#allocation60_spill] sm:$0xff] %v6137_v45  ;;  %v6142_v34 = vsel %vm3524_vm14, 4294967295, %v6141_v34  ;;  %2060 = vmatprep.subr.msk.bf16.mxu0 %vm3524_vm14, %v6074_v0  ;;  %vm6145_vm5 = vcmp.eq.s32.totalorder %v3291_v12, %v2696_v11  ;;  %v6146_v57 = vmov 0  ;;  %v72_v20 = vadd.s32 384, %v2686_v1 }
  0x5b   :  { %6143 = vst [vmem:[#allocation61_spill] sm:$0xff] %v6142_v34  ;;  %vm3544_vm15 = vmpackc.low %vm6145_vm5, %vm6144_vm11  ;;  %v73_v56 = vadd.s32 392, %v2686_v1  ;;  %vm6149_vm14 = vcmp.eq.s32.totalorder %v3245_v60, %v2692_v8  ;;  %vm6150_vm11 = vcmp.eq.s32.totalorder %v3248_v62, %v2692_v8  ;;  %v6151_v54 = vmov 0 }
  0x5c   :  { %v6147_v57 = vsel %vm3544_vm15, 4294967295, %v6146_v57  ;;  %2124 = vmatprep.subr.msk.bf16.mxu1 %vm3544_vm15, %v6074_v0  ;;  %vm3561_vm5 = vmpackc.low %vm6150_vm11, %vm6149_vm14  ;;  %v989_v17 = vunpack.c.l.bf16 %v3531_v50  ;;  %v995_v48 = vunpack.c.h.bf16 %v3531_v50  ;;  %v991_v32 = vunpack.c.l.bf16 %v3533_v53 }
  0x5d   :  { %6148 = vst [vmem:[#allocation62_spill] sm:$0xff] %v6147_v57  ;;  %v6152_v54 = vsel %vm3561_vm5, 4294967295, %v6151_v54  ;;  %v997_v38 = vunpack.c.h.bf16 %v3533_v53  ;;  %2062 = vmatpush2.bf16.msk.msra.mxu0 %vm3561_vm5, %v6074_v0  ;;  %vm6154_vm4 = vcmp.eq.s32.totalorder %v3288_v9, %v2692_v8  ;;  %vm6155_vm14 = vcmp.eq.s32.totalorder %v3291_v12, %v2692_v8 }
  0x5e   :  { %6153 = vst [vmem:[#allocation63_spill] sm:$0xff] %v6152_v54  ;;  %vm3578_vm11 = vmpackc.low %vm6155_vm14, %vm6154_vm4  ;;  %v6156_v60 = vmov 0  ;;  %vm6159_vm4 = vcmp.eq.s32.totalorder %v3334_v52, %v2696_v11  ;;  %vm6160_vm14 = vcmp.eq.s32.totalorder %v3377_v28, %v2696_v11  ;;  %v6161_v62 = vmov 0 }
  0x5f   :  { %v6157_v60 = vsel %vm3578_vm11, 4294967295, %v6156_v60  ;;  %2126 = vmatpush2.bf16.msk.msra.mxu1 %vm3578_vm11, %v6074_v0  ;;  %vm3597_vm6 = vmpackc.low %vm6160_vm14, %vm6159_vm4  ;;  %v3601_v9 = vsub.f32 %v917_v40, %v989_v17  ;;  %v3603_v12 = vsub.f32 %v923_v36, %v995_v48  ;;  %v3605_v13 = vsub.f32 %v919_v33, %v991_v32  ;;  %v3662_v48 = vld [vmem:[#allocation2 + $0x98] sm:$0xff] }
  0x60   :  { %6158 = vst [vmem:[#allocation64_spill] sm:$0xff] %v6157_v60  ;;  %v6162_v62 = vsel %vm3597_vm6, 4294967295, %v6161_v62  ;;  %v3607_v4 = vsub.f32 %v925_v29, %v997_v38  ;;  %2064 = vmatprep.subr.msk.bf16.mxu0 %vm3597_vm6, %v6074_v0  ;;  %vm6168_vm5 = vcmp.eq.s32.totalorder %v74_v44, %v2696_v11  ;;  %vm6169_vm12 = vcmp.eq.s32.totalorder %v75_v3, %v2696_v11  ;;  %v812_v40 = vld [vmem:[#allocation2 + $0x78] sm:$0xff] }
  0x61   :  { %6163 = vst [vmem:[#allocation65_spill] sm:$0xff] %v6162_v62  ;;  %6164 = vst [vmem:[#allocation66_spill] sm:$0xff] %v3601_v9  ;;  %v6170_v60 = vmov 0  ;;  %v102_v32 = vadd.s32 624, %v2686_v1  ;;  %v103_v29 = vadd.s32 632, %v2686_v1  ;;  %vm6173_vm7 = vcmp.eq.s32.totalorder %v3334_v52, %v2692_v8 }
  0x62   :  { %6165 = vst [vmem:[#allocation67_spill] sm:$0xff] %v3603_v12  ;;  %6166 = vst [vmem:[#allocation68_spill] sm:$0xff] %v3605_v13  ;;  %v6175_v38 = vmov 0  ;;  %v3642_v36 = vadd.s32 608, %v2686_v1  ;;  %v3645_v17 = vadd.s32 616, %v2686_v1  ;;  %v6180_v52 = vmov 0 }
  0x63   :  { %6167 = vst [vmem:[#allocation69_spill] sm:$0xff] %v3607_v4  ;;  %vm3616_vm4 = vmpackc.low %vm6169_vm12, %vm6168_vm5  ;;  %vm6174_vm12 = vcmp.eq.s32.totalorder %v3377_v28, %v2692_v8  ;;  %v810_v28 = vld [vmem:[#allocation2 + $0x68] sm:$0xff]  ;;  %vm6183_vm11 = vcmp.eq.s32.totalorder %v3509_v2, %v2696_v11  ;;  %v3683_v33 = vadd.s32 600, %v2686_v1  ;;  %v6190_v4 = vmov 0 }
  0x64   :  { %v6171_v60 = vsel %vm3616_vm4, 4294967295, %v6170_v60  ;;  %2128 = vmatprep.subr.msk.bf16.mxu1 %vm3616_vm4, %v6074_v0  ;;  %vm3633_vm5 = vmpackc.low %vm6174_vm12, %vm6173_vm7  ;;  %vm6178_vm7 = vcmp.eq.s32.totalorder %v74_v44, %v2692_v8  ;;  %vm6179_vm12 = vcmp.eq.s32.totalorder %v75_v3, %v2692_v8  ;;  %v6185_v44 = vmov 0  ;;  %v818_v13 = vld [vmem:[#allocation2 + $0xa8] sm:$0xff] }
  0x65   :  { %6172 = vst [vmem:[#allocation70_spill] sm:$0xff] %v6171_v60  ;;  %v6176_v38 = vsel %vm3633_vm5, 4294967295, %v6175_v38  ;;  %2066 = vmatpush2.bf16.msk.msra.mxu0 %vm3633_vm5, %v6074_v0  ;;  %vm3654_vm15 = vmpackc.low %vm6179_vm12, %vm6178_vm7  ;;  %vm6184_vm7 = vcmp.eq.s32.totalorder %v3512_v7, %v2696_v11  ;;  %v3680_v3 = vadd.s32 592, %v2686_v1  ;;  %vm282_vm4 = vcmp.eq.s32.totalorder %v102_v32, %v2696_v11  ;;  %v815_v60 = vld [vmem:[#allocation2 + $0x90] sm:$0xff] }
  0x66   :  { %6177 = vst [vmem:[#allocation71_spill] sm:$0xff] %v6176_v38  ;;  %v6181_v52 = vsel %vm3654_vm15, 4294967295, %v6180_v52  ;;  %2130 = vmatpush2.bf16.msk.msra.mxu1 %vm3654_vm15, %v6074_v0  ;;  %vm3673_vm12 = vmpackc.low %vm6184_vm7, %vm6183_vm11  ;;  %vm6188_vm11 = vcmp.eq.s32.totalorder %v72_v20, %v2696_v11  ;;  %vm6189_vm7 = vcmp.eq.s32.totalorder %v73_v56, %v2696_v11  ;;  %v6195_v9 = vmov 0 }
  0x67   :  { %6182 = vst [vmem:[#allocation72_spill] sm:$0xff] %v6181_v52  ;;  %v6186_v44 = vsel %vm3673_vm12, 4294967295, %v6185_v44  ;;  %2068 = vmatprep.subr.msk.bf16.mxu0 %vm3673_vm12, %v6074_v0  ;;  %vm3692_vm15 = vmpackc.low %vm6189_vm7, %vm6188_vm11  ;;  %vm6193_vm12 = vcmp.eq.s32.totalorder %v3509_v2, %v2692_v8  ;;  %vm6194_vm11 = vcmp.eq.s32.totalorder %v3512_v7, %v2692_v8  ;;  %v3718_v12 = vadd.s32 576, %v2686_v1 }
  0x68   :  { %6187 = vst [vmem:[#allocation73_spill] sm:$0xff] %v6186_v44  ;;  %v6191_v4 = vsel %vm3692_vm15, 4294967295, %v6190_v4  ;;  %2132 = vmatprep.subr.msk.bf16.mxu1 %vm3692_vm15, %v6074_v0  ;;  %vm3709_vm7 = vmpackc.low %vm6194_vm11, %vm6193_vm12  ;;  %vm6198_vm12 = vcmp.eq.s32.totalorder %v72_v20, %v2692_v8  ;;  %vm6199_vm11 = vcmp.eq.s32.totalorder %v73_v56, %v2692_v8  ;;  %v6200_v2 = vmov 0 }
  0x69   :  { %6192 = vst [vmem:[#allocation74_spill] sm:$0xff] %v6191_v4  ;;  %v6196_v9 = vsel %vm3709_vm7, 4294967295, %v6195_v9  ;;  %v3721_v4 = vadd.s32 584, %v2686_v1  ;;  %2070 = vmatpush2.bf16.msk.msra.mxu0 %vm3709_vm7, %v6074_v0  ;;  %vm3730_vm5 = vmpackc.low %vm6199_vm11, %vm6198_vm12  ;;  %v3739_v7 = vpack.c.bf16 %v3662_v48, %v810_v28  ;;  %v3741_v52 = vpack.c.bf16 %v818_v13, %v812_v40 }
  0x6a   :  { %6197 = vst [vmem:[#allocation75_spill] sm:$0xff] %v6196_v9  ;;  %v6201_v2 = vsel %vm3730_vm5, 4294967295, %v6200_v2  ;;  %2134 = vmatpush2.bf16.msk.msra.mxu1 %vm3730_vm5, %v6074_v0  ;;  %vm6205_vm12 = vcmp.eq.s32.totalorder %v103_v29, %v2696_v11  ;;  %v6206_v20 = vmov 0  ;;  %v3761_v56 = vadd.s32 560, %v2686_v1 }
  0x6b   :  { %6202 = vst [vmem:[#allocation76_spill] sm:$0xff] %v6201_v2  ;;  %6203 = vst [vmem:[#allocation77_spill] sm:$0xff] %v3739_v7  ;;  %v809_v2 = vld [vmem:[#allocation2 + $0x60] sm:$0xff]  ;;  %2200 = vmatprep.subr.msk.bf16.mxu1 %vm2712_vm9, %v6074_v0  ;;  %v6211_v57 = vmov 0  ;;  %v3780_v45 = vadd.s32 568, %v2686_v1  ;;  %v3783_v61 = vadd.s32 544, %v2686_v1  ;;  %v882_v15 = vunpack.c.l.bf16 %v3739_v7 }
  0x6c   :  { %6204 = vst [vmem:[#allocation78_spill] sm:$0xff] %v3741_v52  ;;  %vm3750_vm11 = vmpackc.low %vm6205_vm12, %vm282_vm4  ;;  %vm6209_vm4 = vcmp.eq.s32.totalorder %v102_v32, %v2692_v8  ;;  %vm6210_vm12 = vcmp.eq.s32.totalorder %v103_v29, %v2692_v8  ;;  %1142 = vmatmul.mubr.bf16.vlgmr.msra.gmra.mxu0 %v3531_v50  ;;  %v6216_v32 = vmov 0  ;;  %v3804_v50 = vadd.s32 552, %v2686_v1 }
  0x6d   :  { %v6207_v20 = vsel %vm3750_vm11, 4294967295, %v6206_v20  ;;  %2136 = vmatprep.subr.msk.bf16.mxu0 %vm3750_vm11, %v6074_v0  ;;  %vm3773_vm6 = vmpackc.low %vm6210_vm12, %vm6209_vm4  ;;  %vm6214_vm4 = vcmp.eq.s32.totalorder %v3642_v36, %v2696_v11  ;;  %vm6215_vm12 = vcmp.eq.s32.totalorder %v3645_v17, %v2696_v11  ;;  %1215 = vmatmul.mubr.bf16.vlgmr.msra.gmra.mxu1 %v3533_v53  ;;  %v888_v29 = vunpack.c.h.bf16 %v3739_v7 }
  0x6e   :  { %6208 = vst [vmem:[#allocation79_spill] sm:$0xff] %v6207_v20  ;;  %v6212_v57 = vsel %vm3773_vm6, 4294967295, %v6211_v57  ;;  %vm3793_vm14 = vmpackc.low %vm6215_vm12, %vm6214_vm4  ;;  %2138 = vmatpush1.bf16.msk.msra.mxu0 %vm3773_vm6, %v6074_v0  ;;  %v3813_v16 = vsub.f32 %v810_v28, %v882_v15  ;;  %v884_v20 = vunpack.c.l.bf16 %v3741_v52  ;;  %2202 = vmatpush1.bf16.msk.msra.mxu1 %vm2708_vm8, %v6074_v0  ;;  %vm6220_vm12 = vcmp.eq.s32.totalorder %v3642_v36, %v2692_v8 }
  0x6f   :  { %6213 = vst [vmem:[#allocation80_spill] sm:$0xff] %v6212_v57  ;;  %v6217_v32 = vsel %vm3793_vm14, 4294967295, %v6216_v32  ;;  %2140 = vmatprep.subr.msk.bf16.mxu0 %vm3793_vm14, %v6074_v0  ;;  %vm6221_vm4 = vcmp.eq.s32.totalorder %v3645_v17, %v2692_v8  ;;  %v6222_v53 = vmov 0  ;;  %v890_v15 = vunpack.c.h.bf16 %v3741_v52  ;;  %2204 = vmatprep.subr.msk.bf16.mxu1 %vm2754_vm2, %v6074_v0 }
  0x70   :  { %6218 = vst [vmem:[#allocation81_spill] sm:$0xff] %v6217_v32  ;;  %6219 = vst [vmem:[#allocation82_spill] sm:$0xff] %v3813_v16  ;;  %v3835_v28 = vpack.c.bf16 %v815_v60, %v809_v2  ;;  %v3837_v14 = vpack.c.bf16 %v817_v19, %v811_v24  ;;  %vm6227_vm15 = vcmp.eq.s32.totalorder %v3680_v3, %v2696_v11  ;;  %v6229_v36 = vmov 0 }
  0x71   :  { %vm3828_vm5 = vmpackc.low %vm6221_vm4, %vm6220_vm12  ;;  %vm6228_vm4 = vcmp.eq.s32.totalorder %v3683_v33, %v2696_v11  ;;  %v3857_v17 = vsub.f32 %v3662_v48, %v888_v29  ;;  %v3859_v52 = vsub.f32 %v812_v40, %v884_v20  ;;  %v3861_v23 = vsub.f32 %v818_v13, %v890_v15  ;;  %v828_v48 = vld [vmem:[#allocation2 + $0xf8] sm:$0xff]  ;;  %v830_v29 = vld [vmem:[#allocation2 + $0x108] sm:$0xff] }
  0x72   :  { %v6223_v53 = vsel %vm3828_vm5, 4294967295, %v6222_v53  ;;  %6225 = vst [vmem:[#allocation84_spill] sm:$0xff] %v3835_v28  ;;  %6226 = vst [vmem:[#allocation85_spill] sm:$0xff] %v3837_v14  ;;  %v881_v7 = vunpack.c.l.bf16 %v3835_v28  ;;  %v887_v32 = vunpack.c.h.bf16 %v3835_v28  ;;  %v883_v57 = vunpack.c.l.bf16 %v3837_v14  ;;  %2142 = vmatpush1.bf16.msk.msra.mxu0 %vm3828_vm5, %v6074_v0  ;;  %v824_v20 = vld [vmem:[#allocation2 + $0xd8] sm:$0xff]  ;;  %2206 = vmatpush1.bf16.msk.msra.mxu1 %vm2780_vm10, %v6074_v0  ;;  %v827_v28 = vld [vmem:[#allocation2 + $0xf0] sm:$0xff] }
  0x73   :  { %6224 = vst [vmem:[#allocation83_spill] sm:$0xff] %v6223_v53  ;;  %vm3848_vm12 = vmpackc.low %vm6228_vm4, %vm6227_vm15  ;;  %v3875_v13 = vpack.c.bf16 %v3857_v17, %v3813_v16  ;;  %v889_v40 = vunpack.c.h.bf16 %v3837_v14  ;;  %vm6236_vm4 = vcmp.eq.s32.totalorder %v3680_v3, %v2692_v8  ;;  %vm6237_vm15 = vcmp.eq.s32.totalorder %v3683_v33, %v2692_v8 }
  0x74   :  { %v6230_v36 = vsel %vm3848_vm12, 4294967295, %v6229_v36  ;;  %6232 = vst [vmem:[#allocation87_spill] sm:$0xff] %v3857_v17  ;;  %6233 = vst [vmem:[#allocation88_spill] sm:$0xff] %v3859_v52  ;;  %2144 = vmatprep.subr.msk.bf16.mxu0 %vm3848_vm12, %v6074_v0  ;;  %v6238_v15 = vmov 0  ;;  %v3896_v17 = vpack.c.bf16 %v3861_v23, %v3859_v52  ;;  %v3898_v16 = vsub.f32 %v809_v2, %v881_v7 }
  0x75   :  { %6231 = vst [vmem:[#allocation86_spill] sm:$0xff] %v6230_v36  ;;  %6234 = vst [vmem:[#allocation89_spill] sm:$0xff] %v3861_v23  ;;  %v3900_v14 = vsub.f32 %v815_v60, %v887_v32  ;;  %vm6244_vm9 = vnez %v5954_v31  ;;  %v6247_v33 = vmov 0  ;;  %v3916_v3 = vadd.s32 528, %v2686_v1  ;;  %1151 = vmatprep.mubr.bf16.mxu0 %v3875_v13  ;;  %v823_v32 = vld [vmem:[#allocation2 + $0xd0] sm:$0xff]  ;;  %v829_v23 = vld [vmem:[#allocation2 + $0x100] sm:$0xff] }
  0x76   :  { %6235 = vst [vmem:[#allocation90_spill] sm:$0xff] %v3875_v13  ;;  %vm3890_vm8 = vmpackc.low %vm6237_vm15, %vm6236_vm4  ;;  %2208 = vmatprep.subr.msk.bf16.mxu1 %vm6244_vm9, %v6074_v0  ;;  %vm6245_vm15 = vcmp.eq.s32.totalorder %v3718_v12, %v2696_v11  ;;  %vm6246_vm4 = vcmp.eq.s32.totalorder %v3721_v4, %v2696_v11  ;;  %v3919_v60 = vadd.s32 536, %v2686_v1  ;;  %v3922_v2 = vsub.f32 %v811_v24, %v883_v57 }
  0x77   :  { %v6239_v15 = vsel %vm3890_vm8, 4294967295, %v6238_v15  ;;  %6241 = vst [vmem:[#allocation92_spill] sm:$0xff] %v3896_v17  ;;  %6242 = vst [vmem:[#allocation93_spill] sm:$0xff] %v3898_v16  ;;  %v3924_v7 = vsub.f32 %v817_v19, %v889_v40  ;;  %1224 = vmatprep.mubr.bf16.mxu1 %v3896_v17  ;;  %v3935_v52 = vpack.c.bf16 %v3900_v14, %v3898_v16  ;;  %2146 = vmatpush1.bf16.msk.msra.mxu0 %vm3890_vm8, %v6074_v0 }
  0x78   :  { %6240 = vst [vmem:[#allocation91_spill] sm:$0xff] %v6239_v15  ;;  %6243 = vst [vmem:[#allocation94_spill] sm:$0xff] %v3900_v14  ;;  %v3941_v19 = vadd.s32 512, %v2686_v1  ;;  %v3944_v24 = vadd.s32 520, %v2686_v1  ;;  %v3950_v40 = vpack.c.bf16 %v828_v48, %v822_v18  ;;  %vm6255_vm9 = vnez %v5960_v35 }
  0x79   :  { %vm3911_vm10 = vmpackc.low %vm6246_vm4, %vm6245_vm15  ;;  %6250 = vst [vmem:[#allocation96_spill] sm:$0xff] %v3922_v2  ;;  %v3948_v57 = vpack.c.bf16 %v3924_v7, %v3922_v2  ;;  %2210 = vmatpush1.bf16.msk.msra.mxu1 %vm6255_vm9, %v6074_v0  ;;  %vm6256_vm4 = vcmp.eq.s32.totalorder %v3718_v12, %v2692_v8  ;;  %vm6257_vm15 = vcmp.eq.s32.totalorder %v3721_v4, %v2692_v8  ;;  %v6258_v14 = vmov 0 }
  0x7a   :  { %v6248_v33 = vsel %vm3911_vm10, 4294967295, %v6247_v33  ;;  %6251 = vst [vmem:[#allocation97_spill] sm:$0xff] %v3924_v7  ;;  %6252 = vst [vmem:[#allocation98_spill] sm:$0xff] %v3935_v52  ;;  %2148 = vmatprep.subr.msk.bf16.mxu0 %vm3911_vm10, %v6074_v0  ;;  %v3969_v7 = vadd.s32 752, %v2686_v1  ;;  %v3971_v2 = vpack.c.bf16 %v830_v29, %v824_v20  ;;  %v3973_v16 = vpack.c.bf16 %v827_v28, %v821_v27 }
  0x7b   :  { %6249 = vst [vmem:[#allocation95_spill] sm:$0xff] %v6248_v33  ;;  %6253 = vst [vmem:[#allocation99_spill] sm:$0xff] %v3948_v57  ;;  %v3975_v17 = vpack.c.bf16 %v829_v23, %v823_v32  ;;  %vm6262_vm9 = vnez %v5966_v39  ;;  %vm6263_vm10 = vcmp.eq.s32.totalorder %v3761_v56, %v2696_v11  ;;  %v6265_v4 = vmov 0  ;;  %1152 = vmatmul.mubr.bf16.gmra.mxu0 %v3935_v52  ;;  %1225 = vmatmul.mubr.bf16.gmra.mxu1 %v3948_v57 }
  0x7c   :  { %6254 = vst [vmem:[#allocation100_spill] sm:$0xff] %v3950_v40  ;;  %vm3964_vm2 = vmpackc.low %vm6257_vm15, %vm6256_vm4  ;;  %2212 = vmatprep.subr.msk.bf16.mxu1 %vm6262_vm9, %v6074_v0  ;;  %vm6264_vm15 = vcmp.eq.s32.totalorder %v3780_v45, %v2696_v11  ;;  %v894_v12 = vunpack.c.l.bf16 %v3950_v40  ;;  %v900_v13 = vunpack.c.h.bf16 %v3950_v40  ;;  %v896_v39 = vunpack.c.l.bf16 %v3971_v2 }
  0x7d   :  { %v6259_v14 = vsel %vm3964_vm2, 4294967295, %v6258_v14  ;;  %6260 = vst [vmem:[#allocation101_spill] sm:$0xff] %v3971_v2  ;;  %6261 = vst [vmem:[#allocation102_spill] sm:$0xff] %v3975_v17  ;;  %v902_v35 = vunpack.c.h.bf16 %v3971_v2  ;;  %v893_v31 = vunpack.c.l.bf16 %v3973_v16  ;;  %v899_v33 = vunpack.c.h.bf16 %v3973_v16  ;;  %2150 = vmatpush1.bf16.msk.msra.mxu0 %vm3964_vm2, %v6074_v0 }
  0x7e   :  { %vm3986_vm4 = vmpackc.low %vm6264_vm15, %vm6263_vm10  ;;  %v4005_v15 = vsub.f32 %v822_v18, %v894_v12  ;;  %v4007_v52 = vsub.f32 %v828_v48, %v900_v13  ;;  %v895_v40 = vunpack.c.l.bf16 %v3975_v17  ;;  %v901_v57 = vunpack.c.h.bf16 %v3975_v17 }
  0x7f   :  { %v6266_v4 = vsel %vm3986_vm4, 4294967295, %v6265_v4  ;;  %vm6269_vm10 = vnez %v5972_v43  ;;  %2152 = vmatprep.subr.msk.bf16.mxu0 %vm3986_vm4, %v6074_v0  ;;  %vm6270_vm15 = vcmp.eq.s32.totalorder %v3761_v56, %v2692_v8  ;;  %vm6271_vm12 = vcmp.eq.s32.totalorder %v3780_v45, %v2692_v8  ;;  %v834_v43 = vld [vmem:[#allocation2 + $0x128] sm:$0xff]  ;;  %v840_v56 = vld [vmem:[#allocation2 + $0x158] sm:$0xff] }
  0x80   :  { %6267 = vst [vmem:[#allocation103_spill] sm:$0xff] %v4005_v15  ;;  %6268 = vst [vmem:[#allocation104_spill] sm:$0xff] %v4007_v52  ;;  %2214 = vmatpush1.bf16.msk.msra.mxu1 %vm6269_vm10, %v6074_v0  ;;  %v6272_v18 = vmov 0  ;;  %v4028_v13 = vadd.s32 760, %v2686_v1  ;;  %v4030_v48 = vsub.f32 %v824_v20, %v896_v39  ;;  %v4032_v12 = vsub.f32 %v830_v29, %v902_v35  ;;  %v836_v20 = vld [vmem:[#allocation2 + $0x138] sm:$0xff] }
  0x81   :  { %vm4023_vm8 = vmpackc.low %vm6271_vm12, %vm6270_vm15  ;;  %v4034_v17 = vsub.f32 %v821_v27, %v893_v31  ;;  %vm6277_vm10 = vnez %v5978_v47  ;;  %vm6278_vm12 = vcmp.eq.s32.totalorder %v3783_v61, %v2696_v11  ;;  %vm6279_vm15 = vcmp.eq.s32.totalorder %v3804_v50, %v2696_v11 }
  0x82   :  { %v6273_v18 = vsel %vm4023_vm8, 4294967295, %v6272_v18  ;;  %6274 = vst [vmem:[#allocation105_spill] sm:$0xff] %v4030_v48  ;;  %6275 = vst [vmem:[#allocation106_spill] sm:$0xff] %v4032_v12  ;;  %2216 = vmatprep.subr.msk.bf16.mxu1 %vm6277_vm10, %v6074_v0  ;;  %v6280_v45 = vmov 0  ;;  %v4051_v35 = vpack.c.bf16 %v4007_v52, %v4005_v15  ;;  %v4053_v27 = vsub.f32 %v827_v28, %v899_v33  ;;  %v842_v28 = vld [vmem:[#allocation2 + $0x168] sm:$0xff]  ;;  %v833_v33 = vld [vmem:[#allocation2 + $0x120] sm:$0xff]  ;;  %2154 = vmatpush1.bf16.msk.msra.mxu0 %vm4023_vm8, %v6074_v0 }
  0x83   :  { %6276 = vst [vmem:[#allocation107_spill] sm:$0xff] %v4034_v17  ;;  %vm4045_vm9 = vmpackc.low %vm6279_vm15, %vm6278_vm12  ;;  %v4055_v31 = vsub.f32 %v823_v32, %v895_v40  ;;  %v4057_v39 = vsub.f32 %v829_v23, %v901_v57  ;;  %v4067_v29 = vpack.c.bf16 %v4032_v12, %v4030_v48  ;;  %v839_v32 = vld [vmem:[#allocation2 + $0x150] sm:$0xff]  ;;  %v841_v12 = vld [vmem:[#allocation2 + $0x160] sm:$0xff]  ;;  %vm6289_vm15 = vnez %v5984_v51 }
  0x84   :  { %v6281_v45 = vsel %vm4045_vm9, 4294967295, %v6280_v45  ;;  %6282 = vst [vmem:[#allocation108_spill] sm:$0xff] %v4051_v35  ;;  %6283 = vst [vmem:[#allocation109_spill] sm:$0xff] %v4053_v27  ;;  %1161 = vmatprep.mubr.bf16.mxu0 %v4051_v35  ;;  %v4077_v23 = vpack.c.bf16 %v4053_v27, %v4034_v17  ;;  %v835_v40 = vld [vmem:[#allocation2 + $0x130] sm:$0xff]  ;;  %2218 = vmatpush1.bf16.msk.msra.mxu1 %vm6289_vm15, %v6074_v0  ;;  %vm6290_vm10 = vcmp.eq.s32.totalorder %v3783_v61, %v2692_v8  ;;  %v6292_v27 = vmov 0  ;;  %v6438_v53 = vld [vmem:[#allocation100_spill] sm:$0xff] }
  0x85   :  { %6284 = vst [vmem:[#allocation110_spill] sm:$0xff] %v4055_v31  ;;  %6285 = vst [vmem:[#allocation111_spill] sm:$0xff] %v4057_v39  ;;  %v4081_v57 = vpack.c.bf16 %v4057_v39, %v4055_v31  ;;  %2156 = vmatprep.subr.msk.bf16.mxu0 %vm4045_vm9, %v6074_v0  ;;  %vm6291_vm12 = vcmp.eq.s32.totalorder %v3804_v50, %v2692_v8  ;;  %vm253_vm4 = vcmp.eq.s32.totalorder %v3941_v19, %v2692_v8  ;;  %v6297_v61 = vmov 0 }
  0x86   :  { %6286 = vst [vmem:[#allocation112_spill] sm:$0xff] %v4067_v29  ;;  %6287 = vst [vmem:[#allocation113_spill] sm:$0xff] %v4077_v23  ;;  %2220 = vmatprep.subr.msk.bf16.mxu1 %vm2934_vm3, %v6074_v0  ;;  %vm6295_vm9 = vcmp.eq.s32.totalorder %v3916_v3, %v2696_v11  ;;  %1234 = vmatprep.mubr.bf16.mxu1 %v4067_v29  ;;  %v4119_v50 = vpack.c.bf16 %v840_v56, %v834_v43  ;;  %v4128_v17 = vadd.s32 736, %v2686_v1 }
  0x87   :  { %6288 = vst [vmem:[#allocation114_spill] sm:$0xff] %v4081_v57  ;;  %vm4095_vm8 = vmpackc.low %vm6291_vm12, %vm6290_vm10  ;;  %vm6296_vm10 = vcmp.eq.s32.totalorder %v3919_v60, %v2696_v11  ;;  %v4121_v39 = vpack.c.bf16 %v842_v28, %v836_v20  ;;  %v4123_v31 = vpack.c.bf16 %v839_v32, %v833_v33  ;;  %v4131_v48 = vadd.s32 744, %v2686_v1  ;;  %1162 = vmatmul.mubr.bf16.gmra.mxu0 %v4077_v23 }
  0x88   :  { %v6293_v27 = vsel %vm4095_vm8, 4294967295, %v6292_v27  ;;  %vm4114_vm12 = vmpackc.low %vm6296_vm10, %vm6295_vm9  ;;  %1235 = vmatmul.mubr.bf16.gmra.mxu1 %v4081_v57  ;;  %v4135_v52 = vpack.c.bf16 %v841_v12, %v835_v40  ;;  %2158 = vmatpush1.bf16.msk.msra.mxu0 %vm4095_vm8, %v6074_v0  ;;  %v906_v15 = vunpack.c.l.bf16 %v4119_v50  ;;  %v912_v29 = vunpack.c.h.bf16 %v4119_v50 }
  0x89   :  { %6294 = vst [vmem:[#allocation115_spill] sm:$0xff] %v6293_v27  ;;  %v6298_v61 = vsel %vm4114_vm12, 4294967295, %v6297_v61  ;;  %6300 = vst [vmem:[#allocation117_spill] sm:$0xff] %v4121_v39  ;;  %v908_v35 = vunpack.c.l.bf16 %v4121_v39  ;;  %v914_v55 = vunpack.c.h.bf16 %v4121_v39  ;;  %2222 = vmatpush1.bf16.msk.msra.mxu1 %vm2953_vm0, %v6074_v0  ;;  %2160 = vmatprep.subr.msk.bf16.mxu0 %vm4114_vm12, %v6074_v0  ;;  %vm6303_vm9 = vcmp.eq.s32.totalorder %v3916_v3, %v2692_v8 }
  0x8a   :  { %6299 = vst [vmem:[#allocation116_spill] sm:$0xff] %v6298_v61  ;;  %6301 = vst [vmem:[#allocation118_spill] sm:$0xff] %v4123_v31  ;;  %vm6304_vm10 = vcmp.eq.s32.totalorder %v3919_v60, %v2692_v8  ;;  %v6305_v57 = vmov 0  ;;  %v905_v23 = vunpack.c.l.bf16 %v4123_v31  ;;  %v911_v39 = vunpack.c.h.bf16 %v4123_v31  ;;  %2224 = vmatprep.subr.msk.bf16.mxu1 %vm2976_vm1, %v6074_v0 }
  0x8b   :  { %6302 = vst [vmem:[#allocation119_spill] sm:$0xff] %v4135_v52  ;;  %vm4156_vm2 = vmpackc.low %vm6304_vm10, %vm6303_vm9  ;;  %v907_v58 = vunpack.c.l.bf16 %v4135_v52  ;;  %v913_v51 = vunpack.c.h.bf16 %v4135_v52  ;;  %vm6307_vm15 = vcmp.eq.s32.totalorder %v3941_v19, %v2696_v11  ;;  %vm6308_vm9 = vcmp.eq.s32.totalorder %v3944_v24, %v2696_v11 }
  0x8c   :  { %v6306_v57 = vsel %vm4156_vm2, 4294967295, %v6305_v57  ;;  %vm4173_vm10 = vmpackc.low %vm6308_vm9, %vm6307_vm15  ;;  %v6309_v3 = vmov 0  ;;  %v4177_v60 = vsub.f32 %v834_v43, %v906_v15  ;;  %v4179_v47 = vsub.f32 %v840_v56, %v912_v29  ;;  %2162 = vmatpush1.bf16.msk.msra.mxu0 %vm4156_vm2, %v6074_v0  ;;  %v802_v15 = vld [vmem:[#allocation2 + $0x28] sm:$0xff]  ;;  %v831_v29 = vld [vmem:[#allocation2 + $0x110] sm:$0xff] }
  0x8d   :  { %v6310_v3 = vsel %vm4173_vm10, 4294967295, %v6309_v3  ;;  %v4181_v2 = vsub.f32 %v836_v20, %v908_v35  ;;  %v4183_v52 = vsub.f32 %v842_v28, %v914_v55  ;;  %v4185_v63 = vsub.f32 %v833_v33, %v905_v23  ;;  %v808_v35 = vld [vmem:[#allocation2 + $0x58] sm:$0xff]  ;;  %2226 = vmatpush1.bf16.msk.msra.mxu1 %vm3008_vm13, %v6074_v0  ;;  %2164 = vmatprep.subr.msk.bf16.mxu0 %vm4173_vm10, %v6074_v0  ;;  %v825_v20 = vld [vmem:[#allocation2 + $0xe0] sm:$0xff] }
  0x8e   :  { %6311 = vst [vmem:[#allocation120_spill] sm:$0xff] %v4177_v60  ;;  %6312 = vst [vmem:[#allocation121_spill] sm:$0xff] %v4179_v47  ;;  %v4187_v31 = vsub.f32 %v839_v32, %v911_v39  ;;  %v4189_v61 = vsub.f32 %v835_v40, %v907_v58  ;;  %v4191_v27 = vsub.f32 %v841_v12, %v913_v51  ;;  %v6322_v51 = vmov 0 }
  0x8f   :  { %6313 = vst [vmem:[#allocation122_spill] sm:$0xff] %v4181_v2  ;;  %6314 = vst [vmem:[#allocation123_spill] sm:$0xff] %v4183_v52  ;;  %v4198_v43 = vpack.c.bf16 %v4179_v47, %v4177_v60  ;;  %v4202_v55 = vpack.c.bf16 %v4183_v52, %v4181_v2  ;;  %vm6321_vm15 = vcmp.eq.s32.totalorder %v3944_v24, %v2692_v8  ;;  %vm6326_vm13 = vnez %v6019_v10  ;;  %v801_v2 = vld [vmem:[#allocation2 + $0x20] sm:$0xff] }
  0x90   :  { %6315 = vst [vmem:[#allocation124_spill] sm:$0xff] %v4185_v63  ;;  %6316 = vst [vmem:[#allocation125_spill] sm:$0xff] %v4187_v31  ;;  %v4222_v58 = vpack.c.bf16 %v4187_v31, %v4185_v63  ;;  %v4226_v12 = vpack.c.bf16 %v4191_v27, %v4189_v61  ;;  %2228 = vmatprep.subr.msk.bf16.mxu1 %vm6326_vm13, %v6074_v0  ;;  %vm6327_vm1 = vcmp.eq.s32.totalorder %v3969_v7, %v2696_v11  ;;  %v6329_v19 = vmov 0 }
  0x91   :  { %6317 = vst [vmem:[#allocation126_spill] sm:$0xff] %v4189_v61  ;;  %6318 = vst [vmem:[#allocation127_spill] sm:$0xff] %v4191_v27  ;;  %vm313_vm0 = vcmp.eq.s32.totalorder %v3969_v7, %v2692_v8  ;;  %vm315_vm3 = vcmp.eq.s32.totalorder %v4028_v13, %v2692_v8  ;;  %v114_v24 = vadd.s32 720, %v2686_v1  ;;  %v115_v39 = vadd.s32 728, %v2686_v1  ;;  %1171 = vmatprep.mubr.bf16.mxu0 %v4198_v43 }
  0x92   :  { %6319 = vst [vmem:[#allocation128_spill] sm:$0xff] %v4198_v43  ;;  %6320 = vst [vmem:[#allocation129_spill] sm:$0xff] %v4202_v55  ;;  %1244 = vmatprep.mubr.bf16.mxu1 %v4202_v55  ;;  %1172 = vmatmul.mubr.bf16.gmra.mxu0 %v4222_v58  ;;  %v4254_v56 = vpack.c.bf16 %v808_v35, %v802_v15  ;;  %v6332_v28 = vmov 0  ;;  %v6337_v7 = vmov 0  ;;  %vm311_vm13 = vcmp.eq.s32.totalorder %v4131_v48, %v2692_v8  ;;  %v819_v55 = vld [vmem:[#allocation2 + $0xb0] sm:$0xff] }
  0x93   :  { %vm4216_vm9 = vmpackc.low %vm6321_vm15, %vm253_vm4  ;;  %6324 = vst [vmem:[#allocation130_spill] sm:$0xff] %v4222_v58  ;;  %vm6328_vm4 = vcmp.eq.s32.totalorder %v4028_v13, %v2696_v11  ;;  %1245 = vmatmul.mubr.bf16.gmra.mxu1 %v4226_v12  ;;  %vm308_vm10 = vcmp.eq.s32.totalorder %v115_v39, %v2696_v11  ;;  %v112_v13 = vadd.s32 704, %v2686_v1  ;;  %v113_v23 = vadd.s32 712, %v2686_v1  ;;  %v813_v58 = vld [vmem:[#allocation2 + $0x80] sm:$0xff] }
  0x94   :  { %v6323_v51 = vsel %vm4216_vm9, 4294967295, %v6322_v51  ;;  %6325 = vst [vmem:[#allocation131_spill] sm:$0xff] %v4226_v12  ;;  %vm4237_vm15 = vmpackc.low %vm6328_vm4, %vm6327_vm1  ;;  %2166 = vmatpush1.bf16.msk.msra.mxu0 %vm4216_vm9, %v6074_v0  ;;  %vm6331_vm4 = vnez %v6028_v21  ;;  %v874_v33 = vunpack.c.l.bf16 %v4254_v56  ;;  %v880_v32 = vunpack.c.h.bf16 %v4254_v56  ;;  %1360 = vmatprep.mubr.bf16.mxu1 %v3353_v25 }
  0x95   :  { %v6330_v19 = vsel %vm4237_vm15, 4294967295, %v6329_v19  ;;  %2230 = vmatpush1.bf16.msk.msra.mxu1 %vm6331_vm4, %v6074_v0  ;;  %2168 = vmatprep.subr.msk.bf16.mxu0 %vm4237_vm15, %v6074_v0  ;;  %vm4272_vm1 = vmpackc.low %vm315_vm3, %vm313_vm0  ;;  %vm6334_vm4 = vnez %v6037_v30  ;;  %vm6335_vm15 = vcmp.eq.s32.totalorder %v4128_v17, %v2696_v11  ;;  %vm6336_vm3 = vcmp.eq.s32.totalorder %v4131_v48, %v2696_v11 }
  0x96   :  { %v6333_v28 = vsel %vm4272_vm1, 4294967295, %v6332_v28  ;;  %2232 = vmatprep.subr.msk.bf16.mxu1 %vm6334_vm4, %v6074_v0  ;;  %vm4289_vm0 = vmpackc.low %vm6336_vm3, %vm6335_vm15  ;;  %vm306_vm9 = vcmp.eq.s32.totalorder %v114_v24, %v2696_v11  ;;  %v4300_v40 = vsub.f32 %v802_v15, %v874_v33  ;;  %v4302_v27 = vsub.f32 %v808_v35, %v880_v32 }
  0x97   :  { %v6338_v7 = vsel %vm4289_vm0, 4294967295, %v6337_v7  ;;  %v4304_v61 = vpack.c.bf16 %v831_v29, %v825_v20  ;;  %vm6342_vm15 = vnez %v6046_v37  ;;  %vm6343_vm3 = vcmp.eq.s32.totalorder %v4128_v17, %v2692_v8 }
  0x98   :  { %6339 = vst [vmem:[#allocation132_spill] sm:$0xff] %v6338_v7  ;;  %6340 = vst [vmem:[#allocation133_spill] sm:$0xff] %v4300_v40  ;;  %2170 = vmatpush2.bf16.msk.msra.mxu0 %vm4272_vm1, %v6074_v0  ;;  %v6344_v25 = vmov 0  ;;  %v4324_v48 = vpack.c.bf16 %v4302_v27, %v4300_v40  ;;  %vm6348_vm1 = vnez %v6055_v49  ;;  %v6349_v15 = vmov 0 }
  0x99   :  { %6341 = vst [vmem:[#allocation134_spill] sm:$0xff] %v4302_v27  ;;  %2234 = vmatpush2.bf16.msk.msra.mxu1 %vm6342_vm15, %v6074_v0  ;;  %2172 = vmatprep.subr.msk.bf16.mxu0 %vm4289_vm0, %v6074_v0  ;;  %vm4318_vm4 = vmpackc.low %vm311_vm13, %vm6343_vm3  ;;  %vm305_vm0 = vcmp.eq.s32.totalorder %v114_v24, %v2692_v8  ;;  %vm307_vm2 = vcmp.eq.s32.totalorder %v115_v39, %v2692_v8  ;;  %v110_v17 = vadd.s32 688, %v2686_v1  ;;  %v111_v35 = vadd.s32 696, %v2686_v1 }
  0x9a   :  { %v6345_v25 = vsel %vm4318_vm4, 4294967295, %v6344_v25  ;;  %6347 = vst [vmem:[#allocation136_spill] sm:$0xff] %v4324_v48  ;;  %2236 = vmatprep.subr.msk.bf16.mxu1 %vm6348_vm1, %v6074_v0  ;;  %vm4329_vm15 = vmpackc.low %vm308_vm10, %vm306_vm9  ;;  %vm302_vm13 = vcmp.eq.s32.totalorder %v112_v13, %v2696_v11  ;;  %vm304_vm3 = vcmp.eq.s32.totalorder %v113_v23, %v2696_v11  ;;  %1287 = vmatprep.mubr.bf16.mxu0 %v4324_v48  ;;  %v897_v33 = vunpack.c.l.bf16 %v4304_v61 }
  0x9b   :  { %6346 = vst [vmem:[#allocation135_spill] sm:$0xff] %v6345_v25  ;;  %v6350_v15 = vsel %vm4329_vm15, 4294967295, %v6349_v15  ;;  %v903_v32 = vunpack.c.h.bf16 %v4304_v61  ;;  %vm6352_vm10 = vnez %v6064_v59  ;;  %vm4351_vm9 = vmpackc.low %vm307_vm2, %vm305_vm0  ;;  %v6353_v24 = vmov 0 }
  0x9c   :  { %6351 = vst [vmem:[#allocation137_spill] sm:$0xff] %v6350_v15  ;;  %2174 = vmatpush2.bf16.msk.msra.mxu0 %vm4318_vm4, %v6074_v0  ;;  %v6354_v24 = vsel %vm4351_vm9, 4294967295, %v6353_v24  ;;  %v945_v39 = vsub.f32 %v825_v20, %v897_v33  ;;  %vm6356_vm1 = vnez %v6073_v6  ;;  %vm4358_vm12 = vmpackc.low %vm304_vm3, %vm302_vm13  ;;  %v6357_v40 = vmov 0 }
  0x9d   :  { %2238 = vmatpush2.bf16.msk.msra.mxu1 %vm6352_vm10, %v6074_v0  ;;  %2176 = vmatprep.subr.msk.bf16.mxu0 %vm4329_vm15, %v6074_v0  ;;  %6355 = vst [vmem:[#allocation138_spill] sm:$0xff] %v6354_v24  ;;  %v951_v27 = vsub.f32 %v831_v29, %v903_v32  ;;  %v6358_v40 = vsel %vm4358_vm12, 4294967295, %v6357_v40  ;;  %vm301_vm10 = vcmp.eq.s32.totalorder %v112_v13, %v2692_v8  ;;  %v108_v31 = vadd.s32 672, %v2686_v1 }
  0x9e   :  { %2240 = vmatprep.subr.msk.bf16.mxu1 %vm6356_vm1, %v6074_v0  ;;  %6359 = vst [vmem:[#allocation139_spill] sm:$0xff] %v6358_v40  ;;  %vm303_vm4 = vcmp.eq.s32.totalorder %v113_v23, %v2692_v8  ;;  %vm298_vm2 = vcmp.eq.s32.totalorder %v110_v17, %v2696_v11  ;;  %vm300_vm0 = vcmp.eq.s32.totalorder %v111_v35, %v2696_v11  ;;  %v109_v20 = vadd.s32 680, %v2686_v1 }
  0x9f   :  { %v4368_v29 = vpack.c.bf16 %v951_v27, %v945_v39  ;;  %vm6360_vm13 = vnez %v6083_v42  ;;  %vm4379_vm3 = vmpackc.low %vm303_vm4, %vm301_vm10  ;;  %v6361_v13 = vmov 0  ;;  %vm6364_vm1 = vnez %v6094_v26  ;;  %v843_v26 = vld [vmem:[#allocation2 + $0x170] sm:$0xff]  ;;  %v6439_v42 = vld [vmem:[#allocation23_spill] sm:$0xff] }
  0xa0   :  { %2178 = vmatpush2.bf16.msk.msra.mxu0 %vm4351_vm9, %v6074_v0  ;;  %v6362_v13 = vsel %vm4379_vm3, 4294967295, %v6361_v13  ;;  %vm4388_vm9 = vmpackc.low %vm300_vm0, %vm298_vm2  ;;  %v6365_v32 = vmov 0  ;;  %vm294_vm4 = vcmp.eq.s32.totalorder %v108_v31, %v2696_v11  ;;  %v106_v48 = vadd.s32 656, %v2686_v1 }
  0xa1   :  { %2242 = vmatpush2.bf16.msk.msra.mxu1 %vm6360_vm13, %v6074_v0  ;;  %2180 = vmatprep.subr.msk.bf16.mxu0 %vm4358_vm12, %v6074_v0  ;;  %6363 = vst [vmem:[#allocation140_spill] sm:$0xff] %v6362_v13  ;;  %v1017_v23 = vunpack.c.l.bf16 %v4368_v29  ;;  %v1023_v33 = vunpack.c.h.bf16 %v4368_v29  ;;  %v6366_v32 = vsel %vm4388_vm9, 4294967295, %v6365_v32  ;;  %vm297_vm13 = vcmp.eq.s32.totalorder %v110_v17, %v2692_v8  ;;  %v807_v17 = vld [vmem:[#allocation2 + $0x50] sm:$0xff] }
  0xa2   :  { %2244 = vmatprep.subr.msk.bf16.mxu1 %vm6364_vm1, %v6074_v0  ;;  %6367 = vst [vmem:[#allocation141_spill] sm:$0xff] %v6366_v32  ;;  %vm299_vm12 = vcmp.eq.s32.totalorder %v111_v35, %v2692_v8  ;;  %vm296_vm10 = vcmp.eq.s32.totalorder %v109_v20, %v2696_v11  ;;  %v107_v63 = vadd.s32 664, %v2686_v1  ;;  %vm6370_vm2 = vnez %v6104_v46  ;;  %v6410_v46 = vld [vmem:[#allocation48_spill] sm:$0xff] }
  0xa3   :  { %v4398_v12 = vsub.f32 %v945_v39, %v1017_v23  ;;  %v4400_v52 = vsub.f32 %v951_v27, %v1023_v33  ;;  %vm4411_vm0 = vmpackc.low %vm299_vm12, %vm297_vm13  ;;  %v6371_v35 = vmov 0  ;;  %vm6374_vm1 = vnez %v6120_v41  ;;  %v832_v41 = vld [vmem:[#allocation2 + $0x118] sm:$0xff] }
  0xa4   :  { %2182 = vmatpush2.bf16.msk.msra.mxu0 %vm4379_vm3, %v6074_v0  ;;  %v6372_v35 = vsel %vm4411_vm0, 4294967295, %v6371_v35  ;;  %vm4420_vm3 = vmpackc.low %vm296_vm10, %vm294_vm4  ;;  %v6375_v39 = vmov 0  ;;  %vm295_vm15 = vcmp.eq.s32.totalorder %v109_v20, %v2692_v8  ;;  %vm290_vm12 = vcmp.eq.s32.totalorder %v106_v48, %v2696_v11 }
  0xa5   :  { %6368 = vst [vmem:[#allocation142_spill] sm:$0xff] %v4398_v12  ;;  %6369 = vst [vmem:[#allocation143_spill] sm:$0xff] %v4400_v52  ;;  %2246 = vmatpush2.bf16.msk.msra.mxu1 %vm6370_vm2, %v6074_v0  ;;  %2184 = vmatprep.subr.msk.bf16.mxu0 %vm4388_vm9, %v6074_v0  ;;  %v6376_v39 = vsel %vm4420_vm3, 4294967295, %v6375_v39  ;;  %vm293_vm2 = vcmp.eq.s32.totalorder %v108_v31, %v2692_v8  ;;  %vm292_vm13 = vcmp.eq.s32.totalorder %v107_v63, %v2696_v11  ;;  %v814_v12 = vld [vmem:[#allocation2 + $0x88] sm:$0xff]  ;;  %v820_v52 = vld [vmem:[#allocation2 + $0xb8] sm:$0xff]  ;;  %v6379_v31 = vmov 0 }
  0xa6   :  { %6373 = vst [vmem:[#allocation144_spill] sm:$0xff] %v6372_v35  ;;  %2248 = vmatprep.subr.msk.bf16.mxu1 %vm6374_vm1, %v6074_v0  ;;  %6377 = vst [vmem:[#allocation145_spill] sm:$0xff] %v6376_v39  ;;  %v104_v23 = vadd.s32 640, %v2686_v1  ;;  %v105_v33 = vadd.s32 648, %v2686_v1  ;;  %v4430_v27 = vpack.c.bf16 %v807_v17, %v801_v2  ;;  %vm6378_vm4 = vnez %v6132_v22 }
  0xa7   :  { %vm4441_vm10 = vmpackc.low %vm295_vm15, %vm293_vm2  ;;  %vm6382_vm1 = vnez %v6142_v34  ;;  %v6383_v1 = vmov 0  ;;  %v4454_v20 = vpack.c.bf16 %v820_v52, %v814_v12  ;;  %vm6386_vm2 = vnez %v6152_v54 }
  0xa8   :  { %2186 = vmatpush2.bf16.msk.msra.mxu0 %vm4411_vm0, %v6074_v0  ;;  %v6380_v31 = vsel %vm4441_vm10, 4294967295, %v6379_v31  ;;  %vm4448_vm9 = vmpackc.low %vm292_vm13, %vm290_vm12  ;;  %vm289_vm0 = vcmp.eq.s32.totalorder %v106_v48, %v2692_v8  ;;  %vm288_vm15 = vcmp.eq.s32.totalorder %v105_v33, %v2696_v11  ;;  %v873_v47 = vunpack.c.l.bf16 %v4430_v27 }
  0xa9   :  { %2250 = vmatpush2.bf16.msk.msra.mxu1 %vm6378_vm4, %v6074_v0  ;;  %2188 = vmatprep.subr.msk.bf16.mxu0 %vm4420_vm3, %v6074_v0  ;;  %6381 = vst [vmem:[#allocation146_spill] sm:$0xff] %v6380_v31  ;;  %v6384_v1 = vsel %vm4448_vm9, 4294967295, %v6383_v1  ;;  %vm291_vm4 = vcmp.eq.s32.totalorder %v107_v63, %v2692_v8  ;;  %vm286_vm3 = vcmp.eq.s32.totalorder %v104_v23, %v2696_v11  ;;  %v879_v60 = vunpack.c.h.bf16 %v4430_v27 }
  0xaa   :  { %2252 = vmatprep.subr.msk.bf16.mxu1 %vm6382_vm1, %v6074_v0  ;;  %6385 = vst [vmem:[#allocation147_spill] sm:$0xff] %v6384_v1  ;;  %vm4469_vm12 = vmpackc.low %vm291_vm4, %vm289_vm0  ;;  %v6387_v11 = vmov 0  ;;  %vm6390_vm13 = vnez %v6162_v62  ;;  %v6391_v63 = vmov 0  ;;  %v886_v48 = vunpack.c.l.bf16 %v4454_v20  ;;  %v826_v62 = vld [vmem:[#allocation2 + $0xe8] sm:$0xff] }
  0xab   :  { %v6388_v11 = vsel %vm4469_vm12, 4294967295, %v6387_v11  ;;  %vm4476_vm1 = vmpackc.low %vm288_vm15, %vm286_vm3  ;;  %v892_v43 = vunpack.c.h.bf16 %v4454_v20  ;;  %v4484_v54 = vsub.f32 %v801_v2, %v873_v47  ;;  %v4486_v34 = vsub.f32 %v807_v17, %v879_v60  ;;  %v6517_v1 = vld [vmem:[#allocation9_spill] sm:$0xff] }
  0xac   :  { %2190 = vmatpush2.bf16.msk.msra.mxu0 %vm4441_vm10, %v6074_v0  ;;  %6389 = vst [vmem:[#allocation148_spill] sm:$0xff] %v6388_v11  ;;  %v6392_v63 = vsel %vm4476_vm1, 4294967295, %v6391_v63  ;;  %vm285_vm10 = vcmp.eq.s32.totalorder %v104_v23, %v2692_v8  ;;  %v4488_v22 = vpack.c.bf16 %v819_v55, %v813_v58  ;;  %vm6396_vm3 = vnez %v6176_v38  ;;  %v844_v38 = vld [vmem:[#allocation2 + $0x178] sm:$0xff]  ;;  %v6519_v11 = vld [vmem:[#allocation49_spill] sm:$0xff] }
  0xad   :  { %2254 = vmatpush2.bf16.msk.msra.mxu1 %vm6386_vm2, %v6074_v0  ;;  %2192 = vmatprep.subr.msk.bf16.mxu0 %vm4448_vm9, %v6074_v0  ;;  %6393 = vst [vmem:[#allocation149_spill] sm:$0xff] %v6392_v63  ;;  %vm287_vm2 = vcmp.eq.s32.totalorder %v105_v33, %v2692_v8  ;;  %6394 = vst [vmem:[#allocation150_spill] sm:$0xff] %v4484_v54  ;;  %v6397_v8 = vmov 0  ;;  %vm6400_vm4 = vnez %v6186_v44  ;;  %v4506_v47 = vsub.f32 %v814_v12, %v886_v48  ;;  %v838_v44 = vld [vmem:[#allocation2 + $0x148] sm:$0xff]  ;;  %v6520_v63 = vld [vmem:[#allocation8_spill] sm:$0xff] }
  0xae   :  { %2256 = vmatprep.subr.msk.bf16.mxu1 %vm6390_vm13, %v6074_v0  ;;  %6395 = vst [vmem:[#allocation151_spill] sm:$0xff] %v4486_v34  ;;  %vm4499_vm0 = vmpackc.low %vm287_vm2, %vm285_vm10  ;;  %v4508_v2 = vsub.f32 %v820_v52, %v892_v43  ;;  %v4510_v60 = vpack.c.bf16 %v832_v41, %v826_v62  ;;  %v4514_v17 = vpack.c.bf16 %v4486_v34, %v4484_v54  ;;  %v885_v23 = vunpack.c.l.bf16 %v4488_v22  ;;  %v6404_v52 = vld [vmem:[#allocation10_spill] sm:$0xff]  ;;  %v6411_v43 = vld [vmem:[#allocation11_spill] sm:$0xff] }
  0xaf   :  { %v6398_v8 = vsel %vm4499_vm0, 4294967295, %v6397_v8  ;;  %6401 = vst [vmem:[#allocation153_spill] sm:$0xff] %v4506_v47  ;;  %v891_v33 = vunpack.c.h.bf16 %v4488_v22  ;;  %vm6405_vm10 = vnez %v6404_v52  ;;  %vm6412_vm15 = vnez %v6411_v43  ;;  %v6543_v43 = vld [vmem:[#allocation102_spill] sm:$0xff] }
  0xb0   :  { %2194 = vmatpush2.bf16.msk.msra.mxu0 %vm4469_vm12, %v6074_v0  ;;  %6399 = vst [vmem:[#allocation152_spill] sm:$0xff] %v6398_v8  ;;  %6402 = vst [vmem:[#allocation154_spill] sm:$0xff] %v4508_v2  ;;  %v4532_v12 = vpack.c.bf16 %v4508_v2, %v4506_v47  ;;  %v898_v48 = vunpack.c.l.bf16 %v4510_v60  ;;  %v904_v34 = vunpack.c.h.bf16 %v4510_v60  ;;  %v4537_v54 = vsub.f32 %v813_v58, %v885_v23  ;;  %v6414_v47 = vld [vmem:[#allocation13_spill] sm:$0xff]  ;;  %v6421_v2 = vld [vmem:[#allocation15_spill] sm:$0xff] }
  0xb1   :  { %2258 = vmatpush2.bf16.msk.msra.mxu1 %vm6396_vm3, %v6074_v0  ;;  %2196 = vmatprep.subr.msk.bf16.mxu0 %vm4476_vm1, %v6074_v0  ;;  %6403 = vst [vmem:[#allocation155_spill] sm:$0xff] %v4514_v17  ;;  %v4539_v9 = vsub.f32 %v819_v55, %v891_v33  ;;  %vm6415_vm2 = vnez %v6414_v47  ;;  %v4559_v23 = vpack.c.bf16 %v844_v38, %v838_v44  ;;  %v837_v58 = vld [vmem:[#allocation2 + $0x140] sm:$0xff]  ;;  %v6535_v47 = vld [vmem:[#allocation101_spill] sm:$0xff] }
  0xb2   :  { %2260 = vmatprep.subr.msk.bf16.mxu1 %vm6400_vm4, %v6074_v0  ;;  %6407 = vst [vmem:[#allocation10_spill] sm:$0xff] %v4532_v12  ;;  %6408 = vst [vmem:[#allocation156_spill] sm:$0xff] %v4537_v54  ;;  %v4555_v55 = vsub.f32 %v826_v62, %v898_v48  ;;  %v4585_v48 = vpack.c.bf16 %v843_v26, %v837_v58  ;;  %vm6441_vm3 = vnez %v6259_v14  ;;  %vm6444_vm13 = vnez %v6266_v4  ;;  %v6522_v8 = vld [vmem:[#allocation12_spill] sm:$0xff] }
  0xb3   :  { %6409 = vst [vmem:[#allocation157_spill] sm:$0xff] %v4539_v9  ;;  %v4563_v33 = vpack.c.bf16 %v4539_v9, %v4537_v54  ;;  %v910_v62 = vunpack.c.l.bf16 %v4559_v23  ;;  %v6427_v9 = vld [vmem:[#allocation19_spill] sm:$0xff]  ;;  %v6429_v54 = vld [vmem:[#allocation84_spill] sm:$0xff] }
  0xb4   :  { %2198 = vmatpush2.bf16.msk.msra.mxu0 %vm4499_vm0, %v6074_v0  ;;  %6417 = vst [vmem:[#allocation48_spill] sm:$0xff] %v4555_v55 }
  0xb5   :  { %2262 = vmatpush2.bf16.msk.msra.mxu1 %vm3709_vm7, %v6074_v0  ;;  %2264 = vmatprep.subr.msk.bf16.mxu0 %vm6405_vm10, %v6074_v0  ;;  %6419 = vst [vmem:[#allocation13_spill] sm:$0xff] %v4563_v33 }
  0xb6   :  { %2328 = vmatprep.subr.msk.bf16.mxu1 %vm3750_vm11, %v6074_v0  ;;  %vm6425_vm11 = vnez %v6230_v36 }
  0xb7   :  { %1288 = vmatmul.mubr.bf16.vlgmr.msra.gmra.mxu0 %v4514_v17  ;;  %v6420_v17 = vld [vmem:[#allocation77_spill] sm:$0xff] }
  0xb8   :  { %1361 = vmatmul.mubr.bf16.vlgmr.msra.gmra.mxu1 %v6410_v46  ;;  %2266 = vmatpush1.bf16.msk.msra.mxu0 %vm6412_vm15, %v6074_v0  ;;  %v4557_v46 = vsub.f32 %v832_v41, %v904_v34  ;;  %v6423_v41 = vld [vmem:[#allocation17_spill] sm:$0xff] }
  0xb9   :  { %2330 = vmatpush1.bf16.msk.msra.mxu1 %vm3773_vm6, %v6074_v0  ;;  %2268 = vmatprep.subr.msk.bf16.mxu0 %vm6415_vm2, %v6074_v0  ;;  %vm6422_vm6 = vnez %v6421_v2  ;;  %v6536_v2 = vld [vmem:[#allocation22_spill] sm:$0xff] }
  0xba   :  { %2332 = vmatprep.subr.msk.bf16.mxu1 %vm3793_vm14, %v6074_v0  ;;  %1297 = vmatprep.mubr.bf16.mxu0 %v4532_v12  ;;  %6418 = vst [vmem:[#allocation11_spill] sm:$0xff] %v4557_v46  ;;  %vm6424_vm14 = vnez %v6423_v41  ;;  %v4580_v34 = vpack.c.bf16 %v4557_v46, %v4555_v55  ;;  %v6430_v12 = vld [vmem:[#allocation91_spill] sm:$0xff]  ;;  %v6432_v46 = vld [vmem:[#allocation21_spill] sm:$0xff] }
  0xbb   :  { %1370 = vmatprep.mubr.bf16.mxu1 %v6420_v17  ;;  %v916_v17 = vunpack.c.h.bf16 %v4559_v23  ;;  %vm6433_vm7 = vnez %v6432_v46  ;;  %v6434_v55 = vld [vmem:[#allocation95_spill] sm:$0xff] }
  0xbc   :  { %2270 = vmatpush1.bf16.msk.msra.mxu0 %vm6422_vm6, %v6074_v0  ;;  %6426 = vst [vmem:[#allocation77_spill] sm:$0xff] %v4580_v34  ;;  %vm6435_vm4 = vnez %v6434_v55 }
  0xbd   :  { %2334 = vmatpush1.bf16.msk.msra.mxu1 %vm3828_vm5, %v6074_v0  ;;  %2272 = vmatprep.subr.msk.bf16.mxu0 %vm6424_vm14, %v6074_v0  ;;  %vm6428_vm5 = vnez %v6427_v9  ;;  %v4603_v36 = vsub.f32 %v844_v38, %v916_v17  ;;  %v6451_v17 = vld [vmem:[#allocation29_spill] sm:$0xff] }
  0xbe   :  { %2336 = vmatprep.subr.msk.bf16.mxu1 %vm6425_vm11, %v6074_v0  ;;  %vm6431_vm11 = vnez %v6430_v12  ;;  %v915_v12 = vunpack.c.h.bf16 %v4585_v48  ;;  %v6542_v9 = vld [vmem:[#allocation57_spill] sm:$0xff] }
  0xbf   :  { %1298 = vmatmul.mubr.bf16.gmra.mxu0 %v4563_v33  ;;  %v4601_v33 = vsub.f32 %v838_v44, %v910_v62  ;;  %6437 = vst [vmem:[#allocation17_spill] sm:$0xff] %v4603_v36  ;;  %v6448_v62 = vld [vmem:[#allocation27_spill] sm:$0xff]  ;;  %v990_v52 = vunpack.c.l.bf16 %v6542_v9 }
  0xc0   :  { %2274 = vmatpush1.bf16.msk.msra.mxu0 %vm6428_vm5, %v6074_v0  ;;  %1371 = vmatmul.mubr.bf16.gmra.mxu1 %v6429_v54  ;;  %v909_v54 = vunpack.c.l.bf16 %v4585_v48 }
  0xc1   :  { %2338 = vmatpush1.bf16.msk.msra.mxu1 %vm6431_vm11, %v6074_v0  ;;  %2276 = vmatprep.subr.msk.bf16.mxu0 %vm6433_vm7, %v6074_v0  ;;  %6436 = vst [vmem:[#allocation15_spill] sm:$0xff] %v4601_v33  ;;  %vm6440_vm11 = vnez %v6439_v42  ;;  %v4622_v38 = vpack.c.bf16 %v4603_v36, %v4601_v33  ;;  %vm6478_vm7 = vnez %v6333_v28  ;;  %v6482_v36 = vld [vmem:[#allocation40_spill] sm:$0xff]  ;;  %v6485_v33 = vld [vmem:[#allocation41_spill] sm:$0xff] }
  0xc2   :  { %2340 = vmatprep.subr.msk.bf16.mxu1 %vm6435_vm4, %v6074_v0  ;;  %1307 = vmatprep.mubr.bf16.mxu0 %v4580_v34  ;;  %v6442_v34 = vld [vmem:[#allocation25_spill] sm:$0xff]  ;;  %v4625_v44 = vsub.f32 %v837_v58, %v909_v54  ;;  %v6460_v58 = vld [vmem:[#allocation116_spill] sm:$0xff]  ;;  %v6464_v54 = vld [vmem:[#allocation118_spill] sm:$0xff] }
  0xc3   :  { %1380 = vmatprep.mubr.bf16.mxu1 %v6438_v53  ;;  %vm6443_vm4 = vnez %v6442_v34  ;;  %6445 = vst [vmem:[#allocation19_spill] sm:$0xff] %v4622_v38  ;;  %v4627_v53 = vsub.f32 %v843_v26, %v915_v12  ;;  %v6458_v12 = vld [vmem:[#allocation33_spill] sm:$0xff] }
  0xc4   :  { %2278 = vmatpush1.bf16.msk.msra.mxu0 %vm6440_vm11, %v6074_v0  ;;  %6446 = vst [vmem:[#allocation84_spill] sm:$0xff] %v4625_v44  ;;  %vm6453_vm11 = vnez %v6281_v45 }
  0xc5   :  { %2342 = vmatpush1.bf16.msk.msra.mxu1 %vm6441_vm3, %v6074_v0  ;;  %2280 = vmatprep.subr.msk.bf16.mxu0 %vm6443_vm4, %v6074_v0  ;;  %6447 = vst [vmem:[#allocation21_spill] sm:$0xff] %v4627_v53  ;;  %vm6449_vm3 = vnez %v6448_v62  ;;  %vm6450_vm4 = vnez %v6273_v18  ;;  %v4645_v26 = vpack.c.bf16 %v4627_v53, %v4625_v44  ;;  %v6466_v53 = vld [vmem:[#allocation35_spill] sm:$0xff]  ;;  %v6469_v44 = vld [vmem:[#allocation44_spill] sm:$0xff] }
  0xc6   :  { %2344 = vmatprep.subr.msk.bf16.mxu1 %vm6444_vm13, %v6074_v0  ;;  %vm6452_vm13 = vnez %v6451_v17 }
  0xc7   :  { %1308 = vmatmul.mubr.bf16.gmra.mxu0 %v4368_v29  ;;  %6454 = vst [vmem:[#allocation95_spill] sm:$0xff] %v4645_v26  ;;  %v6457_v29 = vld [vmem:[#allocation115_spill] sm:$0xff] }
  0xc8   :  { %2282 = vmatpush1.bf16.msk.msra.mxu0 %vm6449_vm3, %v6074_v0  ;;  %1381 = vmatmul.mubr.bf16.gmra.mxu1 %v3973_v16  ;;  %v6455_v16 = vld [vmem:[#allocation31_spill] sm:$0xff] }
  0xc9   :  { %2346 = vmatpush1.bf16.msk.msra.mxu1 %vm6450_vm4, %v6074_v0  ;;  %2284 = vmatprep.subr.msk.bf16.mxu0 %vm6452_vm13, %v6074_v0  ;;  %vm6456_vm3 = vnez %v6455_v16  ;;  %vm6459_vm4 = vnez %v6458_v12 }
  0xca   :  { %2348 = vmatprep.subr.msk.bf16.mxu1 %vm6453_vm11, %v6074_v0  ;;  %1317 = vmatprep.mubr.bf16.mxu0 %v4622_v38  ;;  %vm6461_vm11 = vnez %v6460_v58  ;;  %v6488_v38 = vld [vmem:[#allocation43_spill] sm:$0xff] }
  0xcb   :  { %1390 = vmatprep.mubr.bf16.mxu1 %v4119_v50  ;;  %v6462_v50 = vld [vmem:[#allocation34_spill] sm:$0xff] }
  0xcc   :  { %2286 = vmatpush1.bf16.msk.msra.mxu0 %vm6456_vm3, %v6074_v0  ;;  %vm6463_vm13 = vnez %v6462_v50  ;;  %vm6465_vm3 = vnez %v6306_v57 }
  0xcd   :  { %2350 = vmatpush1.bf16.msk.msra.mxu1 %vm4095_vm8, %v6074_v0  ;;  %2288 = vmatprep.subr.msk.bf16.mxu0 %vm6459_vm4, %v6074_v0  ;;  %vm6467_vm8 = vnez %v6466_v53  ;;  %vm6468_vm4 = vnez %v6310_v3 }
  0xce   :  { %2352 = vmatprep.subr.msk.bf16.mxu1 %vm6461_vm11, %v6074_v0 }
  0xcf   :  { %1318 = vmatmul.mubr.bf16.gmra.mxu0 %v4645_v26  ;;  %v6470_v26 = vld [vmem:[#allocation36_spill] sm:$0xff] }
  0xd0   :  { %2290 = vmatpush1.bf16.msk.msra.mxu0 %vm6463_vm13, %v6074_v0  ;;  %1391 = vmatmul.mubr.bf16.gmra.mxu1 %v6464_v54  ;;  %vm6471_vm11 = vnez %v6470_v26  ;;  %vm6472_vm13 = vnez %v6323_v51  ;;  %v6473_v54 = vld [vmem:[#allocation37_spill] sm:$0xff] }
  0xd1   :  { %2354 = vmatpush1.bf16.msk.msra.mxu1 %vm6465_vm3, %v6074_v0  ;;  %2292 = vmatprep.subr.msk.bf16.mxu0 %vm6467_vm8, %v6074_v0  ;;  %vm6474_vm3 = vnez %v6473_v54  ;;  %vm6475_vm8 = vnez %v6330_v19 }
  0xd2   :  { %2356 = vmatprep.subr.msk.bf16.mxu1 %vm6468_vm4, %v6074_v0  ;;  %1433 = vmatprep.mubr.bf16.mxu0 %v6469_v44  ;;  %v6476_v44 = vld [vmem:[#allocation38_spill] sm:$0xff] }
  0xd3   :  { %1506 = vmatprep.mubr.bf16.mxu1 %v4254_v56  ;;  %vm6477_vm4 = vnez %v6476_v44  ;;  %v6479_v56 = vld [vmem:[#allocation39_spill] sm:$0xff] }
  0xd4   :  { %2294 = vmatpush1.bf16.msk.msra.mxu0 %vm6471_vm11, %v6074_v0  ;;  %vm6480_vm11 = vnez %v6479_v56 }
  0xd5   :  { %2358 = vmatpush1.bf16.msk.msra.mxu1 %vm6472_vm13, %v6074_v0  ;;  %2296 = vmatprep.subr.msk.bf16.mxu0 %vm6474_vm3, %v6074_v0  ;;  %vm6481_vm13 = vnez %v6338_v7  ;;  %vm6483_vm3 = vnez %v6482_v36  ;;  %v6491_v7 = vld [vmem:[#allocation46_spill] sm:$0xff] }
  0xd6   :  { %2360 = vmatprep.subr.msk.bf16.mxu1 %vm6475_vm8, %v6074_v0  ;;  %vm6484_vm8 = vnez %v6345_v25  ;;  %v6494_v25 = vld [vmem:[#allocation50_spill] sm:$0xff] }
  0xd8   :  { %2298 = vmatpush2.bf16.msk.msra.mxu0 %vm6477_vm4, %v6074_v0  ;;  %vm6486_vm4 = vnez %v6485_v33 }
  0xd9   :  { %2362 = vmatpush2.bf16.msk.msra.mxu1 %vm6478_vm7, %v6074_v0  ;;  %2300 = vmatprep.subr.msk.bf16.mxu0 %vm6480_vm11, %v6074_v0  ;;  %vm6487_vm7 = vnez %v6350_v15  ;;  %vm6489_vm11 = vnez %v6488_v38  ;;  %v6497_v15 = vld [vmem:[#allocation56_spill] sm:$0xff] }
  0xda   :  { %2364 = vmatprep.subr.msk.bf16.mxu1 %vm6481_vm13, %v6074_v0  ;;  %vm6490_vm13 = vnez %v6354_v24  ;;  %v6500_v24 = vld [vmem:[#allocation60_spill] sm:$0xff] }
  0xdc   :  { %2302 = vmatpush2.bf16.msk.msra.mxu0 %vm6483_vm3, %v6074_v0  ;;  %vm6492_vm3 = vnez %v6491_v7 }
  0xdd   :  { %2366 = vmatpush2.bf16.msk.msra.mxu1 %vm6484_vm8, %v6074_v0  ;;  %2304 = vmatprep.subr.msk.bf16.mxu0 %vm6486_vm4, %v6074_v0  ;;  %vm6493_vm8 = vnez %v6358_v40  ;;  %vm6495_vm4 = vnez %v6494_v25  ;;  %v6503_v40 = vld [vmem:[#allocation62_spill] sm:$0xff] }
  0xde   :  { %2368 = vmatprep.subr.msk.bf16.mxu1 %vm6487_vm7, %v6074_v0  ;;  %vm6496_vm7 = vnez %v6362_v13  ;;  %v6506_v13 = vld [vmem:[#allocation64_spill] sm:$0xff] }
  0xe0   :  { %2306 = vmatpush2.bf16.msk.msra.mxu0 %vm6489_vm11, %v6074_v0  ;;  %vm6498_vm11 = vnez %v6497_v15 }
  0xe1   :  { %2370 = vmatpush2.bf16.msk.msra.mxu1 %vm6490_vm13, %v6074_v0  ;;  %2308 = vmatprep.subr.msk.bf16.mxu0 %vm6492_vm3, %v6074_v0  ;;  %vm6499_vm13 = vnez %v6366_v32  ;;  %vm6501_vm3 = vnez %v6500_v24  ;;  %v6509_v32 = vld [vmem:[#allocation70_spill] sm:$0xff] }
  0xe2   :  { %2372 = vmatprep.subr.msk.bf16.mxu1 %vm6493_vm8, %v6074_v0  ;;  %vm6502_vm8 = vnez %v6372_v35  ;;  %v6511_v35 = vld [vmem:[#allocation72_spill] sm:$0xff] }
  0xe4   :  { %2310 = vmatpush2.bf16.msk.msra.mxu0 %vm6495_vm4, %v6074_v0  ;;  %vm6504_vm4 = vnez %v6503_v40 }
  0xe5   :  { %2374 = vmatpush2.bf16.msk.msra.mxu1 %vm6496_vm7, %v6074_v0  ;;  %2312 = vmatprep.subr.msk.bf16.mxu0 %vm6498_vm11, %v6074_v0  ;;  %vm6505_vm7 = vnez %v6376_v39  ;;  %vm6507_vm11 = vnez %v6506_v13  ;;  %v6513_v39 = vld [vmem:[#allocation74_spill] sm:$0xff]  ;;  %v6604_v13 = vld [vmem:[#allocation73_spill] sm:$0xff] }
  0xe6   :  { %2376 = vmatprep.subr.msk.bf16.mxu1 %vm6499_vm13, %v6074_v0  ;;  %vm6508_vm13 = vnez %v6380_v31  ;;  %v6515_v31 = vld [vmem:[#allocation76_spill] sm:$0xff] }
  0xe8   :  { %2314 = vmatpush2.bf16.msk.msra.mxu0 %vm6501_vm3, %v6074_v0  ;;  %vm6510_vm3 = vnez %v6509_v32  ;;  %v6606_v32 = vld [vmem:[#allocation82_spill] sm:$0xff] }
  0xe9   :  { %2378 = vmatpush2.bf16.msk.msra.mxu1 %vm6502_vm8, %v6074_v0  ;;  %2316 = vmatprep.subr.msk.bf16.mxu0 %vm6504_vm4, %v6074_v0  ;;  %vm6512_vm8 = vnez %v6511_v35 }
  0xea   :  { %2380 = vmatprep.subr.msk.bf16.mxu1 %vm6505_vm7, %v6074_v0  ;;  %vm6514_vm7 = vnez %v6513_v39 }
  0xec   :  { %2318 = vmatpush2.bf16.msk.msra.mxu0 %vm6507_vm11, %v6074_v0 }
  0xed   :  { %2382 = vmatpush2.bf16.msk.msra.mxu1 %vm6508_vm13, %v6074_v0  ;;  %2320 = vmatprep.subr.msk.bf16.mxu0 %vm6510_vm3, %v6074_v0  ;;  %vm6516_vm13 = vnez %v6515_v31 }
  0xee   :  { %2384 = vmatprep.subr.msk.bf16.mxu1 %vm4448_vm9, %v6074_v0  ;;  %vm6518_vm9 = vnez %v6517_v1  ;;  %v6524_v1 = vld [vmem:[#allocation78_spill] sm:$0xff] }
  0xf0   :  { %2322 = vmatpush2.bf16.msk.msra.mxu0 %vm6512_vm8, %v6074_v0 }
  0xf1   :  { %2386 = vmatpush2.bf16.msk.msra.mxu1 %vm4469_vm12, %v6074_v0  ;;  %2324 = vmatprep.subr.msk.bf16.mxu0 %vm6514_vm7, %v6074_v0 }
  0xf2   :  { %2388 = vmatprep.subr.msk.bf16.mxu1 %vm4476_vm1, %v6074_v0  ;;  %vm6521_vm1 = vnez %v6520_v63  ;;  %v6529_v63 = vld [vmem:[#allocation85_spill] sm:$0xff] }
  0xf4   :  { %2326 = vmatpush2.bf16.msk.msra.mxu0 %vm6516_vm13, %v6074_v0 }
  0xf5   :  { %2390 = vmatpush2.bf16.msk.msra.mxu1 %vm4499_vm0, %v6074_v0  ;;  %2392 = vmatprep.subr.msk.bf16.mxu0 %vm6518_vm9, %v6074_v0  ;;  %vm6523_vm0 = vnez %v6522_v8  ;;  %v6532_v8 = vld [vmem:[#allocation20_spill] sm:$0xff] }
  0xf6   :  { %2456 = vmatprep.subr.msk.bf16.mxu1 %vm6405_vm10, %v6074_v0  ;;  %vm6534_vm10 = vnez %v6432_v46  ;;  %v6544_v46 = vld [vmem:[#allocation58_spill] sm:$0xff] }
  0xf7   :  { %1434 = vmatmul.mubr.bf16.vlgmr.msra.gmra.mxu0 %v6519_v11  ;;  %v6527_v11 = vld [vmem:[#allocation16_spill] sm:$0xff]  ;;  %v992_v41 = vunpack.c.l.bf16 %v6544_v46 }
  0xf8   :  { %1507 = vmatmul.mubr.bf16.vlgmr.msra.gmra.mxu1 %v4430_v27  ;;  %2394 = vmatpush1.bf16.msk.msra.mxu0 %vm6521_vm1, %v6074_v0  ;;  %v6525_v27 = vld [vmem:[#allocation14_spill] sm:$0xff]  ;;  %vm6528_vm1 = vnez %v6527_v11  ;;  %v6552_v11 = vld [vmem:[#allocation51_spill] sm:$0xff] }
  0xf9   :  { %2458 = vmatpush1.bf16.msk.msra.mxu1 %vm6412_vm15, %v6074_v0  ;;  %2396 = vmatprep.subr.msk.bf16.mxu0 %vm6523_vm0, %v6074_v0  ;;  %vm6526_vm9 = vnez %v6525_v27  ;;  %vm6538_vm15 = vnez %v6439_v42  ;;  %v6545_v42 = vld [vmem:[#allocation26_spill] sm:$0xff]  ;;  %v6551_v27 = vld [vmem:[#allocation117_spill] sm:$0xff] }
  0xfa   :  { %2460 = vmatprep.subr.msk.bf16.mxu1 %vm6415_vm2, %v6074_v0  ;;  %1443 = vmatprep.mubr.bf16.mxu0 %v6524_v1  ;;  %vm6541_vm2 = vnez %v6442_v34  ;;  %v998_v1 = vunpack.c.h.bf16 %v6544_v46  ;;  %v6548_v34 = vld [vmem:[#allocation28_spill] sm:$0xff]  ;;  %v6614_v46 = vld [vmem:[#allocation79_spill] sm:$0xff] }
  0xfb   :  { %1516 = vmatprep.mubr.bf16.mxu1 %v4454_v20  ;;  %v6530_v20 = vld [vmem:[#allocation18_spill] sm:$0xff] }
  0xfc   :  { %2398 = vmatpush1.bf16.msk.msra.mxu0 %vm6526_vm9, %v6074_v0  ;;  %vm6531_vm0 = vnez %v6530_v20  ;;  %vm6546_vm9 = vnez %v6545_v42  ;;  %v6553_v20 = vld [vmem:[#allocation52_spill] sm:$0xff] }
  0xfd   :  { %2462 = vmatpush1.bf16.msk.msra.mxu1 %vm6422_vm6, %v6074_v0  ;;  %2400 = vmatprep.subr.msk.bf16.mxu0 %vm6528_vm1, %v6074_v0  ;;  %vm6533_vm6 = vnez %v6532_v8  ;;  %vm6547_vm1 = vnez %v6448_v62  ;;  %v6555_v62 = vld [vmem:[#allocation54_spill] sm:$0xff] }
  0xfe   :  { %2464 = vmatprep.subr.msk.bf16.mxu1 %vm6424_vm14, %v6074_v0  ;;  %vm6537_vm14 = vnez %v6536_v2  ;;  %v1046_v2 = vsub.f32 %v6555_v62, %v998_v1  ;;  %v6616_v1 = vld [vmem:[#allocation93_spill] sm:$0xff] }
  0xff   :  { %1444 = vmatmul.mubr.bf16.gmra.mxu0 %v6529_v63  ;;  %v1038_v63 = vsub.f32 %v6552_v11, %v990_v52 }
 0x100   :  { %2402 = vmatpush1.bf16.msk.msra.mxu0 %vm6531_vm0, %v6074_v0  ;;  %1517 = vmatmul.mubr.bf16.gmra.mxu1 %v4488_v22  ;;  %v6539_v22 = vld [vmem:[#allocation24_spill] sm:$0xff]  ;;  %vm6549_vm0 = vnez %v6548_v34 }
 0x101   :  { %2466 = vmatpush1.bf16.msk.msra.mxu1 %vm6428_vm5, %v6074_v0  ;;  %2404 = vmatprep.subr.msk.bf16.mxu0 %vm6533_vm6, %v6074_v0  ;;  %vm6540_vm5 = vnez %v6539_v22  ;;  %vm6550_vm6 = vnez %v6451_v17  ;;  %v6556_v22 = vld [vmem:[#allocation30_spill] sm:$0xff]  ;;  %v6559_v17 = vld [vmem:[#allocation32_spill] sm:$0xff] }
 0x102   :  { %2468 = vmatprep.subr.msk.bf16.mxu1 %vm6534_vm10, %v6074_v0  ;;  %1453 = vmatprep.mubr.bf16.mxu0 %v6535_v47  ;;  %vm6557_vm10 = vnez %v6556_v22  ;;  %v6617_v34 = vld [vmem:[#allocation108_spill] sm:$0xff] }
 0x103   :  { %1526 = vmatprep.mubr.bf16.mxu1 %v4510_v60  ;;  %v996_v60 = vunpack.c.h.bf16 %v6542_v9  ;;  %v6562_v9 = vld [vmem:[#allocation119_spill] sm:$0xff]  ;;  %v1020_v11 = vunpack.c.h.bf16 %v6617_v34 }
 0x104   :  { %2406 = vmatpush1.bf16.msk.msra.mxu0 %vm6537_vm14, %v6074_v0  ;;  %vm6558_vm14 = vnez %v6455_v16 }
 0x105   :  { %2470 = vmatpush1.bf16.msk.msra.mxu1 %vm6538_vm15, %v6074_v0  ;;  %2408 = vmatprep.subr.msk.bf16.mxu0 %vm6540_vm5, %v6074_v0  ;;  %v1044_v8 = vsub.f32 %v6553_v20, %v996_v60  ;;  %vm6560_vm15 = vnez %v6559_v17  ;;  %vm6561_vm5 = vnez %v6458_v12  ;;  %v6609_v12 = vld [vmem:[#allocation88_spill] sm:$0xff]  ;;  %v6613_v60 = vld [vmem:[#allocation99_spill] sm:$0xff] }
 0x106   :  { %2472 = vmatprep.subr.msk.bf16.mxu1 %vm6541_vm2, %v6074_v0  ;;  %vm6563_vm2 = vnez %v6010_v5  ;;  %v6579_v5 = vld [vmem:[#allocation42_spill] sm:$0xff]  ;;  %v1009_v39 = vunpack.c.h.bf16 %v6613_v60  ;;  %v6618_v20 = vld [vmem:[#allocation67_spill] sm:$0xff] }
 0x107   :  { %1454 = vmatmul.mubr.bf16.gmra.mxu0 %v6543_v43  ;;  %v1003_v43 = vunpack.c.l.bf16 %v6613_v60 }
 0x108   :  { %2410 = vmatpush1.bf16.msk.msra.mxu0 %vm6546_vm9, %v6074_v0  ;;  %1527 = vmatmul.mubr.bf16.gmra.mxu1 %v4304_v61  ;;  %v6554_v61 = vld [vmem:[#allocation53_spill] sm:$0xff]  ;;  %vm6564_vm9 = vnez %v6462_v50 }
 0x109   :  { %2474 = vmatpush1.bf16.msk.msra.mxu1 %vm6547_vm1, %v6074_v0  ;;  %2412 = vmatprep.subr.msk.bf16.mxu0 %vm6549_vm0, %v6074_v0  ;;  %v1040_v47 = vsub.f32 %v6554_v61, %v992_v41  ;;  %vm6565_vm1 = vnez %v6019_v10  ;;  %vm6566_vm0 = vnez %v6466_v53  ;;  %v6582_v10 = vld [vmem:[#allocation45_spill] sm:$0xff] }
 0x10a   :  { %2476 = vmatprep.subr.msk.bf16.mxu1 %vm6550_vm6, %v6074_v0  ;;  %1463 = vmatprep.mubr.bf16.mxu0 %v6551_v27  ;;  %vm6567_vm6 = vnez %v6028_v21  ;;  %v6585_v21 = vld [vmem:[#allocation47_spill] sm:$0xff]  ;;  %v1014_v27 = vunpack.c.l.bf16 %v6617_v34 }
 0x10b   :  { %1536 = vmatprep.mubr.bf16.mxu1 %v4559_v23  ;;  %v1086_v23 = vpack.c.bf16 %v1044_v8, %v1038_v63  ;;  %v1088_v52 = vpack.c.bf16 %v1046_v2, %v1040_v47  ;;  %v6619_v8 = vld [vmem:[#allocation66_spill] sm:$0xff]  ;;  %v6622_v2 = vld [vmem:[#allocation112_spill] sm:$0xff] }
 0x10c   :  { %2414 = vmatpush1.bf16.msk.msra.mxu0 %vm6557_vm10, %v6074_v0  ;;  %vm6568_vm10 = vnez %v6470_v26  ;;  %v6608_v26 = vld [vmem:[#allocation98_spill] sm:$0xff]  ;;  %v6620_v31 = vpack.c.bf16 %v6618_v20, %v6619_v8  ;;  %v1016_v22 = vunpack.c.l.bf16 %v6622_v2  ;;  %v1022_v17 = vunpack.c.h.bf16 %v6622_v2  ;;  %v6644_v20 = vld [vmem:[#allocation128_spill] sm:$0xff] }
 0x10d   :  { %2478 = vmatpush1.bf16.msk.msra.mxu1 %vm6558_vm14, %v6074_v0  ;;  %2416 = vmatprep.subr.msk.bf16.mxu0 %vm6560_vm15, %v6074_v0  ;;  %vm6569_vm14 = vnez %v6037_v30  ;;  %vm6570_vm15 = vnez %v6473_v54  ;;  %v6588_v30 = vld [vmem:[#allocation55_spill] sm:$0xff]  ;;  %v1001_v16 = vunpack.c.l.bf16 %v6608_v26  ;;  %v6610_v54 = vld [vmem:[#allocation89_spill] sm:$0xff]  ;;  %v1007_v35 = vunpack.c.h.bf16 %v6608_v26  ;;  %v6621_v47 = vld [vmem:[#allocation94_spill] sm:$0xff] }
 0x10e   :  { %2480 = vmatprep.subr.msk.bf16.mxu1 %vm6561_vm5, %v6074_v0  ;;  %vm6571_vm5 = vnez %v6046_v37  ;;  %v6591_v37 = vld [vmem:[#allocation59_spill] sm:$0xff]  ;;  %v6635_v26 = vld [vmem:[#allocation105_spill] sm:$0xff]  ;;  %v1026_v8 = vunpack.c.l.bf16 %v6644_v20 }
 0x10f   :  { %1464 = vmatmul.mubr.bf16.gmra.mxu0 %v6562_v9  ;;  %v1049_v42 = vsub.f32 %v6616_v1, %v1001_v16  ;;  %v1055_v62 = vsub.f32 %v6621_v47, %v1007_v35  ;;  %v6623_v9 = vld [vmem:[#allocation69_spill] sm:$0xff]  ;;  %v1064_v16 = vsub.f32 %v6635_v26, %v1016_v22  ;;  %v6642_v1 = vld [vmem:[#allocation107_spill] sm:$0xff] }
 0x110   :  { %2418 = vmatpush1.bf16.msk.msra.mxu0 %vm6563_vm2, %v6074_v0  ;;  %1537 = vmatmul.mubr.bf16.gmra.mxu1 %v4585_v48  ;;  %vm6572_vm2 = vnez %v6476_v44 }
 0x111   :  { %2482 = vmatpush1.bf16.msk.msra.mxu1 %vm6564_vm9, %v6074_v0  ;;  %2420 = vmatprep.subr.msk.bf16.mxu0 %vm6565_vm1, %v6074_v0  ;;  %vm6573_vm9 = vnez %v6055_v49  ;;  %vm6574_vm1 = vnez %v6479_v56  ;;  %v6594_v49 = vld [vmem:[#allocation61_spill] sm:$0xff]  ;;  %v6611_v56 = vld [vmem:[#allocation75_spill] sm:$0xff] }
 0x112   :  { %2484 = vmatprep.subr.msk.bf16.mxu1 %vm6566_vm0, %v6074_v0  ;;  %1579 = vmatprep.mubr.bf16.mxu0 %v1086_v23  ;;  %vm6575_vm0 = vnez %v6064_v59  ;;  %v6596_v59 = vld [vmem:[#allocation63_spill] sm:$0xff] }
 0x113   :  { %1652 = vmatprep.mubr.bf16.mxu1 %v1088_v52  ;;  %v6624_v52 = vld [vmem:[#allocation68_spill] sm:$0xff] }
 0x114   :  { %2422 = vmatpush1.bf16.msk.msra.mxu0 %vm6567_vm6, %v6074_v0  ;;  %vm6576_vm6 = vnez %v6482_v36  ;;  %v6600_v36 = vld [vmem:[#allocation90_spill] sm:$0xff] }
 0x115   :  { %2486 = vmatpush1.bf16.msk.msra.mxu1 %vm6568_vm10, %v6074_v0  ;;  %2424 = vmatprep.subr.msk.bf16.mxu0 %vm6569_vm14, %v6074_v0  ;;  %vm6577_vm10 = vnez %v6073_v6  ;;  %vm6578_vm14 = vnez %v6485_v33  ;;  %v6598_v6 = vld [vmem:[#allocation65_spill] sm:$0xff]  ;;  %v1008_v40 = vunpack.c.h.bf16 %v6600_v36  ;;  %v6602_v33 = vld [vmem:[#allocation71_spill] sm:$0xff] }
 0x116   :  { %2488 = vmatprep.subr.msk.bf16.mxu1 %vm6570_vm15, %v6074_v0  ;;  %vm6580_vm15 = vnez %v6579_v5  ;;  %v6625_v5 = vpack.c.bf16 %v6623_v9, %v6624_v52  ;;  %v6649_v52 = vld [vmem:[#allocation111_spill] sm:$0xff] }
 0x118   :  { %2426 = vmatpush2.bf16.msk.msra.mxu0 %vm6571_vm5, %v6074_v0  ;;  %vm6581_vm5 = vnez %v6488_v38  ;;  %v6607_v38 = vld [vmem:[#allocation87_spill] sm:$0xff] }
 0x119   :  { %2490 = vmatpush2.bf16.msk.msra.mxu1 %vm6572_vm2, %v6074_v0  ;;  %2428 = vmatprep.subr.msk.bf16.mxu0 %vm6573_vm9, %v6074_v0  ;;  %vm6583_vm2 = vnez %v6582_v10  ;;  %vm6584_vm9 = vnez %v6491_v7  ;;  %v1002_v7 = vunpack.c.l.bf16 %v6600_v36  ;;  %v1056_v53 = vsub.f32 %v6607_v38, %v1008_v40  ;;  %v6626_v10 = vld [vmem:[#allocation80_spill] sm:$0xff]  ;;  %v6630_v36 = vld [vmem:[#allocation81_spill] sm:$0xff] }
 0x11a   :  { %2492 = vmatprep.subr.msk.bf16.mxu1 %vm6574_vm1, %v6074_v0  ;;  %vm6586_vm1 = vnez %v6585_v21  ;;  %v6628_v21 = vld [vmem:[#allocation96_spill] sm:$0xff] }
 0x11b   :  { %v1050_v48 = vsub.f32 %v6606_v32, %v1002_v7  ;;  %v6632_v7 = vld [vmem:[#allocation113_spill] sm:$0xff] }
 0x11c   :  { %2430 = vmatpush2.bf16.msk.msra.mxu0 %vm6575_vm0, %v6074_v0  ;;  %vm6587_vm0 = vnez %v6494_v25  ;;  %v6601_v25 = vld [vmem:[#allocation92_spill] sm:$0xff]  ;;  %v1013_v40 = vunpack.c.l.bf16 %v6632_v7  ;;  %v1019_v32 = vunpack.c.h.bf16 %v6632_v7 }
 0x11d   :  { %2494 = vmatpush2.bf16.msk.msra.mxu1 %vm6576_vm6, %v6074_v0  ;;  %2432 = vmatprep.subr.msk.bf16.mxu0 %vm6577_vm10, %v6074_v0  ;;  %vm6589_vm6 = vnez %v6588_v30  ;;  %vm6590_vm10 = vnez %v6497_v15  ;;  %v1004_v15 = vunpack.c.l.bf16 %v6601_v25  ;;  %v1092_v41 = vpack.c.bf16 %v1056_v53, %v1050_v48 }
 0x11e   :  { %2496 = vmatprep.subr.msk.bf16.mxu1 %vm6578_vm14, %v6074_v0  ;;  %vm6592_vm14 = vnez %v6591_v37  ;;  %v1051_v30 = vsub.f32 %v6628_v21, %v1003_v43  ;;  %v6629_v37 = vld [vmem:[#allocation97_spill] sm:$0xff]  ;;  %v1091_v53 = vpack.c.bf16 %v1055_v62, %v1049_v42  ;;  %v1061_v42 = vsub.f32 %v6642_v1, %v1013_v40 }
 0x11f   :  { %v1052_v50 = vsub.f32 %v6609_v12, %v1004_v15  ;;  %v6633_v15 = vld [vmem:[#allocation103_spill] sm:$0xff]  ;;  %v6636_v12 = vld [vmem:[#allocation106_spill] sm:$0xff]  ;;  %v6645_v62 = vld [vmem:[#allocation129_spill] sm:$0xff] }
 0x120   :  { %2434 = vmatpush2.bf16.msk.msra.mxu0 %vm6580_vm15, %v6074_v0  ;;  %vm6593_vm15 = vnez %v6500_v24  ;;  %v1010_v24 = vunpack.c.h.bf16 %v6601_v25  ;;  %v1028_v2 = vunpack.c.l.bf16 %v6645_v62  ;;  %v1034_v22 = vunpack.c.h.bf16 %v6645_v62  ;;  %v6661_v1 = vld [vmem:[#allocation125_spill] sm:$0xff] }
 0x121   :  { %2498 = vmatpush2.bf16.msk.msra.mxu1 %vm6581_vm5, %v6074_v0  ;;  %2436 = vmatprep.subr.msk.bf16.mxu0 %vm6583_vm2, %v6074_v0  ;;  %vm6595_vm5 = vnez %v6594_v49  ;;  %vm6597_vm2 = vnez %v6596_v59  ;;  %v1057_v49 = vsub.f32 %v6629_v37, %v1009_v39  ;;  %v6652_v37 = vld [vmem:[#allocation120_spill] sm:$0xff] }
 0x122   :  { %2500 = vmatprep.subr.msk.bf16.mxu1 %vm6584_vm9, %v6074_v0  ;;  %vm6599_vm9 = vnez %v6598_v6  ;;  %v1058_v44 = vsub.f32 %v6610_v54, %v1010_v24  ;;  %v1062_v24 = vsub.f32 %v6633_v15, %v1014_v27 }
 0x123   :  { %v1093_v35 = vpack.c.bf16 %v1057_v49, %v1051_v30  ;;  %v1074_v49 = vsub.f32 %v6652_v37, %v1026_v8 }
 0x124   :  { %2438 = vmatpush2.bf16.msk.msra.mxu0 %vm6586_vm1, %v6074_v0  ;;  %v1094_v61 = vpack.c.bf16 %v1058_v44, %v1052_v50  ;;  %v1070_v50 = vsub.f32 %v6636_v12, %v1022_v17  ;;  %v6637_v44 = vld [vmem:[#allocation83_spill] sm:$0xff] }
 0x125   :  { %2502 = vmatpush2.bf16.msk.msra.mxu1 %vm6587_vm0, %v6074_v0  ;;  %2440 = vmatprep.subr.msk.bf16.mxu0 %vm6589_vm6, %v6074_v0  ;;  %vm6638_vm1 = vnez %v6637_v44  ;;  %v6646_v17 = vld [vmem:[#allocation91_spill] sm:$0xff] }
 0x126   :  { %2504 = vmatprep.subr.msk.bf16.mxu1 %vm6590_vm10, %v6074_v0  ;;  %v1100_v47 = vpack.c.bf16 %v1070_v50, %v1064_v16  ;;  %vm6647_vm6 = vnez %v6646_v17  ;;  %vm6650_vm10 = vnez %v6434_v55  ;;  %v6659_v50 = vld [vmem:[#allocation124_spill] sm:$0xff] }
 0x128   :  { %2442 = vmatpush2.bf16.msk.msra.mxu0 %vm6592_vm14, %v6074_v0  ;;  %vm6656_vm14 = vnez %v6259_v14 }
 0x129   :  { %2506 = vmatpush2.bf16.msk.msra.mxu1 %vm6593_vm15, %v6074_v0  ;;  %2444 = vmatprep.subr.msk.bf16.mxu0 %vm6595_vm5, %v6074_v0  ;;  %vm6658_vm15 = vnez %v6266_v4  ;;  %vm6663_vm5 = vnez %v6273_v18 }
 0x12a   :  { %2508 = vmatprep.subr.msk.bf16.mxu1 %vm6504_vm4, %v6074_v0  ;;  %vm6603_vm4 = vnez %v6602_v33  ;;  %v6634_v33 = vld [vmem:[#allocation104_spill] sm:$0xff] }
 0x12c   :  { %2446 = vmatpush2.bf16.msk.msra.mxu0 %vm6597_vm2, %v6074_v0  ;;  %v1143_v63 = vpop.f32.mrf.mxu0  ;;  %vm6666_vm2 = vnez %v6281_v45 }
 0x12d   :  { %2510 = vmatpush2.bf16.msk.msra.mxu1 %vm6507_vm11, %v6074_v0  ;;  %2448 = vmatprep.subr.msk.bf16.mxu0 %vm6599_vm9, %v6074_v0  ;;  %vm6605_vm11 = vnez %v6604_v13  ;;  %v1216_v23 = vpop.f32.mrf.mxu1  ;;  %v1068_v13 = vsub.f32 %v6634_v33, %v1020_v11  ;;  %v6643_v11 = vld [vmem:[#allocation109_spill] sm:$0xff]  ;;  %vm6671_vm9 = vnez %v6457_v29 }
 0x12e   :  { %2512 = vmatprep.subr.msk.bf16.mxu1 %vm6510_vm3, %v6074_v0  ;;  %v5027_v59 = vadd.f32 %v1216_v23, %v1143_v63  ;;  %v1145_v6 = vpop.f32.mrf.mxu0  ;;  %vm6631_vm3 = vnez %v6630_v36  ;;  %v1067_v63 = vsub.f32 %v6643_v11, %v1019_v32  ;;  %v6648_v23 = vld [vmem:[#allocation110_spill] sm:$0xff] }
 0x12f   :  { %v1218_v25 = vpop.f32.mrf.mxu1  ;;  %v1098_v27 = vpack.c.bf16 %v1068_v13, %v1062_v24  ;;  %v6655_v24 = vld [vmem:[#allocation123_spill] sm:$0xff] }
 0x130   :  { %2450 = vmatpush2.bf16.msk.msra.mxu0 %vm6603_vm4, %v6074_v0  ;;  %v5042_v48 = vadd.f32 %v1218_v25, %v1145_v6  ;;  %v1147_v38 = vpop.f32.mrf.mxu0  ;;  %v6653_v6 = vld [vmem:[#allocation121_spill] sm:$0xff]  ;;  %v1097_v40 = vpack.c.bf16 %v1067_v63, %v1061_v42  ;;  %v6654_v25 = vld [vmem:[#allocation122_spill] sm:$0xff]  ;;  %v1082_v33 = vsub.f32 %v6655_v24, %v1034_v22  ;;  %vm6672_vm4 = vnez %v6460_v58 }
 0x131   :  { %2514 = vmatpush2.bf16.msk.msra.mxu1 %vm6512_vm8, %v6074_v0  ;;  %2452 = vmatprep.subr.msk.bf16.mxu0 %vm6605_vm11, %v6074_v0  ;;  %vm6612_vm8 = vnez %v6611_v56  ;;  %v1220_v54 = vpop.f32.mrf.mxu1  ;;  %v6639_v56 = vld [vmem:[#allocation114_spill] sm:$0xff]  ;;  %v1076_v15 = vsub.f32 %v6654_v25, %v1028_v2  ;;  %v6667_v22 = vld [vmem:[#allocation133_spill] sm:$0xff]  ;;  %vm6673_vm11 = vnez %v6306_v57 }
 0x132   :  { %2516 = vmatprep.subr.msk.bf16.mxu1 %vm6514_vm7, %v6074_v0  ;;  %vm6615_vm7 = vnez %v6614_v46  ;;  %v1015_v60 = vunpack.c.l.bf16 %v6639_v56  ;;  %v1021_v43 = vunpack.c.h.bf16 %v6639_v56  ;;  %v5051_v39 = vadd.f32 %v1220_v54, %v1147_v38  ;;  %v1149_v46 = vpop.f32.mrf.mxu0 }
 0x133   :  { %v1222_v34 = vpop.f32.mrf.mxu1 }
 0x134   :  { %2454 = vmatpush2.bf16.msk.msra.mxu0 %vm6612_vm8, %v6074_v0  ;;  %v1063_v9 = vsub.f32 %v6648_v23, %v1015_v60  ;;  %v6660_v60 = vld [vmem:[#allocation136_spill] sm:$0xff]  ;;  %v6668_v23 = vld [vmem:[#allocation134_spill] sm:$0xff]  ;;  %vm6674_vm8 = vnez %v6310_v3 }
 0x135   :  { %2518 = vmatpush2.bf16.msk.msra.mxu1 %vm6516_vm13, %v6074_v0  ;;  %2520 = vmatprep.subr.msk.bf16.mxu0 %vm6615_vm7, %v6074_v0  ;;  %vm6627_vm13 = vnez %v6626_v10  ;;  %v6651_v10 = vld [vmem:[#allocation130_spill] sm:$0xff]  ;;  %v1000_v14 = vunpack.c.h.bf16 %v6660_v60 }
 0x136   :  { %2583 = vmatprep.subr.msk.bf16.mxu1 %vm6615_vm7, %v6074_v0  ;;  %v1025_v21 = vunpack.c.l.bf16 %v6651_v10  ;;  %v1031_v13 = vunpack.c.h.bf16 %v6651_v10  ;;  %v6669_v10 = vld [vmem:[#allocation48_spill] sm:$0xff]  ;;  %vm6675_vm7 = vnez %v6323_v51 }
 0x137   :  { %1580 = vmatmul.mubr.bf16.vlgmr.msra.gmra.mxu0 %v6620_v31  ;;  %v1032_v31 = vunpack.c.h.bf16 %v6644_v20  ;;  %v6664_v20 = vld [vmem:[#allocation126_spill] sm:$0xff] }
 0x138   :  { %1653 = vmatmul.mubr.bf16.vlgmr.msra.gmra.mxu1 %v6625_v5  ;;  %2522 = vmatpush1.bf16.msk.msra.mxu0 %vm6627_vm13, %v6074_v0  ;;  %v1069_v5 = vsub.f32 %v6649_v52, %v1021_v43  ;;  %v1073_v54 = vsub.f32 %v6659_v50, %v1025_v21  ;;  %v994_v43 = vunpack.c.l.bf16 %v6660_v60  ;;  %v1079_v42 = vsub.f32 %v6661_v1, %v1031_v13  ;;  %v6684_v60 = vld [vmem:[#allocation138_spill] sm:$0xff]  ;;  %v6694_v1 = vld [vmem:[#allocation145_spill] sm:$0xff] }
 0x139   :  { %2599 = vmatpush1.bf16.msk.msra.mxu1 %vm6627_vm13, %v6074_v0  ;;  %2524 = vmatprep.subr.msk.bf16.mxu0 %vm6631_vm3, %v6074_v0  ;;  %v1080_v36 = vsub.f32 %v6653_v6, %v1032_v31  ;;  %v6665_v31 = vld [vmem:[#allocation127_spill] sm:$0xff]  ;;  %vm6676_vm13 = vnez %v6330_v19 }
 0x13a   :  { %2584 = vmatprep.subr.msk.bf16.mxu1 %vm6631_vm3, %v6074_v0  ;;  %1589 = vmatprep.mubr.bf16.mxu0 %v1092_v41  ;;  %v6640_v41 = vld [vmem:[#allocation86_spill] sm:$0xff]  ;;  %v1099_v38 = vpack.c.bf16 %v1069_v5, %v1063_v9  ;;  %v1042_v17 = vsub.f32 %v6667_v22, %v994_v43  ;;  %v1048_v9 = vsub.f32 %v6668_v23, %v1000_v14  ;;  %v6686_v43 = vld [vmem:[#allocation139_spill] sm:$0xff]  ;;  %v6688_v14 = vld [vmem:[#allocation140_spill] sm:$0xff] }
 0x13b   :  { %1662 = vmatprep.mubr.bf16.mxu1 %v1094_v61  ;;  %vm6641_vm0 = vnez %v6640_v41  ;;  %v5066_v61 = vadd.f32 %v1222_v34, %v1149_v46  ;;  %v1153_v30 = vpop.f32.mrf.mxu0  ;;  %v1226_v7 = vpop.f32.mrf.mxu1  ;;  %v1104_v56 = vpack.c.bf16 %v1080_v36, %v1074_v49  ;;  %v1106_v41 = vpack.c.bf16 %v1082_v33, %v1076_v15  ;;  %v6662_v34 = vld [vmem:[#allocation77_spill] sm:$0xff] }
 0x13c   :  { %2526 = vmatpush1.bf16.msk.msra.mxu0 %vm6638_vm1, %v6074_v0  ;;  %v5093_v55 = vadd.f32 %v1226_v7, %v1153_v30  ;;  %v1024_v11 = vunpack.c.h.bf16 %v6662_v34  ;;  %v1103_v18 = vpack.c.bf16 %v1079_v42, %v1073_v54  ;;  %v6670_v30 = vld [vmem:[#allocation11_spill] sm:$0xff]  ;;  %vm6677_vm3 = vnez %v6333_v28  ;;  %v6682_v28 = vld [vmem:[#allocation137_spill] sm:$0xff] }
 0x13d   :  { %2600 = vmatpush1.bf16.msk.msra.mxu1 %vm6638_vm1, %v6074_v0  ;;  %2528 = vmatprep.subr.msk.bf16.mxu0 %vm6641_vm0, %v6074_v0  ;;  %v1155_v32 = vpop.f32.mrf.mxu0  ;;  %v1228_v12 = vpop.f32.mrf.mxu1  ;;  %v6696_v42 = vld [vmem:[#allocation155_spill] sm:$0xff] }
 0x13e   :  { %2585 = vmatprep.subr.msk.bf16.mxu1 %vm6641_vm0, %v6074_v0  ;;  %v5107_v44 = vadd.f32 %v1228_v12, %v1155_v32  ;;  %v1072_v37 = vsub.f32 %v6670_v30, %v1024_v11  ;;  %v6678_v12 = vld [vmem:[#allocation132_spill] sm:$0xff]  ;;  %v6697_v11 = vld [vmem:[#allocation146_spill] sm:$0xff] }
 0x13f   :  { %1590 = vmatmul.mubr.bf16.gmra.mxu0 %v1091_v53  ;;  %v6657_v53 = vld [vmem:[#allocation131_spill] sm:$0xff]  ;;  %v1230_v46 = vpop.f32.mrf.mxu1  ;;  %vm6679_vm1 = vnez %v6678_v12  ;;  %v6716_v12 = vld [vmem:[#allocation156_spill] sm:$0xff] }
 0x140   :  { %2530 = vmatpush1.bf16.msk.msra.mxu0 %vm6647_vm6, %v6074_v0  ;;  %1663 = vmatmul.mubr.bf16.gmra.mxu1 %v1093_v35  ;;  %v1027_v26 = vunpack.c.l.bf16 %v6657_v53  ;;  %v1033_v16 = vunpack.c.h.bf16 %v6657_v53  ;;  %v1157_v35 = vpop.f32.mrf.mxu0 }
 0x141   :  { %2601 = vmatpush1.bf16.msk.msra.mxu1 %vm6647_vm6, %v6074_v0  ;;  %2532 = vmatprep.subr.msk.bf16.mxu0 %vm6650_vm10, %v6074_v0  ;;  %v5117_v4 = vadd.f32 %v1230_v46, %v1157_v35  ;;  %v1232_v62 = vpop.f32.mrf.mxu1  ;;  %vm6683_vm6 = vnez %v6682_v28  ;;  %v6690_v46 = vld [vmem:[#allocation141_spill] sm:$0xff] }
 0x142   :  { %2586 = vmatprep.subr.msk.bf16.mxu1 %vm6650_vm10, %v6074_v0  ;;  %1599 = vmatprep.mubr.bf16.mxu0 %v1098_v27  ;;  %v1018_v27 = vunpack.c.l.bf16 %v6662_v34  ;;  %v1159_v63 = vpop.f32.mrf.mxu0  ;;  %v1075_v8 = vsub.f32 %v6664_v20, %v1027_v26  ;;  %vm6685_vm10 = vnez %v6684_v60  ;;  %v993_v34 = vunpack.c.l.bf16 %v6696_v42 }
 0x143   :  { %1672 = vmatprep.mubr.bf16.mxu1 %v1100_v47  ;;  %v1081_v47 = vsub.f32 %v6665_v31, %v1033_v16  ;;  %v5130_v2 = vadd.f32 %v1232_v62, %v1159_v63  ;;  %v6699_v63 = vld [vmem:[#allocation10_spill] sm:$0xff]  ;;  %v6700_v31 = vld [vmem:[#allocation147_spill] sm:$0xff] }
 0x144   :  { %2534 = vmatpush1.bf16.msk.msra.mxu0 %vm6656_vm14, %v6074_v0  ;;  %v1066_v21 = vsub.f32 %v6669_v10, %v1018_v27  ;;  %v999_v27 = vunpack.c.h.bf16 %v6696_v42  ;;  %v1006_v20 = vunpack.c.l.bf16 %v6699_v63  ;;  %v6722_v42 = vld [vmem:[#allocation21_spill] sm:$0xff] }
 0x145   :  { %2602 = vmatpush1.bf16.msk.msra.mxu1 %vm6656_vm14, %v6074_v0  ;;  %2536 = vmatprep.subr.msk.bf16.mxu0 %vm6658_vm15, %v6074_v0  ;;  %v1105_v49 = vpack.c.bf16 %v1081_v47, %v1075_v8  ;;  %vm6687_vm14 = vnez %v6686_v43  ;;  %v1012_v8 = vunpack.c.h.bf16 %v6699_v63  ;;  %v6702_v47 = vld [vmem:[#allocation19_spill] sm:$0xff] }
 0x146   :  { %2587 = vmatprep.subr.msk.bf16.mxu1 %vm6658_vm15, %v6074_v0  ;;  %v1102_v24 = vpack.c.bf16 %v1072_v37, %v1066_v21  ;;  %vm6689_vm15 = vnez %v6688_v14  ;;  %v1030_v62 = vunpack.c.l.bf16 %v6702_v47  ;;  %v1036_v22 = vunpack.c.h.bf16 %v6702_v47  ;;  %v6707_v21 = vld [vmem:[#allocation154_spill] sm:$0xff]  ;;  %v6708_v37 = vld [vmem:[#allocation149_spill] sm:$0xff]  ;;  %v6718_v43 = vld [vmem:[#allocation143_spill] sm:$0xff] }
 0x147   :  { %1600 = vmatmul.mubr.bf16.gmra.mxu0 %v1097_v40  ;;  %v1163_v52 = vpop.f32.mrf.mxu0  ;;  %v1090_v40 = vpack.c.bf16 %v1048_v9, %v1042_v17  ;;  %v6703_v17 = vld [vmem:[#allocation150_spill] sm:$0xff]  ;;  %v6704_v9 = vld [vmem:[#allocation151_spill] sm:$0xff]  ;;  %v1060_v30 = vsub.f32 %v6707_v21, %v1012_v8 }
 0x148   :  { %2538 = vmatpush1.bf16.msk.msra.mxu0 %vm6663_vm5, %v6074_v0  ;;  %1673 = vmatmul.mubr.bf16.gmra.mxu1 %v1099_v38  ;;  %v1236_v5 = vpop.f32.mrf.mxu1  ;;  %v1041_v23 = vsub.f32 %v6703_v17, %v993_v34  ;;  %v6719_v14 = vld [vmem:[#allocation142_spill] sm:$0xff] }
 0x149   :  { %2603 = vmatpush1.bf16.msk.msra.mxu1 %vm6663_vm5, %v6074_v0  ;;  %2540 = vmatprep.subr.msk.bf16.mxu0 %vm6666_vm2, %v6074_v0  ;;  %v5139_v45 = vadd.f32 %v1236_v5, %v1163_v52  ;;  %v1165_v6 = vpop.f32.mrf.mxu0  ;;  %vm6691_vm5 = vnez %v6690_v46  ;;  %v1047_v52 = vsub.f32 %v6704_v9, %v999_v27  ;;  %v6720_v46 = vpack.c.bf16 %v6718_v43, %v6719_v14 }
 0x14a   :  { %2588 = vmatprep.subr.msk.bf16.mxu1 %vm6666_vm2, %v6074_v0  ;;  %1609 = vmatprep.mubr.bf16.mxu0 %v1104_v56  ;;  %v1238_v36 = vpop.f32.mrf.mxu1  ;;  %v6680_v56 = vld [vmem:[#allocation135_spill] sm:$0xff] }
 0x14b   :  { %1682 = vmatprep.mubr.bf16.mxu1 %v1106_v41  ;;  %v5150_v7 = vadd.f32 %v1238_v36, %v1165_v6  ;;  %v1167_v25 = vpop.f32.mrf.mxu0  ;;  %vm6681_vm0 = vnez %v6680_v56  ;;  %v6692_v41 = vld [vmem:[#allocation144_spill] sm:$0xff]  ;;  %v6711_v36 = vld [vmem:[#allocation17_spill] sm:$0xff] }
 0x14c   :  { %2542 = vmatpush1.bf16.msk.msra.mxu0 %vm6671_vm9, %v6074_v0  ;;  %v1240_v15 = vpop.f32.mrf.mxu1  ;;  %vm6693_vm2 = vnez %v6692_v41  ;;  %v6721_v41 = vld [vmem:[#allocation84_spill] sm:$0xff] }
 0x14d   :  { %2604 = vmatpush1.bf16.msk.msra.mxu1 %vm6671_vm9, %v6074_v0  ;;  %2544 = vmatprep.subr.msk.bf16.mxu0 %vm6672_vm4, %v6074_v0  ;;  %v5155_v29 = vadd.f32 %v1240_v15, %v1167_v25  ;;  %v1169_v58 = vpop.f32.mrf.mxu0  ;;  %vm6695_vm9 = vnez %v6694_v1  ;;  %v1089_v25 = vpack.c.bf16 %v1047_v52, %v1041_v23  ;;  %v6712_v15 = vld [vmem:[#allocation13_spill] sm:$0xff] }
 0x14e   :  { %2589 = vmatprep.subr.msk.bf16.mxu1 %vm6672_vm4, %v6074_v0  ;;  %v1242_v33 = vpop.f32.mrf.mxu1  ;;  %vm6698_vm4 = vnez %v6697_v11 }
 0x14f   :  { %1610 = vmatmul.mubr.bf16.gmra.mxu0 %v1103_v18  ;;  %v5166_v13 = vadd.f32 %v1242_v33, %v1169_v58  ;;  %v6706_v18 = vld [vmem:[#allocation153_spill] sm:$0xff]  ;;  %v1011_v58 = vunpack.c.h.bf16 %v6712_v15  ;;  %v6713_v33 = vld [vmem:[#allocation152_spill] sm:$0xff] }
 0x150   :  { %2546 = vmatpush1.bf16.msk.msra.mxu0 %vm6673_vm11, %v6074_v0  ;;  %1683 = vmatmul.mubr.bf16.gmra.mxu1 %v1105_v49  ;;  %v1054_v10 = vsub.f32 %v6706_v18, %v1006_v20  ;;  %v6710_v49 = vld [vmem:[#allocation15_spill] sm:$0xff] }
 0x151   :  { %2605 = vmatpush1.bf16.msk.msra.mxu1 %vm6673_vm11, %v6074_v0  ;;  %2548 = vmatprep.subr.msk.bf16.mxu0 %vm6674_vm8, %v6074_v0  ;;  %vm6701_vm11 = vnez %v6700_v31  ;;  %v1078_v6 = vsub.f32 %v6710_v49, %v1030_v62 }
 0x152   :  { %2590 = vmatprep.subr.msk.bf16.mxu1 %vm6674_vm8, %v6074_v0  ;;  %1725 = vmatprep.mubr.bf16.mxu0 %v1090_v40  ;;  %v1173_v32 = vpop.f32.mrf.mxu0  ;;  %vm6709_vm8 = vnez %v6708_v37  ;;  %v1084_v40 = vsub.f32 %v6711_v36, %v1036_v22 }
 0x153   :  { %1745 = vmatprep.mubr.bf16.mxu1 %v1102_v24  ;;  %v1246_v57 = vpop.f32.mrf.mxu1  ;;  %v1005_v24 = vunpack.c.l.bf16 %v6712_v15 }
 0x154   :  { %2550 = vmatpush1.bf16.msk.msra.mxu0 %vm6675_vm7, %v6074_v0  ;;  %v5177_v3 = vadd.f32 %v1246_v57, %v1173_v32  ;;  %v1175_v38 = vpop.f32.mrf.mxu0  ;;  %v1096_v32 = vpack.c.bf16 %v1060_v30, %v1054_v10  ;;  %v6715_v57 = vld [vmem:[#allocation95_spill] sm:$0xff] }
 0x155   :  { %2606 = vmatpush1.bf16.msk.msra.mxu1 %vm6675_vm7, %v6074_v0  ;;  %2552 = vmatprep.subr.msk.bf16.mxu0 %vm6676_vm13, %v6074_v0  ;;  %v1248_v53 = vpop.f32.mrf.mxu1 }
 0x156   :  { %2591 = vmatprep.subr.msk.bf16.mxu1 %vm6676_vm13, %v6074_v0  ;;  %v5182_v26 = vadd.f32 %v1248_v53, %v1175_v38  ;;  %v1177_v16 = vpop.f32.mrf.mxu0  ;;  %v1029_v38 = vunpack.c.l.bf16 %v6715_v57  ;;  %v1035_v53 = vunpack.c.h.bf16 %v6715_v57 }
 0x157   :  { %v1250_v51 = vpop.f32.mrf.mxu1 }
 0x158   :  { %2554 = vmatpush2.bf16.msk.msra.mxu0 %vm6677_vm3, %v6074_v0  ;;  %v5193_v50 = vadd.f32 %v1250_v51, %v1177_v16  ;;  %v1179_v19 = vpop.f32.mrf.mxu0  ;;  %v1108_v16 = vpack.c.bf16 %v1084_v40, %v1078_v6  ;;  %v1077_v1 = vsub.f32 %v6721_v41, %v1029_v38  ;;  %v1083_v34 = vsub.f32 %v6722_v42, %v1035_v53 }
 0x159   :  { %2607 = vmatpush2.bf16.msk.msra.mxu1 %vm6677_vm3, %v6074_v0  ;;  %2556 = vmatprep.subr.msk.bf16.mxu0 %vm6679_vm1, %v6074_v0  ;;  %v1252_v54 = vpop.f32.mrf.mxu1 }
 0x15a   :  { %2592 = vmatprep.subr.msk.bf16.mxu1 %vm6679_vm1, %v6074_v0  ;;  %v5198_v35 = vadd.f32 %v1252_v54, %v1179_v19  ;;  %v1053_v19 = vsub.f32 %v6716_v12, %v1005_v24  ;;  %v6717_v54 = vld [vmem:[#allocation157_spill] sm:$0xff]  ;;  %v1107_v62 = vpack.c.bf16 %v1083_v34, %v1077_v1 }
 0x15b   :  { %v1059_v56 = vsub.f32 %v6717_v54, %v1011_v58 }
 0x15c   :  { %2558 = vmatpush2.bf16.msk.msra.mxu0 %vm6681_vm0, %v6074_v0 }
 0x15d   :  { %2608 = vmatpush2.bf16.msk.msra.mxu1 %vm6681_vm0, %v6074_v0  ;;  %2560 = vmatprep.subr.msk.bf16.mxu0 %vm6683_vm6, %v6074_v0  ;;  %v1095_v8 = vpack.c.bf16 %v1059_v56, %v1053_v19 }
 0x15e   :  { %2593 = vmatprep.subr.msk.bf16.mxu1 %vm6683_vm6, %v6074_v0 }
 0x160   :  { %2562 = vmatpush2.bf16.msk.msra.mxu0 %vm6685_vm10, %v6074_v0 }
 0x161   :  { %2609 = vmatpush2.bf16.msk.msra.mxu1 %vm6685_vm10, %v6074_v0  ;;  %2564 = vmatprep.subr.msk.bf16.mxu0 %vm6687_vm14, %v6074_v0 }
 0x162   :  { %2594 = vmatprep.subr.msk.bf16.mxu1 %vm6687_vm14, %v6074_v0 }
 0x164   :  { %2566 = vmatpush2.bf16.msk.msra.mxu0 %vm6689_vm15, %v6074_v0 }
 0x165   :  { %2610 = vmatpush2.bf16.msk.msra.mxu1 %vm6689_vm15, %v6074_v0  ;;  %2568 = vmatprep.subr.msk.bf16.mxu0 %vm6691_vm5, %v6074_v0 }
 0x166   :  { %2595 = vmatprep.subr.msk.bf16.mxu1 %vm6691_vm5, %v6074_v0 }
 0x168   :  { %2570 = vmatpush2.bf16.msk.msra.mxu0 %vm6693_vm2, %v6074_v0 }
 0x169   :  { %2611 = vmatpush2.bf16.msk.msra.mxu1 %vm6693_vm2, %v6074_v0  ;;  %2572 = vmatprep.subr.msk.bf16.mxu0 %vm6695_vm9, %v6074_v0 }
 0x16a   :  { %2596 = vmatprep.subr.msk.bf16.mxu1 %vm6695_vm9, %v6074_v0 }
 0x16c   :  { %2574 = vmatpush2.bf16.msk.msra.mxu0 %vm6698_vm4, %v6074_v0 }
 0x16d   :  { %2612 = vmatpush2.bf16.msk.msra.mxu1 %vm6698_vm4, %v6074_v0  ;;  %2576 = vmatprep.subr.msk.bf16.mxu0 %vm6701_vm11, %v6074_v0 }
 0x16e   :  { %2597 = vmatprep.subr.msk.bf16.mxu1 %vm6701_vm11, %v6074_v0 }
 0x170   :  { %2578 = vmatpush2.bf16.msk.msra.mxu0 %vm4469_vm12, %v6074_v0 }
 0x171   :  { %2613 = vmatpush2.bf16.msk.msra.mxu1 %vm4469_vm12, %v6074_v0  ;;  %2580 = vmatprep.subr.msk.bf16.mxu0 %vm6709_vm8, %v6074_v0  ;;  %vm6714_vm12 = vnez %v6713_v33 }
 0x172   :  { %2598 = vmatprep.subr.msk.bf16.mxu1 %vm6709_vm8, %v6074_v0 }
 0x174   :  { %2582 = vmatpush2.bf16.msk.msra.mxu0 %vm6714_vm12, %v6074_v0 }
 0x175   :  { %2614 = vmatpush2.bf16.msk.msra.mxu1 %vm6714_vm12, %v6074_v0 }
 0x177   :  { %v1289_v51 = vpop.f32.mrf.mxu0  ;;  %1726 = vmatmul.mubr.bf16.vlgmr.msra.gmra.mxu0 %v1089_v25 }
 0x178   :  { %v1290_v28 = vadd.f32 %v1289_v51, %v5027_v59  ;;  %v1362_v60 = vpop.f32.mrf.mxu1  ;;  %1746 = vmatmul.mubr.bf16.vlgmr.msra.gmra.mxu1 %v6720_v46  ;;  %1735 = vmatprep.mubr.bf16.mxu0 %v1096_v32 }
 0x179   :  { %v1291_v0 = vpop.f32.mrf.mxu0  ;;  %1755 = vmatprep.mubr.bf16.mxu1 %v1108_v16 }
 0x17a   :  { %v5302_v27 = vadd.f32 %v1362_v60, %v1290_v28  ;;  %v1292_v11 = vadd.f32 %v1291_v0, %v5042_v48  ;;  %v1364_v63 = vpop.f32.mrf.mxu1 }
 0x17b   :  { %v1293_v20 = vpop.f32.mrf.mxu0 }
 0x17c   :  { %v5305_v59 = vadd.f32 %v1364_v63, %v1292_v11  ;;  %v1294_v31 = vadd.f32 %v1293_v20, %v5051_v39  ;;  %v1366_v47 = vpop.f32.mrf.mxu1 }
 0x17d   :  { %v1295_v22 = vpop.f32.mrf.mxu0 }
 0x17e   :  { %v5308_v17 = vadd.f32 %v1366_v47, %v1294_v31  ;;  %v1296_v23 = vadd.f32 %v1295_v22, %v5066_v61  ;;  %v1368_v9 = vpop.f32.mrf.mxu1 }
 0x17f   :  { %v1299_v52 = vpop.f32.mrf.mxu0  ;;  %1736 = vmatmul.mubr.bf16.gmra.mxu0 %v1095_v8 }
 0x180   :  { %v5311_v5 = vadd.f32 %v1368_v9, %v1296_v23  ;;  %v1300_v48 = vadd.f32 %v1299_v52, %v5093_v55  ;;  %1756 = vmatmul.mubr.bf16.gmra.mxu1 %v1107_v62  ;;  %v1372_v18 = vpop.f32.mrf.mxu1 }
 0x181   :  { %v1301_v10 = vpop.f32.mrf.mxu0 }
 0x182   :  { %v1302_v21 = vadd.f32 %v1301_v10, %v5107_v44  ;;  %v5315_v39 = vadd.f32 %v1372_v18, %v1300_v48  ;;  %v1374_v30 = vpop.f32.mrf.mxu1 }
 0x183   :  { %v1303_v37 = vpop.f32.mrf.mxu0 }
 0x184   :  { %v1304_v49 = vadd.f32 %v1303_v37, %v5117_v4  ;;  %v5318_v6 = vadd.f32 %v1374_v30, %v1302_v21  ;;  %v1376_v61 = vpop.f32.mrf.mxu1 }
 0x185   :  { %v1305_v36 = vpop.f32.mrf.mxu0 }
 0x186   :  { %v1306_v40 = vadd.f32 %v1305_v36, %v5130_v2  ;;  %v5321_v25 = vadd.f32 %v1376_v61, %v1304_v49  ;;  %v1378_v55 = vpop.f32.mrf.mxu1 }
 0x187   :  { %v1309_v15 = vpop.f32.mrf.mxu0 }
 0x188   :  { %v1310_v24 = vadd.f32 %v1309_v15, %v5139_v45  ;;  %v5324_v58 = vadd.f32 %v1378_v55, %v1306_v40  ;;  %v1382_v44 = vpop.f32.mrf.mxu1 }
 0x189   :  { %v1311_v33 = vpop.f32.mrf.mxu0 }
 0x18a   :  { %v1312_v32 = vadd.f32 %v1311_v33, %v5150_v7  ;;  %v5327_v57 = vadd.f32 %v1382_v44, %v1310_v24  ;;  %v1384_v4 = vpop.f32.mrf.mxu1 }
 0x18b   :  { %v1313_v38 = vpop.f32.mrf.mxu0 }
 0x18c   :  { %v1314_v53 = vadd.f32 %v1313_v38, %v5155_v29  ;;  %v5330_v16 = vadd.f32 %v1384_v4, %v1312_v32  ;;  %v1386_v2 = vpop.f32.mrf.mxu1 }
 0x18d   :  { %v1315_v51 = vpop.f32.mrf.mxu0 }
 0x18e   :  { %v1316_v12 = vadd.f32 %v1315_v51, %v5166_v13  ;;  %v5333_v19 = vadd.f32 %v1386_v2, %v1314_v53  ;;  %v1388_v45 = vpop.f32.mrf.mxu1 }
 0x18f   :  { %v1319_v54 = vpop.f32.mrf.mxu0 }
 0x190   :  { %v1320_v56 = vadd.f32 %v1319_v54, %v5177_v3  ;;  %v5336_v28 = vadd.f32 %v1388_v45, %v1316_v12  ;;  %v1392_v7 = vpop.f32.mrf.mxu1 }
 0x191   :  { %v1321_v60 = vpop.f32.mrf.mxu0 }
 0x192   :  { %v1322_v43 = vadd.f32 %v1321_v60, %v5182_v26  ;;  %v5339_v14 = vadd.f32 %v1392_v7, %v1320_v56  ;;  %v1394_v29 = vpop.f32.mrf.mxu1 }
 0x193   :  { %v1323_v46 = vpop.f32.mrf.mxu0 }
 0x194   :  { %v1324_v41 = vadd.f32 %v1323_v46, %v5193_v50  ;;  %v5342_v1 = vadd.f32 %v1394_v29, %v1322_v43  ;;  %v1396_v13 = vpop.f32.mrf.mxu1 }
 0x195   :  { %v1325_v42 = vpop.f32.mrf.mxu0 }
 0x196   :  { %v1326_v34 = vadd.f32 %v1325_v42, %v5198_v35  ;;  %v5345_v0 = vadd.f32 %v1396_v13, %v1324_v41  ;;  %v1398_v3 = vpop.f32.mrf.mxu1 }
 0x198   :  { %6723 = vst [vmem:[#allocation100_spill] sm:$0xff] %v5345_v0  ;;  %v5347_v11 = vadd.f32 %v1398_v3, %v1326_v34 }
 0x19a   :  { %6724 = vst [vmem:[#allocation23_spill] sm:$0xff] %v5347_v11 }
 0x1b7   :  { %v1435_v63 = vpop.f32.mrf.mxu0 }
 0x1b8   :  { %v5349_v20 = vpop.f32.mrf.mxu1 }
 0x1b9   :  { %v1437_v26 = vpop.f32.mrf.mxu0 }
 0x1ba   :  { %v5351_v8 = vpop.f32.mrf.mxu1 }
 0x1bb   :  { %v1439_v31 = vpop.f32.mrf.mxu0 }
 0x1bc   :  { %v5353_v47 = vpop.f32.mrf.mxu1 }
 0x1bd   :  { %v1441_v50 = vpop.f32.mrf.mxu0 }
 0x1be   :  { %v5355_v62 = vpop.f32.mrf.mxu1 }
 0x1bf   :  { %v1445_v22 = vpop.f32.mrf.mxu0 }
 0x1c0   :  { %v5357_v23 = vpop.f32.mrf.mxu1 }
 0x1c1   :  { %v1447_v35 = vpop.f32.mrf.mxu0 }
 0x1c2   :  { %v5359_v9 = vpop.f32.mrf.mxu1 }
 0x1c3   :  { %v5361_v52 = vpop.f32.mrf.mxu0 }
 0x1c4   :  { %v5363_v48 = vpop.f32.mrf.mxu1 }
 0x1c5   :  { %6725 = vst [vmem:[#allocation25_spill] sm:$0xff] %v5363_v48  ;;  %v5365_v18 = vpop.f32.mrf.mxu0 }
 0x1c6   :  { %v5367_v10 = vpop.f32.mrf.mxu1 }
 0x1c7   :  { %6726 = vst [vmem:[#allocation27_spill] sm:$0xff] %v5367_v10  ;;  %v1455_v21 = vpop.f32.mrf.mxu0 }
 0x1c8   :  { %v5369_v30 = vpop.f32.mrf.mxu1 }
 0x1c9   :  { %v1457_v37 = vpop.f32.mrf.mxu0 }
 0x1ca   :  { %v5371_v49 = vpop.f32.mrf.mxu1 }
 0x1cb   :  { %v5373_v61 = vpop.f32.mrf.mxu0 }
 0x1cc   :  { %v5375_v36 = vpop.f32.mrf.mxu1 }
 0x1cd   :  { %v5377_v40 = vpop.f32.mrf.mxu0 }
 0x1ce   :  { %v5379_v55 = vpop.f32.mrf.mxu1 }
 0x1cf   :  { %6727 = vst [vmem:[#allocation29_spill] sm:$0xff] %v5379_v55  ;;  %v5381_v15 = vpop.f32.mrf.mxu0 }
 0x1d0   :  { %v5383_v24 = vpop.f32.mrf.mxu1 }
 0x1d1   :  { %6728 = vst [vmem:[#allocation31_spill] sm:$0xff] %v5383_v24  ;;  %v5385_v44 = vpop.f32.mrf.mxu0  ;;  %v1440_v24 = vadd.f32 %v1439_v31, %v5308_v17  ;;  %v1458_v17 = vadd.f32 %v1457_v37, %v5330_v16  ;;  %v5457_v16 = vadd.f32 %v5365_v18, %v5324_v58  ;;  %v1462_v58 = vadd.f32 %v5377_v40, %v5336_v28 }
 0x1d2   :  { %v5387_v33 = vpop.f32.mrf.mxu1  ;;  %v1468_v40 = vadd.f32 %v5385_v44, %v5342_v1 }
 0x1d3   :  { %6729 = vst [vmem:[#allocation115_spill] sm:$0xff] %v5387_v33  ;;  %v5389_v32 = vpop.f32.mrf.mxu0 }
 0x1d4   :  { %6730 = vst [vmem:[#allocation33_spill] sm:$0xff] %v5389_v32  ;;  %v5391_v4 = vpop.f32.mrf.mxu1 }
 0x1d5   :  { %6731 = vst [vmem:[#allocation116_spill] sm:$0xff] %v5391_v4  ;;  %v5393_v38 = vpop.f32.mrf.mxu0 }
 0x1d6   :  { %6732 = vst [vmem:[#allocation34_spill] sm:$0xff] %v5393_v38  ;;  %v5395_v53 = vpop.f32.mrf.mxu1 }
 0x1d7   :  { %6733 = vst [vmem:[#allocation118_spill] sm:$0xff] %v5395_v53 }
 0x1f7   :  { %v1581_v2 = vpop.f32.mrf.mxu0 }
 0x1f8   :  { %v1654_v51 = vpop.f32.mrf.mxu1 }
 0x1f9   :  { %v1583_v12 = vpop.f32.mrf.mxu0 }
 0x1fa   :  { %v1656_v45 = vpop.f32.mrf.mxu1 }
 0x1fb   :  { %v1585_v54 = vpop.f32.mrf.mxu0  ;;  %v1657_v31 = vadd.f32 %v1656_v45, %v1583_v12 }
 0x1fc   :  { %v1658_v56 = vpop.f32.mrf.mxu1 }
 0x1fd   :  { %v5397_v7 = vpop.f32.mrf.mxu0 }
 0x1fe   :  { %v5399_v60 = vpop.f32.mrf.mxu1 }
 0x1ff   :  { %v5401_v43 = vpop.f32.mrf.mxu0 }
 0x200   :  { %6734 = vst [vmem:[#allocation35_spill] sm:$0xff] %v5401_v43  ;;  %v5403_v29 = vpop.f32.mrf.mxu1 }
 0x201   :  { %6735 = vst [vmem:[#allocation44_spill] sm:$0xff] %v5403_v29  ;;  %v5405_v46 = vpop.f32.mrf.mxu0  ;;  %v1442_v29 = vadd.f32 %v1441_v50, %v5311_v5 }
 0x202   :  { %6736 = vst [vmem:[#allocation36_spill] sm:$0xff] %v5405_v46  ;;  %v5407_v41 = vpop.f32.mrf.mxu1 }
 0x203   :  { %6737 = vst [vmem:[#allocation37_spill] sm:$0xff] %v5407_v41  ;;  %v5409_v13 = vpop.f32.mrf.mxu0  ;;  %v1515_v5 = vadd.f32 %v5355_v62, %v1442_v29 }
 0x204   :  { %6738 = vst [vmem:[#allocation38_spill] sm:$0xff] %v5409_v13  ;;  %v5411_v42 = vpop.f32.mrf.mxu1 }
 0x205   :  { %6739 = vst [vmem:[#allocation39_spill] sm:$0xff] %v5411_v42  ;;  %v5413_v34 = vpop.f32.mrf.mxu0 }
 0x206   :  { %6740 = vst [vmem:[#allocation40_spill] sm:$0xff] %v5413_v34  ;;  %v5415_v3 = vpop.f32.mrf.mxu1  ;;  %v1436_v34 = vadd.f32 %v1435_v63, %v5302_v27  ;;  %v1655_v63 = vadd.f32 %v1654_v51, %v1581_v2 }
 0x207   :  { %6741 = vst [vmem:[#allocation41_spill] sm:$0xff] %v5415_v3  ;;  %v1601_v53 = vpop.f32.mrf.mxu0  ;;  %v1438_v3 = vadd.f32 %v1437_v26, %v5305_v59  ;;  %v1513_v59 = vadd.f32 %v5353_v47, %v1440_v24 }
 0x208   :  { %v1674_v10 = vpop.f32.mrf.mxu1  ;;  %v6747_v12 = vld [vmem:[#allocation44_spill] sm:$0xff] }
 0x209   :  { %v1603_v4 = vpop.f32.mrf.mxu0  ;;  %v1511_v27 = vadd.f32 %v5351_v8, %v1438_v3 }
 0x20a   :  { %v1676_v48 = vpop.f32.mrf.mxu1  ;;  %v6753_v1 = vld [vmem:[#allocation37_spill] sm:$0xff] }
 0x20b   :  { %v1605_v38 = vpop.f32.mrf.mxu0 }
 0x20c   :  { %v1678_v11 = vpop.f32.mrf.mxu1 }
 0x20d   :  { %v1607_v33 = vpop.f32.mrf.mxu0  ;;  %v1679_v18 = vadd.f32 %v1678_v11, %v1605_v38  ;;  %v6746_v38 = vld [vmem:[#allocation35_spill] sm:$0xff] }
 0x20e   :  { %v1680_v32 = vpop.f32.mrf.mxu1 }
 0x20f   :  { %v5417_v0 = vpop.f32.mrf.mxu0  ;;  %v1681_v2 = vadd.f32 %v1680_v32, %v1607_v33 }
 0x210   :  { %6742 = vst [vmem:[#allocation43_spill] sm:$0xff] %v5417_v0  ;;  %v5419_v46 = vpop.f32.mrf.mxu1  ;;  %v1446_v0 = vadd.f32 %v1445_v22, %v5315_v39  ;;  %v1677_v22 = vadd.f32 %v1676_v48, %v1603_v4 }
 0x211   :  { %6743 = vst [vmem:[#allocation46_spill] sm:$0xff] %v5419_v46  ;;  %v5421_v41 = vpop.f32.mrf.mxu0  ;;  %v1448_v46 = vadd.f32 %v1447_v35, %v5318_v6  ;;  %v5450_v6 = vadd.f32 %v5361_v52, %v5321_v25  ;;  %v1531_v35 = vadd.f32 %v5371_v49, %v1458_v17  ;;  %v1659_v52 = vadd.f32 %v1658_v56, %v1585_v54  ;;  %v6748_v56 = vld [vmem:[#allocation29_spill] sm:$0xff]  ;;  %v6754_v17 = vld [vmem:[#allocation100_spill] sm:$0xff] }
 0x212   :  { %6744 = vst [vmem:[#allocation50_spill] sm:$0xff] %v5421_v41  ;;  %v5423_v13 = vpop.f32.mrf.mxu1  ;;  %v1509_v41 = vadd.f32 %v5349_v20, %v1436_v34  ;;  %v5446_v39 = vadd.f32 %v5357_v23, %v1446_v0  ;;  %v1460_v0 = vadd.f32 %v5373_v61, %v5333_v19  ;;  %v1661_v19 = vadd.f32 %v5399_v60, %v5397_v7  ;;  %v6752_v34 = vld [vmem:[#allocation36_spill] sm:$0xff] }
 0x213   :  { %6745 = vst [vmem:[#allocation56_spill] sm:$0xff] %v5423_v13  ;;  %v5426_v42 = vpop.f32.mrf.mxu0  ;;  %v1456_v13 = vadd.f32 %v1455_v21, %v5327_v57  ;;  %v1675_v57 = vadd.f32 %v1674_v10, %v1601_v53  ;;  %v5453_v8 = vadd.f32 %v5359_v9, %v1448_v46  ;;  %v1535_v7 = vadd.f32 %v6748_v56, %v1462_v58  ;;  %v6762_v58 = vld [vmem:[#allocation34_spill] sm:$0xff] }
 0x214   :  { %v5430_v55 = vpop.f32.mrf.mxu1  ;;  %v1533_v4 = vadd.f32 %v5375_v36, %v1460_v0  ;;  %v1667_v44 = vadd.f32 %v6753_v1, %v6752_v34 }
 0x215   :  { %v5437_v43 = vpop.f32.mrf.mxu0  ;;  %v1529_v62 = vadd.f32 %v5369_v30, %v1456_v13  ;;  %v1466_v30 = vadd.f32 %v5381_v15, %v5339_v14  ;;  %v1665_v14 = vadd.f32 %v6747_v12, %v6746_v38 }
 0x216   :  { %v5442_v26 = vpop.f32.mrf.mxu1 }
 0x217   :  { %v6749_v60 = vld [vmem:[#allocation43_spill] sm:$0xff] }
 0x218   :  { %v6750_v29 = vld [vmem:[#allocation46_spill] sm:$0xff] }
 0x219   :  { %v1685_v36 = vadd.f32 %v6750_v29, %v6749_v60 }
 0x237   :  { %v1727_v20 = vpop.f32.mrf.mxu0 }
 0x238   :  { %v1728_v47 = vadd.f32 %v1727_v20, %v1655_v63  ;;  %v1747_v50 = vpop.f32.mrf.mxu1  ;;  %v6755_v63 = vld [vmem:[#allocation33_spill] sm:$0xff]  ;;  %v6756_v20 = vld [vmem:[#allocation50_spill] sm:$0xff] }
 0x239   :  { %v1748_v25 = vadd.f32 %v1747_v50, %v1675_v57  ;;  %v1729_v23 = vpop.f32.mrf.mxu0  ;;  %v1470_v57 = vadd.f32 %v6755_v63, %v6754_v17 }
 0x23a   :  { %v1766_v9 = vadd.f32 %v1728_v47, %v1509_v41  ;;  %v1730_v10 = vadd.f32 %v1729_v23, %v1657_v31  ;;  %v1749_v21 = vpop.f32.mrf.mxu1  ;;  %v6751_v41 = vld [vmem:[#allocation31_spill] sm:$0xff]  ;;  %v6757_v31 = vld [vmem:[#allocation56_spill] sm:$0xff]  ;;  %v6759_v23 = vld [vmem:[#allocation38_spill] sm:$0xff] }
 0x23b   :  { %v1774_v37 = vadd.f32 %v1748_v25, %v1529_v62  ;;  %v1750_v24 = vadd.f32 %v1749_v21, %v1677_v22  ;;  %v1731_v53 = vpop.f32.mrf.mxu0  ;;  %v1539_v13 = vadd.f32 %v6751_v41, %v1466_v30  ;;  %v1687_v47 = vadd.f32 %v6757_v31, %v6756_v20  ;;  %v6758_v22 = vld [vmem:[#allocation115_spill] sm:$0xff] }
 0x23c   :  { %1782 = vst [vmem:[#allocation5] sm:$0xff] %v1766_v9  ;;  %v1767_v48 = vadd.f32 %v1730_v10, %v1511_v27  ;;  %v1732_v49 = vadd.f32 %v1731_v53, %v1659_v52  ;;  %v1751_v61 = vpop.f32.mrf.mxu1  ;;  %v1541_v25 = vadd.f32 %v6758_v22, %v1468_v40  ;;  %v6761_v21 = vld [vmem:[#allocation23_spill] sm:$0xff] }
 0x23d   :  { %1790 = vst [vmem:[#allocation5 + $0x40] sm:$0xff] %v1774_v37  ;;  %v1775_v51 = vadd.f32 %v1750_v24, %v1531_v35  ;;  %v1752_v28 = vadd.f32 %v1751_v61, %v1679_v18  ;;  %v1733_v11 = vpop.f32.mrf.mxu0  ;;  %v6760_v35 = vld [vmem:[#allocation39_spill] sm:$0xff]  ;;  %v1472_v18 = vadd.f32 %v6762_v58, %v6761_v21  ;;  %v1689_v37 = vadd.f32 %v5430_v55, %v5426_v42  ;;  %v6765_v61 = vld [vmem:[#allocation41_spill] sm:$0xff] }
 0x23e   :  { %1783 = vst [vmem:[#allocation5 + $0x8] sm:$0xff] %v1767_v48  ;;  %v1768_v15 = vadd.f32 %v1732_v49, %v1513_v59  ;;  %v1734_v45 = vadd.f32 %v1733_v11, %v1661_v19  ;;  %v1753_v54 = vpop.f32.mrf.mxu1  ;;  %v1669_v52 = vadd.f32 %v6760_v35, %v6759_v23  ;;  %v6763_v19 = vld [vmem:[#allocation25_spill] sm:$0xff]  ;;  %v6764_v49 = vld [vmem:[#allocation40_spill] sm:$0xff]  ;;  %v1691_v55 = vadd.f32 %v5442_v26, %v5437_v43 }
 0x23f   :  { %1791 = vst [vmem:[#allocation5 + $0x48] sm:$0xff] %v1775_v51  ;;  %v1776_v33 = vadd.f32 %v1752_v28, %v1533_v4  ;;  %v1754_v32 = vadd.f32 %v1753_v54, %v1681_v2  ;;  %v1737_v46 = vpop.f32.mrf.mxu0  ;;  %v1523_v48 = vadd.f32 %v6763_v19, %v5450_v6  ;;  %v1671_v4 = vadd.f32 %v6765_v61, %v6764_v49  ;;  %v6766_v28 = vld [vmem:[#allocation116_spill] sm:$0xff]  ;;  %v6767_v6 = vld [vmem:[#allocation27_spill] sm:$0xff] }
 0x240   :  { %1784 = vst [vmem:[#allocation5 + $0x10] sm:$0xff] %v1768_v15  ;;  %v1769_v3 = vadd.f32 %v1734_v45, %v1515_v5  ;;  %v1738_v27 = vadd.f32 %v1737_v46, %v1665_v14  ;;  %v1757_v59 = vpop.f32.mrf.mxu1  ;;  %v1543_v11 = vadd.f32 %v6766_v28, %v1470_v57  ;;  %v1525_v12 = vadd.f32 %v6767_v6, %v5457_v16  ;;  %v6768_v45 = vld [vmem:[#allocation118_spill] sm:$0xff] }
 0x241   :  { %1792 = vst [vmem:[#allocation5 + $0x50] sm:$0xff] %v1776_v33  ;;  %v1777_v50 = vadd.f32 %v1754_v32, %v1535_v7  ;;  %v1758_v62 = vadd.f32 %v1757_v59, %v1685_v36  ;;  %v1739_v0 = vpop.f32.mrf.mxu0  ;;  %v1545_v54 = vadd.f32 %v6768_v45, %v1472_v18 }
 0x242   :  { %1785 = vst [vmem:[#allocation5 + $0x18] sm:$0xff] %v1769_v3  ;;  %v1770_v5 = vadd.f32 %v1738_v27, %v5446_v39  ;;  %v1740_v9 = vadd.f32 %v1739_v0, %v1667_v44  ;;  %v1759_v10 = vpop.f32.mrf.mxu1 }
 0x243   :  { %1793 = vst [vmem:[#allocation5 + $0x58] sm:$0xff] %v1777_v50  ;;  %v1778_v24 = vadd.f32 %v1758_v62, %v1539_v13  ;;  %v1760_v53 = vadd.f32 %v1759_v10, %v1687_v47  ;;  %v1741_v30 = vpop.f32.mrf.mxu0 }
 0x244   :  { %1786 = vst [vmem:[#allocation5 + $0x20] sm:$0xff] %v1770_v5  ;;  %v1771_v39 = vadd.f32 %v1740_v9, %v5453_v8  ;;  %v1742_v2 = vadd.f32 %v1741_v30, %v1669_v52  ;;  %v1761_v51 = vpop.f32.mrf.mxu1 }
 0x245   :  { %1794 = vst [vmem:[#allocation5 + $0x60] sm:$0xff] %v1778_v24  ;;  %v1779_v42 = vadd.f32 %v1760_v53, %v1541_v25  ;;  %v1762_v40 = vadd.f32 %v1761_v51, %v1689_v37  ;;  %v1743_v38 = vpop.f32.mrf.mxu0 }
 0x246   :  { %1787 = vst [vmem:[#allocation5 + $0x28] sm:$0xff] %v1771_v39  ;;  %v1772_v14 = vadd.f32 %v1742_v2, %v1523_v48  ;;  %v1744_v15 = vadd.f32 %v1743_v38, %v1671_v4  ;;  %v1763_v8 = vpop.f32.mrf.mxu1 }
 0x247   :  { %1795 = vst [vmem:[#allocation5 + $0x68] sm:$0xff] %v1779_v42  ;;  %v1780_v56 = vadd.f32 %v1762_v40, %v1543_v11  ;;  %v1764_v7 = vadd.f32 %v1763_v8, %v1691_v55 }
 0x248   :  { %1788 = vst [vmem:[#allocation5 + $0x30] sm:$0xff] %v1772_v14  ;;  %v1773_v43 = vadd.f32 %v1744_v15, %v1525_v12 }
 0x249   :  { %1796 = vst [vmem:[#allocation5 + $0x70] sm:$0xff] %v1780_v56  ;;  %v1781_v26 = vadd.f32 %v1764_v7, %v1545_v54 }
 0x24a   :  { %1789 = vst [vmem:[#allocation5 + $0x38] sm:$0xff] %v1773_v43 }
 0x24b   :  { %1797 = vst [vmem:[#allocation5 + $0x78] sm:$0xff] %v1781_v26 }
 0x24c   :  { %2653 = shalt.err (!%p2650_p9)
}
 0x24d   :  { %s2671_s15 = smov 256   ;;  %s2672_s16 = smov 16  }
 0x24e   :  { %1809 = dma.vmem_to_hbm [thread:$0]  %s1804_s13, 2048, %s5507_s1, [#allocation4], %s2671_s15, %s2671_s15, %s2672_s16  }
 0x24f   :  { %2664 = dma.done.wait [#allocation4], 2048  }
 0x250   :  { %2665 = vsyncadd [#allocation4], 4294965248 }
 0x251   :  { %1813 = vsyncpa [#allocation3], 1 }
 0x252   :  { %1814 = vsyncpa [#allocation4], 1 }

</bundles_post_ra>
